<compile_context>
chip_gen: v6e
topology: v6e:2x2x1
jax: 0.10.0
libtpu: 0.0.40
codegen_flags: <defaults>
</compile_context>

<pallas_src>
import jax
import jax.numpy as jnp
from jax.experimental import pallas as pl
from jax.experimental.pallas import tpu as pltpu

LANES = 128


def _round_up(n, m):
    return ((n + m - 1) // m) * m


def _pad_last(a, n=LANES):
    pad = n - a.shape[-1]
    if pad <= 0:
        return a
    cfg = [(0, 0)] * (a.ndim - 1) + [(0, pad)]
    return jnp.pad(a, cfg)


# ----------------------------- Pallas kernels ------------------------------

def _conv_relu_pool_kernel(x_ref, w_ref, b_ref, o_ref):
    """Fused conv(matmul) + bias + ReLU + 2x2 max-pool.

    x_ref: (4, TM, K) bf16 phase-major im2col patches
    w_ref: (K, 128)  bf16 (real out-channels in leading columns, rest zero)
    b_ref: (1, 128)  f32
    o_ref: (TM, 128) f32  == maxpool2x2(relu(conv + bias)), lane-dense store.
    """
    w = w_ref[...]
    b = b_ref[...]
    out = None
    for p in range(4):                       # statically unrolled: 4 MXU matmuls
        acc = jnp.dot(x_ref[p], w, preferred_element_type=jnp.float32)
        acc = jnp.maximum(acc + b, 0.0)      # bias + ReLU in f32 (v5e-safe)
        out = acc if out is None else jnp.maximum(out, acc)   # 2x2 max-pool
    o_ref[...] = out.astype(o_ref.dtype)


def _fc_stack_kernel(x_ref, w1_ref, b1_ref, w2_ref, b2_ref, w3_ref, b3_ref,
                     o_ref):
    """Fused fc1(ReLU) -> fc2(ReLU) -> fc3.  All N dims lane-padded to 128."""
    h = jnp.dot(x_ref[...], w1_ref[...], preferred_element_type=jnp.float32)
    h = jnp.maximum(h + b1_ref[...], 0.0)
    h = jnp.dot(h.astype(jnp.bfloat16), w2_ref[...],
                preferred_element_type=jnp.float32)
    h = jnp.maximum(h + b2_ref[...], 0.0)
    h = jnp.dot(h.astype(jnp.bfloat16), w3_ref[...],
                preferred_element_type=jnp.float32)
    o_ref[...] = (h + b3_ref[...]).astype(o_ref.dtype)


# ------------------------------ layer wrappers ------------------------------

def conv_relu_pool(x, wmat, bias, kh, kw):
    """Valid conv (stride 1) + bias + ReLU + MaxPool2d(2,2), fused in Pallas.

    x:    (B, H, W, Cin) channels-last.
    wmat: (kh*kw*Cin, 128) bf16.   bias: (1, 128) f32.
    Returns (B, (H-kh+1)//2, (W-kw+1)//2, 128) f32; padded channels are 0.
    """
    B, H, W, C = x.shape
    OH, OW = H - kh + 1, W - kw + 1
    Ho, Wo = OH // 2, OW // 2
    K = kh * kw * C
    n_pad = wmat.shape[1]

    x = x.astype(jnp.bfloat16)
    # Phase-major im2col (channels-last, no transposes): phase (di,dj) holds
    # the patches of all pooled outputs whose pre-pool position is
    # (2*oh+di, 2*ow+dj).  K index order is (i, j, c) to match wmat.
    phases = []
    for di in (0, 1):
        for dj in (0, 1):
            cols = [x[:, di + i: di + i + 2 * Ho - 1: 2,
                        dj + j: dj + j + 2 * Wo - 1: 2, :]
                    for i in range(kh) for j in range(kw)]
            phases.append(
                jnp.concatenate(cols, axis=-1).reshape(B * Ho * Wo, K))
    patches = jnp.stack(phases, axis=0)                       # (4, M, K) bf16

    M = B * Ho * Wo
    tile_m = min(512, _round_up(M, 8))
    m_pad = _round_up(M, tile_m)
    if m_pad != M:
        patches = jnp.pad(patches, ((0, 0), (0, m_pad - M), (0, 0)))

    out = pl.pallas_call(
        _conv_relu_pool_kernel,
        out_shape=jax.ShapeDtypeStruct((m_pad, n_pad), jnp.float32),
        grid=(m_pad // tile_m,),
        in_specs=[
            pl.BlockSpec((4, tile_m, K), lambda m: (0, m, 0)),
            pl.BlockSpec((K, n_pad), lambda m: (0, 0)),
            pl.BlockSpec((1, n_pad), lambda m: (0, 0)),
        ],
        out_specs=pl.BlockSpec((tile_m, n_pad), lambda m: (m, 0)),
        compiler_params=pltpu.CompilerParams(
            dimension_semantics=("parallel",)),
    )(patches, wmat, bias)
    return out[:M].reshape(B, Ho, Wo, n_pad)


def fc_stack(x, w1, b1, w2, b2, w3, b3):
    """x: (B, K) f32.  Returns (B, 128) f32 (first 10 columns are the logits)."""
    B, K = x.shape
    tile_b = min(256, _round_up(B, 8))
    b_pad = _round_up(B, tile_b)
    xb = x.astype(jnp.bfloat16)
    if b_pad != B:
        xb = jnp.pad(xb, ((0, b_pad - B), (0, 0)))
    out = pl.pallas_call(
        _fc_stack_kernel,
        out_shape=jax.ShapeDtypeStruct((b_pad, w3.shape[1]), jnp.float32),
        grid=(b_pad // tile_b,),
        in_specs=[
            pl.BlockSpec((tile_b, K), lambda i: (i, 0)),
            pl.BlockSpec(w1.shape, lambda i: (0, 0)),
            pl.BlockSpec(b1.shape, lambda i: (0, 0)),
            pl.BlockSpec(w2.shape, lambda i: (0, 0)),
            pl.BlockSpec(b2.shape, lambda i: (0, 0)),
            pl.BlockSpec(w3.shape, lambda i: (0, 0)),
            pl.BlockSpec(b3.shape, lambda i: (0, 0)),
        ],
        out_specs=pl.BlockSpec((tile_b, w3.shape[1]), lambda i: (i, 0)),
        compiler_params=pltpu.CompilerParams(
            dimension_semantics=("parallel",)),
    )(xb, w1, b1, w2, b2, w3, b3)
    return out[:B]


# --------------------------------- model ------------------------------------

def init_params(key):
    """PyTorch-layout Net parameters (PyTorch-style uniform init)."""
    def uniform(k, shape, fan_in):
        bound = 1.0 / jnp.sqrt(jnp.float32(fan_in))
        return jax.random.uniform(k, shape, jnp.float32, -bound, bound)

    ks = jax.random.split(key, 10)
    return {
        "conv1_w": uniform(ks[0], (6, 3, 5, 5), 3 * 5 * 5),
        "conv1_b": uniform(ks[1], (6,), 3 * 5 * 5),
        "conv2_w": uniform(ks[2], (16, 6, 5, 5), 6 * 5 * 5),
        "conv2_b": uniform(ks[3], (16,), 6 * 5 * 5),
        "fc1_w": uniform(ks[4], (120, 16 * 5 * 5), 16 * 5 * 5),
        "fc1_b": uniform(ks[5], (120,), 16 * 5 * 5),
        "fc2_w": uniform(ks[6], (84, 120), 120),
        "fc2_b": uniform(ks[7], (84,), 120),
        "fc3_w": uniform(ks[8], (10, 84), 84),
        "fc3_b": uniform(ks[9], (10,), 84),
    }


def prepare_params(params):
    """One-time repack: (K, N) weights with N zero-padded to 128 lanes, bf16
    MXU operands, f32 biases; PyTorch's NCHW flatten folded into fc1 rows."""
    # conv: (Cout, Cin, kh, kw) -> (kh, kw, Cin, Cout) -> (kh*kw*Cin, Cout)
    c1 = jnp.transpose(params["conv1_w"], (2, 3, 1, 0)).reshape(5 * 5 * 3, 6)
    c2 = jnp.transpose(params["conv2_w"], (2, 3, 1, 0)).reshape(5 * 5 * 6, 16)

    # fc1: reorder rows from PyTorch's (c, h, w) flatten to our channels-last
    # (h, w, c-padded-to-128) flatten of the (B, 5, 5, 128) pooled conv2 output.
    f1 = jnp.transpose(params["fc1_w"].reshape(120, 16, 5, 5), (2, 3, 1, 0))
    f1 = jnp.pad(f1, ((0, 0), (0, 0), (0, LANES - 16), (0, 0)))   # (5,5,128,120)
    f1 = f1.reshape(5 * 5 * LANES, 120)

    f2 = jnp.pad(params["fc2_w"].T, ((0, LANES - 120), (0, 0)))   # (128, 84)
    f3 = jnp.pad(params["fc3_w"].T, ((0, LANES - 84), (0, 0)))    # (128, 10)

    def b_row(b):
        return _pad_last(b.reshape(1, -1)).astype(jnp.float32)

    return {
        "c1_w": _pad_last(c1).astype(jnp.bfloat16), "c1_b": b_row(params["conv1_b"]),
        "c2_w": _pad_last(c2).astype(jnp.bfloat16), "c2_b": b_row(params["conv2_b"]),
        "f1_w": _pad_last(f1).astype(jnp.bfloat16), "f1_b": b_row(params["fc1_b"]),
        "f2_w": _pad_last(f2).astype(jnp.bfloat16), "f2_b": b_row(params["fc2_b"]),
        "f3_w": _pad_last(f3).astype(jnp.bfloat16), "f3_b": b_row(params["fc3_b"]),
    }


def net_forward(prep, x_nchw):
    x = jnp.transpose(x_nchw, (0, 2, 3, 1))                          # NHWC once
    y = conv_relu_pool(x, prep["c1_w"], prep["c1_b"], 5, 5)          # (B,14,14,128)
    y = conv_relu_pool(y[..., :6], prep["c2_w"], prep["c2_b"], 5, 5)  # (B,5,5,128)
    # TODO(synk): the given forward() omits the flatten; Linear(16*5*5, 120)
    # implies the standard tutorial view(-1, 400); its NCHW ordering is folded
    # into fc1's weight permutation in prepare_params().
    y = y.reshape(y.shape[0], 5 * 5 * LANES)                         # (B, 3200)
    y = fc_stack(y, prep["f1_w"], prep["f1_b"], prep["f2_w"], prep["f2_b"],
                 prep["f3_w"], prep["f3_b"])                         # (B, 128)
    return y[:, :10]


if __name__ == "__main__":
    key = jax.random.PRNGKey(0)
    pkey, xkey = jax.random.split(key)
    params = init_params(pkey)
    prep = prepare_params(params)
    # Smallest shape consistent with the module: 32x32 RGB (CIFAR-like), batch 2.
    x = jax.random.normal(xkey, (2, 3, 32, 32), dtype=jnp.float32)
    out = jax.jit(net_forward)(prep, x)
    out = jax.block_until_ready(out)
    assert out.shape == (2, 10) and out.dtype == jnp.float32
    assert bool(jnp.all(jnp.isfinite(out)))
    print("KERNEL_OK")
</pallas_src>

<mosaic_0001>
module attributes {stable_mosaic.version = 11 : i64} {
  func.func @_conv_relu_pool_kernel(%arg0: i32, %arg1: memref<4x392x75xbf16, #tpu.memory_space<vmem>>, %arg2: memref<75x128xbf16, #tpu.memory_space<vmem>>, %arg3: memref<1x128xf32, #tpu.memory_space<vmem>>, %arg4: memref<392x128xf32, #tpu.memory_space<vmem>>) attributes {dimension_semantics = [#tpu.dimension_semantics<parallel>], iteration_bounds = array<i64: 1>, scalar_prefetch = 0 : i64, scratch_operands = 0 : i64, tpu.core_type = #tpu.core_type<tc>, window_params = [{transform_indices = @transform_0, window_bounds = array<i64: 4, 392, 75>}, {pipeline_mode = #tpu.pipeline_mode<synchronous>, transform_indices = @transform_1, window_bounds = array<i64: 75, 128>}, {pipeline_mode = #tpu.pipeline_mode<synchronous>, transform_indices = @transform_2, window_bounds = array<i64: 1, 128>}, {transform_indices = @transform_3, window_bounds = array<i64: 392, 128>}]} {
    %c0 = arith.constant 0 : index
    %c0_0 = arith.constant 0 : index
    %0 = vector.load %arg2[%c0, %c0_0] : memref<75x128xbf16, #tpu.memory_space<vmem>>, vector<75x128xbf16>
    %c0_1 = arith.constant 0 : index
    %c0_2 = arith.constant 0 : index
    %1 = vector.load %arg3[%c0_1, %c0_2] : memref<1x128xf32, #tpu.memory_space<vmem>>, vector<1x128xf32>
    %c0_3 = arith.constant 0 : index
    %c0_4 = arith.constant 0 : index
    %c0_5 = arith.constant 0 : index
    %2 = vector.load %arg1[%c0_3, %c0_4, %c0_5] : memref<4x392x75xbf16, #tpu.memory_space<vmem>>, vector<1x392x75xbf16>
    %3 = vector.shape_cast %2 : vector<1x392x75xbf16> to vector<392x75xbf16>
    %cst = arith.constant dense<0.000000e+00> : vector<392x128xf32>
    %4 = tpu.matmul %3, %0, %cst {dimension_numbers = #tpu.dot_dimension_numbers<[1], [0], [0], [1], [0, 0, 1, 1], [], []>} : vector<392x75xbf16>, vector<75x128xbf16>, vector<392x128xf32> -> vector<392x128xf32>
    %5 = vector.broadcast %1 : vector<1x128xf32> to vector<392x128xf32>
    %6 = arith.addf %4, %5 : vector<392x128xf32>
    %cst_6 = arith.constant 0.000000e+00 : f32
    %7 = vector.broadcast %cst_6 : f32 to vector<392x128xf32>
    %8 = arith.maximumf %6, %7 : vector<392x128xf32>
    %c1 = arith.constant 1 : index
    %c0_7 = arith.constant 0 : index
    %c0_8 = arith.constant 0 : index
    %9 = vector.load %arg1[%c1, %c0_7, %c0_8] : memref<4x392x75xbf16, #tpu.memory_space<vmem>>, vector<1x392x75xbf16>
    %10 = vector.shape_cast %9 : vector<1x392x75xbf16> to vector<392x75xbf16>
    %cst_9 = arith.constant dense<0.000000e+00> : vector<392x128xf32>
    %11 = tpu.matmul %10, %0, %cst_9 {dimension_numbers = #tpu.dot_dimension_numbers<[1], [0], [0], [1], [0, 0, 1, 1], [], []>} : vector<392x75xbf16>, vector<75x128xbf16>, vector<392x128xf32> -> vector<392x128xf32>
    %12 = vector.broadcast %1 : vector<1x128xf32> to vector<392x128xf32>
    %13 = arith.addf %11, %12 : vector<392x128xf32>
    %cst_10 = arith.constant 0.000000e+00 : f32
    %14 = vector.broadcast %cst_10 : f32 to vector<392x128xf32>
    %15 = arith.maximumf %13, %14 : vector<392x128xf32>
    %16 = arith.maximumf %8, %15 : vector<392x128xf32>
    %c2 = arith.constant 2 : index
    %c0_11 = arith.constant 0 : index
    %c0_12 = arith.constant 0 : index
    %17 = vector.load %arg1[%c2, %c0_11, %c0_12] : memref<4x392x75xbf16, #tpu.memory_space<vmem>>, vector<1x392x75xbf16>
    %18 = vector.shape_cast %17 : vector<1x392x75xbf16> to vector<392x75xbf16>
    %cst_13 = arith.constant dense<0.000000e+00> : vector<392x128xf32>
    %19 = tpu.matmul %18, %0, %cst_13 {dimension_numbers = #tpu.dot_dimension_numbers<[1], [0], [0], [1], [0, 0, 1, 1], [], []>} : vector<392x75xbf16>, vector<75x128xbf16>, vector<392x128xf32> -> vector<392x128xf32>
    %20 = vector.broadcast %1 : vector<1x128xf32> to vector<392x128xf32>
    %21 = arith.addf %19, %20 : vector<392x128xf32>
    %cst_14 = arith.constant 0.000000e+00 : f32
    %22 = vector.broadcast %cst_14 : f32 to vector<392x128xf32>
    %23 = arith.maximumf %21, %22 : vector<392x128xf32>
    %24 = arith.maximumf %16, %23 : vector<392x128xf32>
    %c3 = arith.constant 3 : index
    %c0_15 = arith.constant 0 : index
    %c0_16 = arith.constant 0 : index
    %25 = vector.load %arg1[%c3, %c0_15, %c0_16] : memref<4x392x75xbf16, #tpu.memory_space<vmem>>, vector<1x392x75xbf16>
    %26 = vector.shape_cast %25 : vector<1x392x75xbf16> to vector<392x75xbf16>
    %cst_17 = arith.constant dense<0.000000e+00> : vector<392x128xf32>
    %27 = tpu.matmul %26, %0, %cst_17 {dimension_numbers = #tpu.dot_dimension_numbers<[1], [0], [0], [1], [0, 0, 1, 1], [], []>} : vector<392x75xbf16>, vector<75x128xbf16>, vector<392x128xf32> -> vector<392x128xf32>
    %28 = vector.broadcast %1 : vector<1x128xf32> to vector<392x128xf32>
    %29 = arith.addf %27, %28 : vector<392x128xf32>
    %cst_18 = arith.constant 0.000000e+00 : f32
    %30 = vector.broadcast %cst_18 : f32 to vector<392x128xf32>
    %31 = arith.maximumf %29, %30 : vector<392x128xf32>
    %32 = arith.maximumf %24, %31 : vector<392x128xf32>
    %c0_19 = arith.constant 0 : index
    %c0_20 = arith.constant 0 : index
    %33 = vector.load %arg4[%c0_19, %c0_20] : memref<392x128xf32, #tpu.memory_space<vmem>>, vector<392x128xf32>
    tpu.vector_store %arg4[%c0_19, %c0_20], %32 {strides = array<i32>} : memref<392x128xf32, #tpu.memory_space<vmem>>, vector<392x128xf32>,
    return
  }
  func.func @transform_0(%arg0: i32) -> (i32, i32, i32) {
    %c0_i32 = arith.constant 0 : i32
    %c0_i32_0 = arith.constant 0 : i32
    %c0_i32_1 = arith.constant 0 : i32
    return %c0_i32, %arg0, %c0_i32_0 : i32, i32, i32
  }
  func.func @transform_1(%arg0: i32) -> (i32, i32) {
    %c0_i32 = arith.constant 0 : i32
    %c0_i32_0 = arith.constant 0 : i32
    %c0_i32_1 = arith.constant 0 : i32
    return %c0_i32, %c0_i32_0 : i32, i32
  }
  func.func @transform_2(%arg0: i32) -> (i32, i32) {
    %c0_i32 = arith.constant 0 : i32
    %c0_i32_0 = arith.constant 0 : i32
    %c0_i32_1 = arith.constant 0 : i32
    return %c0_i32, %c0_i32_0 : i32, i32
  }
  func.func @transform_3(%arg0: i32) -> (i32, i32) {
    %c0_i32 = arith.constant 0 : i32
    %c0_i32_0 = arith.constant 0 : i32
    return %arg0, %c0_i32 : i32, i32
  }
}

module attributes {stable_mosaic.version = 11 : i64} {
  func.func @_conv_relu_pool_kernel(%arg0: i32, %arg1: memref<4x56x150xbf16, #tpu.memory_space<vmem>>, %arg2: memref<150x128xbf16, #tpu.memory_space<vmem>>, %arg3: memref<1x128xf32, #tpu.memory_space<vmem>>, %arg4: memref<56x128xf32, #tpu.memory_space<vmem>>) attributes {dimension_semantics = [#tpu.dimension_semantics<parallel>], iteration_bounds = array<i64: 1>, scalar_prefetch = 0 : i64, scratch_operands = 0 : i64, tpu.core_type = #tpu.core_type<tc>, window_params = [{transform_indices = @transform_0, window_bounds = array<i64: 4, 56, 150>}, {pipeline_mode = #tpu.pipeline_mode<synchronous>, transform_indices = @transform_1, window_bounds = array<i64: 150, 128>}, {pipeline_mode = #tpu.pipeline_mode<synchronous>, transform_indices = @transform_2, window_bounds = array<i64: 1, 128>}, {transform_indices = @transform_3, window_bounds = array<i64: 56, 128>}]} {
    %c0 = arith.constant 0 : index
    %c0_0 = arith.constant 0 : index
    %0 = vector.load %arg2[%c0, %c0_0] : memref<150x128xbf16, #tpu.memory_space<vmem>>, vector<150x128xbf16>
    %c0_1 = arith.constant 0 : index
    %c0_2 = arith.constant 0 : index
    %1 = vector.load %arg3[%c0_1, %c0_2] : memref<1x128xf32, #tpu.memory_space<vmem>>, vector<1x128xf32>
    %c0_3 = arith.constant 0 : index
    %c0_4 = arith.constant 0 : index
    %c0_5 = arith.constant 0 : index
    %2 = vector.load %arg1[%c0_3, %c0_4, %c0_5] : memref<4x56x150xbf16, #tpu.memory_space<vmem>>, vector<1x56x150xbf16>
    %3 = vector.shape_cast %2 : vector<1x56x150xbf16> to vector<56x150xbf16>
    %cst = arith.constant dense<0.000000e+00> : vector<56x128xf32>
    %4 = tpu.matmul %3, %0, %cst {dimension_numbers = #tpu.dot_dimension_numbers<[1], [0], [0], [1], [0, 0, 1, 1], [], []>} : vector<56x150xbf16>, vector<150x128xbf16>, vector<56x128xf32> -> vector<56x128xf32>
    %5 = vector.broadcast %1 : vector<1x128xf32> to vector<56x128xf32>
    %6 = arith.addf %4, %5 : vector<56x128xf32>
    %cst_6 = arith.constant 0.000000e+00 : f32
    %7 = vector.broadcast %cst_6 : f32 to vector<56x128xf32>
    %8 = arith.maximumf %6, %7 : vector<56x128xf32>
    %c1 = arith.constant 1 : index
    %c0_7 = arith.constant 0 : index
    %c0_8 = arith.constant 0 : index
    %9 = vector.load %arg1[%c1, %c0_7, %c0_8] : memref<4x56x150xbf16, #tpu.memory_space<vmem>>, vector<1x56x150xbf16>
    %10 = vector.shape_cast %9 : vector<1x56x150xbf16> to vector<56x150xbf16>
    %cst_9 = arith.constant dense<0.000000e+00> : vector<56x128xf32>
    %11 = tpu.matmul %10, %0, %cst_9 {dimension_numbers = #tpu.dot_dimension_numbers<[1], [0], [0], [1], [0, 0, 1, 1], [], []>} : vector<56x150xbf16>, vector<150x128xbf16>, vector<56x128xf32> -> vector<56x128xf32>
    %12 = vector.broadcast %1 : vector<1x128xf32> to vector<56x128xf32>
    %13 = arith.addf %11, %12 : vector<56x128xf32>
    %cst_10 = arith.constant 0.000000e+00 : f32
    %14 = vector.broadcast %cst_10 : f32 to vector<56x128xf32>
    %15 = arith.maximumf %13, %14 : vector<56x128xf32>
    %16 = arith.maximumf %8, %15 : vector<56x128xf32>
    %c2 = arith.constant 2 : index
    %c0_11 = arith.constant 0 : index
    %c0_12 = arith.constant 0 : index
    %17 = vector.load %arg1[%c2, %c0_11, %c0_12] : memref<4x56x150xbf16, #tpu.memory_space<vmem>>, vector<1x56x150xbf16>
    %18 = vector.shape_cast %17 : vector<1x56x150xbf16> to vector<56x150xbf16>
    %cst_13 = arith.constant dense<0.000000e+00> : vector<56x128xf32>
    %19 = tpu.matmul %18, %0, %cst_13 {dimension_numbers = #tpu.dot_dimension_numbers<[1], [0], [0], [1], [0, 0, 1, 1], [], []>} : vector<56x150xbf16>, vector<150x128xbf16>, vector<56x128xf32> -> vector<56x128xf32>
    %20 = vector.broadcast %1 : vector<1x128xf32> to vector<56x128xf32>
    %21 = arith.addf %19, %20 : vector<56x128xf32>
    %cst_14 = arith.constant 0.000000e+00 : f32
    %22 = vector.broadcast %cst_14 : f32 to vector<56x128xf32>
    %23 = arith.maximumf %21, %22 : vector<56x128xf32>
    %24 = arith.maximumf %16, %23 : vector<56x128xf32>
    %c3 = arith.constant 3 : index
    %c0_15 = arith.constant 0 : index
    %c0_16 = arith.constant 0 : index
    %25 = vector.load %arg1[%c3, %c0_15, %c0_16] : memref<4x56x150xbf16, #tpu.memory_space<vmem>>, vector<1x56x150xbf16>
    %26 = vector.shape_cast %25 : vector<1x56x150xbf16> to vector<56x150xbf16>
    %cst_17 = arith.constant dense<0.000000e+00> : vector<56x128xf32>
    %27 = tpu.matmul %26, %0, %cst_17 {dimension_numbers = #tpu.dot_dimension_numbers<[1], [0], [0], [1], [0, 0, 1, 1], [], []>} : vector<56x150xbf16>, vector<150x128xbf16>, vector<56x128xf32> -> vector<56x128xf32>
    %28 = vector.broadcast %1 : vector<1x128xf32> to vector<56x128xf32>
    %29 = arith.addf %27, %28 : vector<56x128xf32>
    %cst_18 = arith.constant 0.000000e+00 : f32
    %30 = vector.broadcast %cst_18 : f32 to vector<56x128xf32>
    %31 = arith.maximumf %29, %30 : vector<56x128xf32>
    %32 = arith.maximumf %24, %31 : vector<56x128xf32>
    %c0_19 = arith.constant 0 : index
    %c0_20 = arith.constant 0 : index
    %33 = vector.load %arg4[%c0_19, %c0_20] : memref<56x128xf32, #tpu.memory_space<vmem>>, vector<56x128xf32>
    tpu.vector_store %arg4[%c0_19, %c0_20], %32 {strides = array<i32>} : memref<56x128xf32, #tpu.memory_space<vmem>>, vector<56x128xf32>,
    return
  }
  func.func @transform_0(%arg0: i32) -> (i32, i32, i32) {
    %c0_i32 = arith.constant 0 : i32
    %c0_i32_0 = arith.constant 0 : i32
    %c0_i32_1 = arith.constant 0 : i32
    return %c0_i32, %arg0, %c0_i32_0 : i32, i32, i32
  }
  func.func @transform_1(%arg0: i32) -> (i32, i32) {
    %c0_i32 = arith.constant 0 : i32
    %c0_i32_0 = arith.constant 0 : i32
    %c0_i32_1 = arith.constant 0 : i32
    return %c0_i32, %c0_i32_0 : i32, i32
  }
  func.func @transform_2(%arg0: i32) -> (i32, i32) {
    %c0_i32 = arith.constant 0 : i32
    %c0_i32_0 = arith.constant 0 : i32
    %c0_i32_1 = arith.constant 0 : i32
    return %c0_i32, %c0_i32_0 : i32, i32
  }
  func.func @transform_3(%arg0: i32) -> (i32, i32) {
    %c0_i32 = arith.constant 0 : i32
    %c0_i32_0 = arith.constant 0 : i32
    return %arg0, %c0_i32 : i32, i32
  }
}

module attributes {stable_mosaic.version = 11 : i64} {
  func.func @_fc_stack_kernel(%arg0: i32, %arg1: memref<8x3200xbf16, #tpu.memory_space<vmem>>, %arg2: memref<3200x128xbf16, #tpu.memory_space<vmem>>, %arg3: memref<1x128xf32, #tpu.memory_space<vmem>>, %arg4: memref<128x128xbf16, #tpu.memory_space<vmem>>, %arg5: memref<1x128xf32, #tpu.memory_space<vmem>>, %arg6: memref<128x128xbf16, #tpu.memory_space<vmem>>, %arg7: memref<1x128xf32, #tpu.memory_space<vmem>>, %arg8: memref<8x128xf32, #tpu.memory_space<vmem>>) attributes {dimension_semantics = [#tpu.dimension_semantics<parallel>], iteration_bounds = array<i64: 1>, scalar_prefetch = 0 : i64, scratch_operands = 0 : i64, tpu.core_type = #tpu.core_type<tc>, window_params = [{transform_indices = @transform_0, window_bounds = array<i64: 8, 3200>}, {pipeline_mode = #tpu.pipeline_mode<synchronous>, transform_indices = @transform_1, window_bounds = array<i64: 3200, 128>}, {pipeline_mode = #tpu.pipeline_mode<synchronous>, transform_indices = @transform_2, window_bounds = array<i64: 1, 128>}, {pipeline_mode = #tpu.pipeline_mode<synchronous>, transform_indices = @transform_3, window_bounds = array<i64: 128, 128>}, {pipeline_mode = #tpu.pipeline_mode<synchronous>, transform_indices = @transform_4, window_bounds = array<i64: 1, 128>}, {pipeline_mode = #tpu.pipeline_mode<synchronous>, transform_indices = @transform_5, window_bounds = array<i64: 128, 128>}, {pipeline_mode = #tpu.pipeline_mode<synchronous>, transform_indices = @transform_6, window_bounds = array<i64: 1, 128>}, {transform_indices = @transform_7, window_bounds = array<i64: 8, 128>}]} {
    %c0 = arith.constant 0 : index
    %c0_0 = arith.constant 0 : index
    %0 = vector.load %arg1[%c0, %c0_0] : memref<8x3200xbf16, #tpu.memory_space<vmem>>, vector<8x3200xbf16>
    %c0_1 = arith.constant 0 : index
    %c0_2 = arith.constant 0 : index
    %1 = vector.load %arg2[%c0_1, %c0_2] : memref<3200x128xbf16, #tpu.memory_space<vmem>>, vector<3200x128xbf16>
    %cst = arith.constant dense<0.000000e+00> : vector<8x128xf32>
    %2 = tpu.matmul %0, %1, %cst {dimension_numbers = #tpu.dot_dimension_numbers<[1], [0], [0], [1], [0, 0, 1, 1], [], []>} : vector<8x3200xbf16>, vector<3200x128xbf16>, vector<8x128xf32> -> vector<8x128xf32>
    %c0_3 = arith.constant 0 : index
    %c0_4 = arith.constant 0 : index
    %3 = vector.load %arg3[%c0_3, %c0_4] : memref<1x128xf32, #tpu.memory_space<vmem>>, vector<1x128xf32>
    %4 = vector.broadcast %3 : vector<1x128xf32> to vector<8x128xf32>
    %5 = arith.addf %2, %4 : vector<8x128xf32>
    %cst_5 = arith.constant 0.000000e+00 : f32
    %6 = vector.broadcast %cst_5 : f32 to vector<8x128xf32>
    %7 = arith.maximumf %5, %6 : vector<8x128xf32>
    %8 = arith.truncf %7 : vector<8x128xf32> to vector<8x128xbf16>
    %c0_6 = arith.constant 0 : index
    %c0_7 = arith.constant 0 : index
    %9 = vector.load %arg4[%c0_6, %c0_7] : memref<128x128xbf16, #tpu.memory_space<vmem>>, vector<128x128xbf16>
    %cst_8 = arith.constant dense<0.000000e+00> : vector<8x128xf32>
    %10 = tpu.matmul %8, %9, %cst_8 {dimension_numbers = #tpu.dot_dimension_numbers<[1], [0], [0], [1], [0, 0, 1, 1], [], []>} : vector<8x128xbf16>, vector<128x128xbf16>, vector<8x128xf32> -> vector<8x128xf32>
    %c0_9 = arith.constant 0 : index
    %c0_10 = arith.constant 0 : index
    %11 = vector.load %arg5[%c0_9, %c0_10] : memref<1x128xf32, #tpu.memory_space<vmem>>, vector<1x128xf32>
    %12 = vector.broadcast %11 : vector<1x128xf32> to vector<8x128xf32>
    %13 = arith.addf %10, %12 : vector<8x128xf32>
    %cst_11 = arith.constant 0.000000e+00 : f32
    %14 = vector.broadcast %cst_11 : f32 to vector<8x128xf32>
    %15 = arith.maximumf %13, %14 : vector<8x128xf32>
    %16 = arith.truncf %15 : vector<8x128xf32> to vector<8x128xbf16>
    %c0_12 = arith.constant 0 : index
    %c0_13 = arith.constant 0 : index
    %17 = vector.load %arg6[%c0_12, %c0_13] : memref<128x128xbf16, #tpu.memory_space<vmem>>, vector<128x128xbf16>
    %cst_14 = arith.constant dense<0.000000e+00> : vector<8x128xf32>
    %18 = tpu.matmul %16, %17, %cst_14 {dimension_numbers = #tpu.dot_dimension_numbers<[1], [0], [0], [1], [0, 0, 1, 1], [], []>} : vector<8x128xbf16>, vector<128x128xbf16>, vector<8x128xf32> -> vector<8x128xf32>
    %c0_15 = arith.constant 0 : index
    %c0_16 = arith.constant 0 : index
    %19 = vector.load %arg7[%c0_15, %c0_16] : memref<1x128xf32, #tpu.memory_space<vmem>>, vector<1x128xf32>
    %20 = vector.broadcast %19 : vector<1x128xf32> to vector<8x128xf32>
    %21 = arith.addf %18, %20 : vector<8x128xf32>
    %c0_17 = arith.constant 0 : index
    %c0_18 = arith.constant 0 : index
    %22 = vector.load %arg8[%c0_17, %c0_18] : memref<8x128xf32, #tpu.memory_space<vmem>>, vector<8x128xf32>
    tpu.vector_store %arg8[%c0_17, %c0_18], %21 {strides = array<i32>} : memref<8x128xf32, #tpu.memory_space<vmem>>, vector<8x128xf32>,
    return
  }
  func.func @transform_0(%arg0: i32) -> (i32, i32) {
    %c0_i32 = arith.constant 0 : i32
    %c0_i32_0 = arith.constant 0 : i32
    return %arg0, %c0_i32 : i32, i32
  }
  func.func @transform_1(%arg0: i32) -> (i32, i32) {
    %c0_i32 = arith.constant 0 : i32
    %c0_i32_0 = arith.constant 0 : i32
    %c0_i32_1 = arith.constant 0 : i32
    return %c0_i32, %c0_i32_0 : i32, i32
  }
  func.func @transform_2(%arg0: i32) -> (i32, i32) {
    %c0_i32 = arith.constant 0 : i32
    %c0_i32_0 = arith.constant 0 : i32
    %c0_i32_1 = arith.constant 0 : i32
    return %c0_i32, %c0_i32_0 : i32, i32
  }
  func.func @transform_3(%arg0: i32) -> (i32, i32) {
    %c0_i32 = arith.constant 0 : i32
    %c0_i32_0 = arith.constant 0 : i32
    %c0_i32_1 = arith.constant 0 : i32
    return %c0_i32, %c0_i32_0 : i32, i32
  }
  func.func @transform_4(%arg0: i32) -> (i32, i32) {
    %c0_i32 = arith.constant 0 : i32
    %c0_i32_0 = arith.constant 0 : i32
    %c0_i32_1 = arith.constant 0 : i32
    return %c0_i32, %c0_i32_0 : i32, i32
  }
  func.func @transform_5(%arg0: i32) -> (i32, i32) {
    %c0_i32 = arith.constant 0 : i32
    %c0_i32_0 = arith.constant 0 : i32
    %c0_i32_1 = arith.constant 0 : i32
    return %c0_i32, %c0_i32_0 : i32, i32
  }
  func.func @transform_6(%arg0: i32) -> (i32, i32) {
    %c0_i32 = arith.constant 0 : i32
    %c0_i32_0 = arith.constant 0 : i32
    %c0_i32_1 = arith.constant 0 : i32
    return %c0_i32, %c0_i32_0 : i32, i32
  }
  func.func @transform_7(%arg0: i32) -> (i32, i32) {
    %c0_i32 = arith.constant 0 : i32
    %c0_i32_0 = arith.constant 0 : i32
    return %arg0, %c0_i32 : i32, i32
  }
}

</mosaic_0001>

<bundles_post_ra>
// kernel: net_forward.3
= control target key start
LH: loop header
LB: loop body
LE: loop exit
PB: predicated region body
PF: predicated region fallthrough
CT: control target
= control target key end

     0   :  { %vm309_vm0 = vcmask 1044480   ;;  %vm310_vm1 = vcmask 1045504   ;;  %v4574_v0 = vmov 0.0   ;;  %v3408_v2 = vmov 65535   ;;  %s4570_s1 = inlined_call_operand.vmem [shape: bf16[75,128], index: 1, kind: input, shape index: {}]   ;;  %s4571_s0 = inlined_call_operand.vmem [shape: bf16[4,392,75], index: 0, kind: input, shape index: {}]   ;;  %s4572_s2 = inlined_call_operand.vmem [shape: f32[1,128], index: 2, kind: input, shape index: {}]   ;;  %s4573_s3 = inlined_call_operand.vmem [shape: f32[392,128], index: 3, kind: output, shape index: {}]  }
   0x1   :  { %2857 = vmatprep.subr.bf16.mxu0 %v4574_v0  ;;  %2967 = vmatprep.subr.bf16.mxu1 %v4574_v0  ;;  %v3300_v1 = vld [vmem:[%s4570_s1 + $0x20] sm:$0x3f]   ;;  %v311_v3 = vsel %vm309_vm0, 4294967295, %v3408_v2  ;;  %vm3409_vm2 = vmmov 0   ;;  %v3301_v6 = vld [vmem:[%s4570_s1 + $0x18] sm:$0xff]   ;;  %v3302_v7 = vld [vmem:[%s4570_s1 + $0x10] sm:$0xff]  }
   0x2   :  { %v312_v4 = vsel %vm310_vm1, %v311_v3, 0  ;;  %2867 = vmatprep.mubr.msk.bf16.mxu0 %vm3409_vm2, %v4574_v0  ;;  %2977 = vmatprep.mubr.msk.bf16.mxu1 %vm3409_vm2, %v4574_v0  ;;  %v3303_v8 = vld [vmem:[%s4570_s1 + $0x8] sm:$0xff]   ;;  %v3304_v9 = vld [vmem:[%s4570_s1] sm:$0xff]   ;;  %vm233_vm3 = vcmask 613376   ;;  %v3309_v14 = vld [vmem:[%s4571_s0 + $0x10] sm:$0xff]  }
   0x3   :  { %v314_v5 = vand.u32 %v3300_v1, %v312_v4  ;;  %v3305_v10 = vld [vmem:[%s4571_s0] sm:$0xff]   ;;  %v3307_v12 = vld [vmem:[%s4571_s0 + $0x8] sm:$0xff]   ;;  %v3310_v15 = vld [vmem:[%s4571_s0 + $0xd4] sm:$0xff]  }
   0x4   :  { %v3306_v11 = vld [vmem:[%s4571_s0 + $0xc4] sm:$0xff]   ;;  %v3308_v13 = vld [vmem:[%s4571_s0 + $0xcc] sm:$0xff]   ;;  %v3311_v16 = vld [vmem:[%s4571_s0 + $0x18] sm:$0xff]  }
   0x5   :  { %2858 = vmatpush3.bf16.msra.mxu0 %v314_v5  ;;  %2968 = vmatpush3.bf16.msra.mxu1 %v314_v5  ;;  %v3312_v17 = vld [vmem:[%s4571_s0 + $0xdc] sm:$0xff]   ;;  %v3314_v19 = vld [vmem:[%s4571_s0 + $0xe4] sm:$0xff]   ;;  %v3316_v21 = vld [vmem:[%s4571_s0 + $0xec] sm:$0xff]  }
   0x6   :  { %2859 = vmatprep.subr.bf16.mxu0 %v4574_v0  ;;  %2969 = vmatprep.subr.bf16.mxu1 %v4574_v0  ;;  %v3313_v18 = vld [vmem:[%s4571_s0 + $0x20] sm:$0xff]   ;;  %v3315_v20 = vld [vmem:[%s4571_s0 + $0x28] sm:$0xff]   ;;  %v3317_v22 = vld [vmem:[%s4571_s0 + $0x30] sm:$0xff]  }
   0x7   :  { %v3318_v23 = vld [vmem:[%s4571_s0 + $0xf4] sm:$0xff]   ;;  %v3320_v25 = vld [vmem:[%s4571_s0 + $0xfc] sm:$0xff]   ;;  %v3322_v27 = vld [vmem:[%s4571_s0 + $0x104] sm:$0xff]  }
   0x8   :  { %v3319_v24 = vld [vmem:[%s4571_s0 + $0x38] sm:$0xff]   ;;  %v3321_v26 = vld [vmem:[%s4571_s0 + $0x40] sm:$0xff]   ;;  %v3323_v28 = vld [vmem:[%s4571_s0 + $0x48] sm:$0xff]  }
   0x9   :  { %2860 = vmatpush3.bf16.msra.mxu0 %v3301_v6  ;;  %2970 = vmatpush3.bf16.msra.mxu1 %v3301_v6  ;;  %v3324_v29 = vld [vmem:[%s4571_s0 + $0x10c] sm:$0xff]   ;;  %v3326_v31 = vld [vmem:[%s4571_s0 + $0x114] sm:$0xff]   ;;  %v3328_v33 = vld [vmem:[%s4571_s0 + $0x11c] sm:$0xff]  }
   0xa   :  { %2861 = vmatprep.subr.bf16.mxu0 %v4574_v0  ;;  %2971 = vmatprep.subr.bf16.mxu1 %v4574_v0  ;;  %v3325_v30 = vld [vmem:[%s4571_s0 + $0x50] sm:$0xff]   ;;  %v3327_v32 = vld [vmem:[%s4571_s0 + $0x58] sm:$0xff]   ;;  %v3329_v34 = vld [vmem:[%s4571_s0 + $0x60] sm:$0xff]  }
   0xb   :  { %v3330_v35 = vld [vmem:[%s4571_s0 + $0x124] sm:$0xff]   ;;  %v3332_v37 = vld [vmem:[%s4571_s0 + $0x12c] sm:$0xff]   ;;  %v3334_v39 = vld [vmem:[%s4571_s0 + $0x134] sm:$0xff]  }
   0xc   :  { %v3331_v36 = vld [vmem:[%s4571_s0 + $0x68] sm:$0xff]   ;;  %v3333_v38 = vld [vmem:[%s4571_s0 + $0x70] sm:$0xff]   ;;  %v3335_v40 = vld [vmem:[%s4571_s0 + $0x78] sm:$0xff]  }
   0xd   :  { %2862 = vmatpush3.bf16.msra.mxu0 %v3302_v7  ;;  %2972 = vmatpush3.bf16.msra.mxu1 %v3302_v7  ;;  %v3336_v41 = vld [vmem:[%s4571_s0 + $0x13c] sm:$0xff]   ;;  %v3338_v43 = vld [vmem:[%s4571_s0 + $0x144] sm:$0xff]   ;;  %v3340_v45 = vld [vmem:[%s4571_s0 + $0x14c] sm:$0xff]  }
   0xe   :  { %2863 = vmatprep.subr.bf16.mxu0 %v4574_v0  ;;  %2973 = vmatprep.subr.bf16.mxu1 %v4574_v0  ;;  %v3337_v42 = vld [vmem:[%s4571_s0 + $0x80] sm:$0xff]   ;;  %v3339_v44 = vld [vmem:[%s4571_s0 + $0x88] sm:$0xff]   ;;  %v3341_v46 = vld [vmem:[%s4571_s0 + $0x90] sm:$0xff]  }
   0xf   :  { %v3342_v47 = vld [vmem:[%s4571_s0 + $0x154] sm:$0xff]   ;;  %v3344_v49 = vld [vmem:[%s4571_s0 + $0x15c] sm:$0xff]   ;;  %v3346_v51 = vld [vmem:[%s4571_s0 + $0x164] sm:$0xff]  }
  0x10   :  { %v3343_v48 = vld [vmem:[%s4571_s0 + $0x98] sm:$0xff]   ;;  %v3345_v50 = vld [vmem:[%s4571_s0 + $0xa0] sm:$0xff]   ;;  %v3347_v52 = vld [vmem:[%s4571_s0 + $0xa8] sm:$0xff]  }
  0x11   :  { %2864 = vmatpush3.bf16.msra.mxu0 %v3303_v8  ;;  %2974 = vmatpush3.bf16.msra.mxu1 %v3303_v8  ;;  %v3348_v53 = vld [vmem:[%s4571_s0 + $0x16c] sm:$0xff]   ;;  %v3350_v55 = vld [vmem:[%s4571_s0 + $0x174] sm:$0xff]   ;;  %v3352_v57 = vld [vmem:[%s4571_s0 + $0x17c] sm:$0xff]  }
  0x12   :  { %2865 = vmatprep.subr.bf16.mxu0 %v4574_v0  ;;  %2975 = vmatprep.subr.bf16.mxu1 %v4574_v0  ;;  %v3349_v54 = vld [vmem:[%s4571_s0 + $0xb0] sm:$0xff]   ;;  %v3351_v56 = vld [vmem:[%s4571_s0 + $0xb8] sm:$0xff]   ;;  %v3353_v58 = vld [vmem:[%s4571_s0 + $0xc0] ss:$0 sps:$4 sm:$0xff]  }
  0x13   :  { %v3354_v59 = vld [vmem:[%s4571_s0 + $0x184] ss:$0 sps:$4 sm:$0xff]   ;;  %v3766_v60 = vld [vmem:[%s4572_s2] ss:$0 sm:$0xff] }
  0x15   :  { %2866 = vmatpush3.bf16.msra.mxu0 %v3304_v9  ;;  %2976 = vmatpush3.bf16.msra.mxu1 %v3304_v9 }
  0x16   :  { %3077 = vmatprep.subr.bf16.mxu0 %v4574_v0  ;;  %3187 = vmatprep.subr.bf16.mxu1 %v4574_v0 }
  0x18   :  { %2868 = vmatmul.mubr.msk.bf16.vlgmr.msra.gmra.mxu0 %vm233_vm3, %v3305_v10  ;;  %2978 = vmatmul.mubr.msk.bf16.vlgmr.msra.gmra.mxu1 %vm233_vm3, %v3306_v11 }
  0x19   :  { %3078 = vmatpush3.bf16.msra.mxu0 %v314_v5  ;;  %3188 = vmatpush3.bf16.msra.mxu1 %v314_v5 }
  0x1a   :  { %2871 = vmatprep.mubr.msk.bf16.mxu0 %vm3409_vm2, %v4574_v0  ;;  %2981 = vmatprep.mubr.msk.bf16.mxu1 %vm3409_vm2, %v4574_v0 }
  0x1b   :  { %3079 = vmatprep.subr.bf16.mxu0 %v4574_v0  ;;  %3189 = vmatprep.subr.bf16.mxu1 %v4574_v0 }
  0x1d   :  { %3080 = vmatpush3.bf16.msra.mxu0 %v3301_v6  ;;  %3190 = vmatpush3.bf16.msra.mxu1 %v3301_v6 }
  0x1e   :  { %3081 = vmatprep.subr.bf16.mxu0 %v4574_v0  ;;  %3191 = vmatprep.subr.bf16.mxu1 %v4574_v0 }
  0x20   :  { %2872 = vmatmul.mubr.msk.bf16.gmra.mxu0 %vm233_vm3, %v3307_v12  ;;  %2982 = vmatmul.mubr.msk.bf16.gmra.mxu1 %vm233_vm3, %v3308_v13 }
  0x21   :  { %2875 = vmatprep.mubr.msk.bf16.mxu0 %vm3409_vm2, %v4574_v0  ;;  %2985 = vmatprep.mubr.msk.bf16.mxu1 %vm3409_vm2, %v4574_v0 }
  0x22   :  { %3082 = vmatpush3.bf16.msra.mxu0 %v3302_v7  ;;  %3192 = vmatpush3.bf16.msra.mxu1 %v3302_v7 }
  0x23   :  { %3083 = vmatprep.subr.bf16.mxu0 %v4574_v0  ;;  %3193 = vmatprep.subr.bf16.mxu1 %v4574_v0 }
  0x26   :  { %3084 = vmatpush3.bf16.msra.mxu0 %v3303_v8  ;;  %3194 = vmatpush3.bf16.msra.mxu1 %v3303_v8  ;;  %v3355_v8 = vld [vmem:[%s4571_s0 + $0x188] sm:$0xff]  }
  0x27   :  { %3085 = vmatprep.subr.bf16.mxu0 %v4574_v0  ;;  %3195 = vmatprep.subr.bf16.mxu1 %v4574_v0 }
  0x28   :  { %2876 = vmatmul.mubr.msk.bf16.gmra.mxu0 %vm233_vm3, %v3309_v14  ;;  %2986 = vmatmul.mubr.msk.bf16.gmra.mxu1 %vm233_vm3, %v3310_v15 }
  0x29   :  { %2879 = vmatprep.mubr.msk.bf16.mxu0 %vm3409_vm2, %v4574_v0  ;;  %2989 = vmatprep.mubr.msk.bf16.mxu1 %vm3409_vm2, %v4574_v0 }
  0x2a   :  { %3086 = vmatpush3.bf16.msra.mxu0 %v3304_v9  ;;  %3196 = vmatpush3.bf16.msra.mxu1 %v3304_v9  ;;  %v3356_v9 = vld [vmem:[%s4571_s0 + $0x24c] sm:$0xff]  }
  0x30   :  { %2880 = vmatmul.mubr.msk.bf16.gmra.mxu0 %vm233_vm3, %v3311_v16  ;;  %2990 = vmatmul.mubr.msk.bf16.gmra.mxu1 %vm233_vm3, %v3312_v17 }
  0x31   :  { %2883 = vmatprep.mubr.msk.bf16.mxu0 %vm3409_vm2, %v4574_v0  ;;  %2993 = vmatprep.mubr.msk.bf16.mxu1 %vm3409_vm2, %v4574_v0 }
  0x38   :  { %2884 = vmatmul.mubr.msk.bf16.gmra.mxu0 %vm233_vm3, %v3313_v18  ;;  %2994 = vmatmul.mubr.msk.bf16.gmra.mxu1 %vm233_vm3, %v3314_v19 }
  0x39   :  { %2887 = vmatprep.mubr.msk.bf16.mxu0 %vm3409_vm2, %v4574_v0  ;;  %2997 = vmatprep.mubr.msk.bf16.mxu1 %vm3409_vm2, %v4574_v0 }
  0x40   :  { %2888 = vmatmul.mubr.msk.bf16.gmra.mxu0 %vm233_vm3, %v3315_v20  ;;  %2998 = vmatmul.mubr.msk.bf16.gmra.mxu1 %vm233_vm3, %v3316_v21 }
  0x41   :  { %2891 = vmatprep.mubr.msk.bf16.mxu0 %vm3409_vm2, %v4574_v0  ;;  %3001 = vmatprep.mubr.msk.bf16.mxu1 %vm3409_vm2, %v4574_v0 }
  0x48   :  { %2892 = vmatmul.mubr.msk.bf16.gmra.mxu0 %vm233_vm3, %v3317_v22  ;;  %3002 = vmatmul.mubr.msk.bf16.gmra.mxu1 %vm233_vm3, %v3318_v23 }
  0x49   :  { %2895 = vmatprep.mubr.msk.bf16.mxu0 %vm3409_vm2, %v4574_v0  ;;  %3005 = vmatprep.mubr.msk.bf16.mxu1 %vm3409_vm2, %v4574_v0 }
  0x50   :  { %2896 = vmatmul.mubr.msk.bf16.gmra.mxu0 %vm233_vm3, %v3319_v24  ;;  %3006 = vmatmul.mubr.msk.bf16.gmra.mxu1 %vm233_vm3, %v3320_v25 }
  0x51   :  { %2899 = vmatprep.mubr.msk.bf16.mxu0 %vm3409_vm2, %v4574_v0  ;;  %3009 = vmatprep.mubr.msk.bf16.mxu1 %vm3409_vm2, %v4574_v0 }
  0x58   :  { %2900 = vmatmul.mubr.msk.bf16.gmra.mxu0 %vm233_vm3, %v3321_v26  ;;  %3010 = vmatmul.mubr.msk.bf16.gmra.mxu1 %vm233_vm3, %v3322_v27 }
  0x59   :  { %2903 = vmatprep.mubr.msk.bf16.mxu0 %vm3409_vm2, %v4574_v0  ;;  %3013 = vmatprep.mubr.msk.bf16.mxu1 %vm3409_vm2, %v4574_v0 }
  0x60   :  { %2904 = vmatmul.mubr.msk.bf16.gmra.mxu0 %vm233_vm3, %v3323_v28  ;;  %3014 = vmatmul.mubr.msk.bf16.gmra.mxu1 %vm233_vm3, %v3324_v29  ;;  %v3357_v28 = vld [vmem:[%s4571_s0 + $0x190] sm:$0xff]  }
  0x61   :  { %2907 = vmatprep.mubr.msk.bf16.mxu0 %vm3409_vm2, %v4574_v0  ;;  %3017 = vmatprep.mubr.msk.bf16.mxu1 %vm3409_vm2, %v4574_v0  ;;  %v3358_v29 = vld [vmem:[%s4571_s0 + $0x254] sm:$0xff]  }
  0x68   :  { %2908 = vmatmul.mubr.msk.bf16.gmra.mxu0 %vm233_vm3, %v3325_v30  ;;  %3018 = vmatmul.mubr.msk.bf16.gmra.mxu1 %vm233_vm3, %v3326_v31 }
  0x69   :  { %2911 = vmatprep.mubr.msk.bf16.mxu0 %vm3409_vm2, %v4574_v0  ;;  %3021 = vmatprep.mubr.msk.bf16.mxu1 %vm3409_vm2, %v4574_v0 }
  0x70   :  { %2912 = vmatmul.mubr.msk.bf16.gmra.mxu0 %vm233_vm3, %v3327_v32  ;;  %3022 = vmatmul.mubr.msk.bf16.gmra.mxu1 %vm233_vm3, %v3328_v33 }
  0x71   :  { %2915 = vmatprep.mubr.msk.bf16.mxu0 %vm3409_vm2, %v4574_v0  ;;  %3025 = vmatprep.mubr.msk.bf16.mxu1 %vm3409_vm2, %v4574_v0 }
  0x78   :  { %2916 = vmatmul.mubr.msk.bf16.gmra.mxu0 %vm233_vm3, %v3329_v34  ;;  %3026 = vmatmul.mubr.msk.bf16.gmra.mxu1 %vm233_vm3, %v3330_v35 }
  0x79   :  { %2919 = vmatprep.mubr.msk.bf16.mxu0 %vm3409_vm2, %v4574_v0  ;;  %3029 = vmatprep.mubr.msk.bf16.mxu1 %vm3409_vm2, %v4574_v0 }
  0x80   :  { %2920 = vmatmul.mubr.msk.bf16.gmra.mxu0 %vm233_vm3, %v3331_v36  ;;  %3030 = vmatmul.mubr.msk.bf16.gmra.mxu1 %vm233_vm3, %v3332_v37 }
  0x81   :  { %2923 = vmatprep.mubr.msk.bf16.mxu0 %vm3409_vm2, %v4574_v0  ;;  %3033 = vmatprep.mubr.msk.bf16.mxu1 %vm3409_vm2, %v4574_v0 }
  0x88   :  { %2924 = vmatmul.mubr.msk.bf16.gmra.mxu0 %vm233_vm3, %v3333_v38  ;;  %3034 = vmatmul.mubr.msk.bf16.gmra.mxu1 %vm233_vm3, %v3334_v39 }
  0x89   :  { %2927 = vmatprep.mubr.msk.bf16.mxu0 %vm3409_vm2, %v4574_v0  ;;  %3037 = vmatprep.mubr.msk.bf16.mxu1 %vm3409_vm2, %v4574_v0 }
  0x90   :  { %2928 = vmatmul.mubr.msk.bf16.gmra.mxu0 %vm233_vm3, %v3335_v40  ;;  %3038 = vmatmul.mubr.msk.bf16.gmra.mxu1 %vm233_vm3, %v3336_v41 }
  0x91   :  { %2931 = vmatprep.mubr.msk.bf16.mxu0 %vm3409_vm2, %v4574_v0  ;;  %3041 = vmatprep.mubr.msk.bf16.mxu1 %vm3409_vm2, %v4574_v0 }
  0x98   :  { %2932 = vmatmul.mubr.msk.bf16.gmra.mxu0 %vm233_vm3, %v3337_v42  ;;  %3042 = vmatmul.mubr.msk.bf16.gmra.mxu1 %vm233_vm3, %v3338_v43 }
  0x99   :  { %2935 = vmatprep.mubr.msk.bf16.mxu0 %vm3409_vm2, %v4574_v0  ;;  %3045 = vmatprep.mubr.msk.bf16.mxu1 %vm3409_vm2, %v4574_v0 }
  0xa0   :  { %2936 = vmatmul.mubr.msk.bf16.gmra.mxu0 %vm233_vm3, %v3339_v44  ;;  %3046 = vmatmul.mubr.msk.bf16.gmra.mxu1 %vm233_vm3, %v3340_v45 }
  0xa1   :  { %2939 = vmatprep.mubr.msk.bf16.mxu0 %vm3409_vm2, %v4574_v0  ;;  %3049 = vmatprep.mubr.msk.bf16.mxu1 %vm3409_vm2, %v4574_v0 }
  0xa8   :  { %2940 = vmatmul.mubr.msk.bf16.gmra.mxu0 %vm233_vm3, %v3341_v46  ;;  %3050 = vmatmul.mubr.msk.bf16.gmra.mxu1 %vm233_vm3, %v3342_v47 }
  0xa9   :  { %2943 = vmatprep.mubr.msk.bf16.mxu0 %vm3409_vm2, %v4574_v0  ;;  %3053 = vmatprep.mubr.msk.bf16.mxu1 %vm3409_vm2, %v4574_v0 }
  0xb0   :  { %2944 = vmatmul.mubr.msk.bf16.gmra.mxu0 %vm233_vm3, %v3343_v48  ;;  %3054 = vmatmul.mubr.msk.bf16.gmra.mxu1 %vm233_vm3, %v3344_v49  ;;  %v3359_v48 = vld [vmem:[%s4571_s0 + $0x198] sm:$0xff]  }
  0xb1   :  { %2947 = vmatprep.mubr.msk.bf16.mxu0 %vm3409_vm2, %v4574_v0  ;;  %3057 = vmatprep.mubr.msk.bf16.mxu1 %vm3409_vm2, %v4574_v0  ;;  %v3360_v49 = vld [vmem:[%s4571_s0 + $0x25c] sm:$0xff]  }
  0xb8   :  { %2948 = vmatmul.mubr.msk.bf16.gmra.mxu0 %vm233_vm3, %v3345_v50  ;;  %3058 = vmatmul.mubr.msk.bf16.gmra.mxu1 %vm233_vm3, %v3346_v51 }
  0xb9   :  { %2951 = vmatprep.mubr.msk.bf16.mxu0 %vm3409_vm2, %v4574_v0  ;;  %3061 = vmatprep.mubr.msk.bf16.mxu1 %vm3409_vm2, %v4574_v0 }
  0xc0   :  { %2952 = vmatmul.mubr.msk.bf16.gmra.mxu0 %vm233_vm3, %v3347_v52  ;;  %3062 = vmatmul.mubr.msk.bf16.gmra.mxu1 %vm233_vm3, %v3348_v53 }
  0xc1   :  { %2955 = vmatprep.mubr.msk.bf16.mxu0 %vm3409_vm2, %v4574_v0  ;;  %3065 = vmatprep.mubr.msk.bf16.mxu1 %vm3409_vm2, %v4574_v0 }
  0xc8   :  { %2956 = vmatmul.mubr.msk.bf16.gmra.mxu0 %vm233_vm3, %v3349_v54  ;;  %3066 = vmatmul.mubr.msk.bf16.gmra.mxu1 %vm233_vm3, %v3350_v55 }
  0xc9   :  { %2959 = vmatprep.mubr.msk.bf16.mxu0 %vm3409_vm2, %v4574_v0  ;;  %3069 = vmatprep.mubr.msk.bf16.mxu1 %vm3409_vm2, %v4574_v0 }
  0xd0   :  { %2960 = vmatmul.mubr.msk.bf16.gmra.mxu0 %vm233_vm3, %v3351_v56  ;;  %3070 = vmatmul.mubr.msk.bf16.gmra.mxu1 %vm233_vm3, %v3352_v57 }
  0xd1   :  { %2963 = vmatprep.mubr.msk.bf16.mxu0 %vm3409_vm2, %v4574_v0  ;;  %3073 = vmatprep.mubr.msk.bf16.mxu1 %vm3409_vm2, %v4574_v0 }
  0xd8   :  { %v350_v61 = vpop.f32.mrf.mxu0  ;;  %2964 = vmatmul.mubr.msk.bf16.gmra.mxu0 %vm233_vm3, %v3353_v58  ;;  %v879_v62 = vpop.f32.mrf.mxu1  ;;  %3074 = vmatmul.mubr.msk.bf16.gmra.mxu1 %vm233_vm3, %v3354_v59 }
  0xd9   :  { %v351_v63 = vadd.f32 %v3766_v60, %v350_v61  ;;  %v880_v1 = vadd.f32 %v3766_v60, %v879_v62  ;;  %3087 = vmatprep.mubr.msk.bf16.mxu0 %vm3409_vm2, %v4574_v0  ;;  %3197 = vmatprep.mubr.msk.bf16.mxu1 %vm3409_vm2, %v4574_v0 }
  0xda   :  { %v2869_v2 = vpop.f32.mrf.mxu0  ;;  %v2979_v3 = vpop.f32.mrf.mxu1 }
  0xdb   :  { %v548_v4 = vmax.f32 %v351_v63, 0.0  ;;  %v1077_v5 = vmax.f32 %v880_v1, 0.0 }
  0xdc   :  { %v353_v6 = vpop.f32.mrf.mxu0  ;;  %v882_v7 = vpop.f32.mrf.mxu1 }
  0xdd   :  { %v3782_v10 = vmax.f32 %v548_v4, %v1077_v5  ;;  %v354_v11 = vadd.f32 %v3766_v60, %v353_v6  ;;  %v883_v12 = vadd.f32 %v3766_v60, %v882_v7  ;;  %v3361_v6 = vld [vmem:[%s4571_s0 + $0x1a0] sm:$0xff]  }
  0xde   :  { %v2870_v13 = vpop.f32.mrf.mxu0  ;;  %v2980_v14 = vpop.f32.mrf.mxu1  ;;  %v3362_v7 = vld [vmem:[%s4571_s0 + $0x264] sm:$0xff]  }
  0xdf   :  { %v549_v15 = vmax.f32 %v354_v11, 0.0  ;;  %v1078_v16 = vmax.f32 %v883_v12, 0.0 }
  0xe0   :  { %v358_v17 = vpop.f32.mrf.mxu0  ;;  %v887_v18 = vpop.f32.mrf.mxu1  ;;  %3088 = vmatmul.mubr.msk.bf16.vlgmr.msra.gmra.mxu0 %vm233_vm3, %v3355_v8  ;;  %3198 = vmatmul.mubr.msk.bf16.vlgmr.msra.gmra.mxu1 %vm233_vm3, %v3356_v9 }
  0xe1   :  { %v3788_v19 = vmax.f32 %v549_v15, %v1078_v16  ;;  %v359_v20 = vadd.f32 %v3766_v60, %v358_v17  ;;  %v888_v21 = vadd.f32 %v3766_v60, %v887_v18  ;;  %3091 = vmatprep.mubr.msk.bf16.mxu0 %vm3409_vm2, %v4574_v0  ;;  %3201 = vmatprep.mubr.msk.bf16.mxu1 %vm3409_vm2, %v4574_v0 }
  0xe2   :  { %v2873_v22 = vpop.f32.mrf.mxu0  ;;  %v2983_v23 = vpop.f32.mrf.mxu1 }
  0xe3   :  { %v550_v24 = vmax.f32 %v359_v20, 0.0  ;;  %v1079_v25 = vmax.f32 %v888_v21, 0.0 }
  0xe4   :  { %v361_v26 = vpop.f32.mrf.mxu0  ;;  %v890_v27 = vpop.f32.mrf.mxu1 }
  0xe5   :  { %v3802_v30 = vmax.f32 %v550_v24, %v1079_v25  ;;  %v362_v31 = vadd.f32 %v3766_v60, %v361_v26  ;;  %v891_v32 = vadd.f32 %v3766_v60, %v890_v27 }
  0xe6   :  { %v2874_v33 = vpop.f32.mrf.mxu0  ;;  %v2984_v34 = vpop.f32.mrf.mxu1 }
  0xe7   :  { %v551_v35 = vmax.f32 %v362_v31, 0.0  ;;  %v1080_v36 = vmax.f32 %v891_v32, 0.0 }
  0xe8   :  { %v366_v37 = vpop.f32.mrf.mxu0  ;;  %v895_v38 = vpop.f32.mrf.mxu1  ;;  %3092 = vmatmul.mubr.msk.bf16.gmra.mxu0 %vm233_vm3, %v3357_v28  ;;  %3202 = vmatmul.mubr.msk.bf16.gmra.mxu1 %vm233_vm3, %v3358_v29  ;;  %v3363_v28 = vld [vmem:[%s4571_s0 + $0x1a8] sm:$0xff]  }
  0xe9   :  { %v3808_v39 = vmax.f32 %v551_v35, %v1080_v36  ;;  %v367_v40 = vadd.f32 %v3766_v60, %v366_v37  ;;  %v896_v41 = vadd.f32 %v3766_v60, %v895_v38  ;;  %3095 = vmatprep.mubr.msk.bf16.mxu0 %vm3409_vm2, %v4574_v0  ;;  %3205 = vmatprep.mubr.msk.bf16.mxu1 %vm3409_vm2, %v4574_v0  ;;  %v3364_v29 = vld [vmem:[%s4571_s0 + $0x26c] sm:$0xff]  }
  0xea   :  { %v2877_v42 = vpop.f32.mrf.mxu0  ;;  %v2987_v43 = vpop.f32.mrf.mxu1 }
  0xeb   :  { %v552_v44 = vmax.f32 %v367_v40, 0.0  ;;  %v1081_v45 = vmax.f32 %v896_v41, 0.0 }
  0xec   :  { %v369_v46 = vpop.f32.mrf.mxu0  ;;  %v898_v47 = vpop.f32.mrf.mxu1 }
  0xed   :  { %v3822_v50 = vmax.f32 %v552_v44, %v1081_v45  ;;  %v370_v51 = vadd.f32 %v3766_v60, %v369_v46  ;;  %v899_v52 = vadd.f32 %v3766_v60, %v898_v47 }
  0xee   :  { %v2878_v53 = vpop.f32.mrf.mxu0  ;;  %v2988_v54 = vpop.f32.mrf.mxu1 }
  0xef   :  { %v553_v55 = vmax.f32 %v370_v51, 0.0  ;;  %v1082_v56 = vmax.f32 %v899_v52, 0.0  ;;  %v3365_v51 = vld [vmem:[%s4571_s0 + $0x1b0] sm:$0xff]  }
  0xf0   :  { %v374_v57 = vpop.f32.mrf.mxu0  ;;  %v903_v58 = vpop.f32.mrf.mxu1  ;;  %3096 = vmatmul.mubr.msk.bf16.gmra.mxu0 %vm233_vm3, %v3359_v48  ;;  %3206 = vmatmul.mubr.msk.bf16.gmra.mxu1 %vm233_vm3, %v3360_v49  ;;  %v3366_v52 = vld [vmem:[%s4571_s0 + $0x274] sm:$0xff]  }
  0xf1   :  { %v3828_v59 = vmax.f32 %v553_v55, %v1082_v56  ;;  %v375_v61 = vadd.f32 %v3766_v60, %v374_v57  ;;  %v904_v62 = vadd.f32 %v3766_v60, %v903_v58  ;;  %3099 = vmatprep.mubr.msk.bf16.mxu0 %vm3409_vm2, %v4574_v0  ;;  %3209 = vmatprep.mubr.msk.bf16.mxu1 %vm3409_vm2, %v4574_v0 }
  0xf2   :  { %v2881_v63 = vpop.f32.mrf.mxu0  ;;  %v2991_v1 = vpop.f32.mrf.mxu1 }
  0xf3   :  { %v554_v2 = vmax.f32 %v375_v61, 0.0  ;;  %v1083_v3 = vmax.f32 %v904_v62, 0.0 }
  0xf4   :  { %v377_v4 = vpop.f32.mrf.mxu0  ;;  %v906_v5 = vpop.f32.mrf.mxu1 }
  0xf5   :  { %v3842_v8 = vmax.f32 %v554_v2, %v1083_v3  ;;  %v378_v9 = vadd.f32 %v3766_v60, %v377_v4  ;;  %v907_v11 = vadd.f32 %v3766_v60, %v906_v5 }
  0xf6   :  { %v2882_v12 = vpop.f32.mrf.mxu0  ;;  %v2992_v13 = vpop.f32.mrf.mxu1 }
  0xf7   :  { %v555_v14 = vmax.f32 %v378_v9, 0.0  ;;  %v1084_v15 = vmax.f32 %v907_v11, 0.0  ;;  %v3367_v12 = vld [vmem:[%s4571_s0 + $0x1b8] sm:$0xff]  }
  0xf8   :  { %v382_v16 = vpop.f32.mrf.mxu0  ;;  %v911_v17 = vpop.f32.mrf.mxu1  ;;  %3100 = vmatmul.mubr.msk.bf16.gmra.mxu0 %vm233_vm3, %v3361_v6  ;;  %3210 = vmatmul.mubr.msk.bf16.gmra.mxu1 %vm233_vm3, %v3362_v7  ;;  %v3368_v13 = vld [vmem:[%s4571_s0 + $0x27c] sm:$0xff]  }
  0xf9   :  { %v3848_v18 = vmax.f32 %v555_v14, %v1084_v15  ;;  %v383_v20 = vadd.f32 %v3766_v60, %v382_v16  ;;  %v912_v21 = vadd.f32 %v3766_v60, %v911_v17  ;;  %3103 = vmatprep.mubr.msk.bf16.mxu0 %vm3409_vm2, %v4574_v0  ;;  %3213 = vmatprep.mubr.msk.bf16.mxu1 %vm3409_vm2, %v4574_v0 }
  0xfa   :  { %v2885_v22 = vpop.f32.mrf.mxu0  ;;  %v2995_v23 = vpop.f32.mrf.mxu1 }
  0xfb   :  { %v556_v24 = vmax.f32 %v383_v20, 0.0  ;;  %v1085_v25 = vmax.f32 %v912_v21, 0.0 }
  0xfc   :  { %v385_v26 = vpop.f32.mrf.mxu0  ;;  %v914_v27 = vpop.f32.mrf.mxu1 }
  0xfd   :  { %v3862_v31 = vmax.f32 %v556_v24, %v1085_v25  ;;  %v386_v32 = vadd.f32 %v3766_v60, %v385_v26  ;;  %v915_v33 = vadd.f32 %v3766_v60, %v914_v27 }
  0xfe   :  { %v2886_v34 = vpop.f32.mrf.mxu0  ;;  %v2996_v35 = vpop.f32.mrf.mxu1 }
  0xff   :  { %v557_v36 = vmax.f32 %v386_v32, 0.0  ;;  %v1086_v37 = vmax.f32 %v915_v33, 0.0 }
 0x100   :  { %v390_v38 = vpop.f32.mrf.mxu0  ;;  %v919_v40 = vpop.f32.mrf.mxu1  ;;  %3104 = vmatmul.mubr.msk.bf16.gmra.mxu0 %vm233_vm3, %v3363_v28  ;;  %3214 = vmatmul.mubr.msk.bf16.gmra.mxu1 %vm233_vm3, %v3364_v29 }
 0x101   :  { %v3868_v41 = vmax.f32 %v557_v36, %v1086_v37  ;;  %v391_v42 = vadd.f32 %v3766_v60, %v390_v38  ;;  %v920_v43 = vadd.f32 %v3766_v60, %v919_v40  ;;  %3107 = vmatprep.mubr.msk.bf16.mxu0 %vm3409_vm2, %v4574_v0  ;;  %3217 = vmatprep.mubr.msk.bf16.mxu1 %vm3409_vm2, %v4574_v0  ;;  %v3369_v36 = vld [vmem:[%s4571_s0 + $0x1c0] sm:$0xff]  }
 0x102   :  { %v2889_v44 = vpop.f32.mrf.mxu0  ;;  %v2999_v45 = vpop.f32.mrf.mxu1  ;;  %v3370_v37 = vld [vmem:[%s4571_s0 + $0x284] sm:$0xff]  }
 0x103   :  { %v558_v46 = vmax.f32 %v391_v42, 0.0  ;;  %v1087_v47 = vmax.f32 %v920_v43, 0.0 }
 0x104   :  { %v393_v48 = vpop.f32.mrf.mxu0  ;;  %v922_v49 = vpop.f32.mrf.mxu1 }
 0x105   :  { %v3882_v53 = vmax.f32 %v558_v46, %v1087_v47  ;;  %v394_v54 = vadd.f32 %v3766_v60, %v393_v48  ;;  %v923_v55 = vadd.f32 %v3766_v60, %v922_v49 }
 0x106   :  { %v2890_v56 = vpop.f32.mrf.mxu0  ;;  %v3000_v57 = vpop.f32.mrf.mxu1 }
 0x107   :  { %v559_v58 = vmax.f32 %v394_v54, 0.0  ;;  %v1088_v61 = vmax.f32 %v923_v55, 0.0 }
 0x108   :  { %v398_v62 = vpop.f32.mrf.mxu0  ;;  %v927_v63 = vpop.f32.mrf.mxu1  ;;  %3108 = vmatmul.mubr.msk.bf16.gmra.mxu0 %vm233_vm3, %v3365_v51  ;;  %3218 = vmatmul.mubr.msk.bf16.gmra.mxu1 %vm233_vm3, %v3366_v52 }
 0x109   :  { %v3888_v1 = vmax.f32 %v559_v58, %v1088_v61  ;;  %v399_v2 = vadd.f32 %v3766_v60, %v398_v62  ;;  %v928_v3 = vadd.f32 %v3766_v60, %v927_v63  ;;  %3111 = vmatprep.mubr.msk.bf16.mxu0 %vm3409_vm2, %v4574_v0  ;;  %3221 = vmatprep.mubr.msk.bf16.mxu1 %vm3409_vm2, %v4574_v0  ;;  %v3371_v62 = vld [vmem:[%s4571_s0 + $0x1c8] sm:$0xff]  }
 0x10a   :  { %v2893_v4 = vpop.f32.mrf.mxu0  ;;  %v3003_v5 = vpop.f32.mrf.mxu1  ;;  %v3372_v63 = vld [vmem:[%s4571_s0 + $0x28c] sm:$0xff]  }
 0x10b   :  { %v560_v6 = vmax.f32 %v399_v2, 0.0  ;;  %v1089_v7 = vmax.f32 %v928_v3, 0.0 }
 0x10c   :  { %v401_v9 = vpop.f32.mrf.mxu0  ;;  %v930_v11 = vpop.f32.mrf.mxu1 }
 0x10d   :  { %v3902_v14 = vmax.f32 %v560_v6, %v1089_v7  ;;  %v402_v15 = vadd.f32 %v3766_v60, %v401_v9  ;;  %v931_v16 = vadd.f32 %v3766_v60, %v930_v11 }
 0x10e   :  { %v2894_v17 = vpop.f32.mrf.mxu0  ;;  %v3004_v20 = vpop.f32.mrf.mxu1 }
 0x10f   :  { %v561_v21 = vmax.f32 %v402_v15, 0.0  ;;  %v1090_v22 = vmax.f32 %v931_v16, 0.0 }
 0x110   :  { %v406_v23 = vpop.f32.mrf.mxu0  ;;  %v935_v24 = vpop.f32.mrf.mxu1  ;;  %3112 = vmatmul.mubr.msk.bf16.gmra.mxu0 %vm233_vm3, %v3367_v12  ;;  %3222 = vmatmul.mubr.msk.bf16.gmra.mxu1 %vm233_vm3, %v3368_v13 }
 0x111   :  { %v3908_v25 = vmax.f32 %v561_v21, %v1090_v22  ;;  %v407_v26 = vadd.f32 %v3766_v60, %v406_v23  ;;  %v936_v27 = vadd.f32 %v3766_v60, %v935_v24  ;;  %3115 = vmatprep.mubr.msk.bf16.mxu0 %vm3409_vm2, %v4574_v0  ;;  %3225 = vmatprep.mubr.msk.bf16.mxu1 %vm3409_vm2, %v4574_v0 }
 0x112   :  { %v2897_v28 = vpop.f32.mrf.mxu0  ;;  %v3007_v29 = vpop.f32.mrf.mxu1 }
 0x113   :  { %v562_v32 = vmax.f32 %v407_v26, 0.0  ;;  %v1091_v33 = vmax.f32 %v936_v27, 0.0  ;;  %v3373_v26 = vld [vmem:[%s4571_s0 + $0x1d0] sm:$0xff]  }
 0x114   :  { %v409_v34 = vpop.f32.mrf.mxu0  ;;  %v938_v35 = vpop.f32.mrf.mxu1  ;;  %v3374_v27 = vld [vmem:[%s4571_s0 + $0x294] sm:$0xff]  }
 0x115   :  { %v3922_v38 = vmax.f32 %v562_v32, %v1091_v33  ;;  %v410_v40 = vadd.f32 %v3766_v60, %v409_v34  ;;  %v939_v42 = vadd.f32 %v3766_v60, %v938_v35 }
 0x116   :  { %v2898_v43 = vpop.f32.mrf.mxu0  ;;  %v3008_v44 = vpop.f32.mrf.mxu1 }
 0x117   :  { %v563_v45 = vmax.f32 %v410_v40, 0.0  ;;  %v1092_v46 = vmax.f32 %v939_v42, 0.0 }
 0x118   :  { %v414_v47 = vpop.f32.mrf.mxu0  ;;  %v943_v48 = vpop.f32.mrf.mxu1  ;;  %3116 = vmatmul.mubr.msk.bf16.gmra.mxu0 %vm233_vm3, %v3369_v36  ;;  %3226 = vmatmul.mubr.msk.bf16.gmra.mxu1 %vm233_vm3, %v3370_v37 }
 0x119   :  { %v3928_v49 = vmax.f32 %v563_v45, %v1092_v46  ;;  %v415_v51 = vadd.f32 %v3766_v60, %v414_v47  ;;  %v944_v52 = vadd.f32 %v3766_v60, %v943_v48  ;;  %3119 = vmatprep.mubr.msk.bf16.mxu0 %vm3409_vm2, %v4574_v0  ;;  %3229 = vmatprep.mubr.msk.bf16.mxu1 %vm3409_vm2, %v4574_v0 }
 0x11a   :  { %v2901_v54 = vpop.f32.mrf.mxu0  ;;  %v3011_v55 = vpop.f32.mrf.mxu1 }
 0x11b   :  { %v564_v56 = vmax.f32 %v415_v51, 0.0  ;;  %v1093_v57 = vmax.f32 %v944_v52, 0.0  ;;  %v3375_v54 = vld [vmem:[%s4571_s0 + $0x1d8] sm:$0xff]  }
 0x11c   :  { %v417_v58 = vpop.f32.mrf.mxu0  ;;  %v946_v61 = vpop.f32.mrf.mxu1  ;;  %v3376_v55 = vld [vmem:[%s4571_s0 + $0x29c] sm:$0xff]  }
 0x11d   :  { %v3942_v2 = vmax.f32 %v564_v56, %v1093_v57  ;;  %v418_v3 = vadd.f32 %v3766_v60, %v417_v58  ;;  %v947_v4 = vadd.f32 %v3766_v60, %v946_v61 }
 0x11e   :  { %v2902_v5 = vpop.f32.mrf.mxu0  ;;  %v3012_v6 = vpop.f32.mrf.mxu1 }
 0x11f   :  { %v565_v7 = vmax.f32 %v418_v3, 0.0  ;;  %v1094_v9 = vmax.f32 %v947_v4, 0.0 }
 0x120   :  { %v422_v11 = vpop.f32.mrf.mxu0  ;;  %v951_v12 = vpop.f32.mrf.mxu1  ;;  %3120 = vmatmul.mubr.msk.bf16.gmra.mxu0 %vm233_vm3, %v3371_v62  ;;  %3230 = vmatmul.mubr.msk.bf16.gmra.mxu1 %vm233_vm3, %v3372_v63 }
 0x121   :  { %v3948_v13 = vmax.f32 %v565_v7, %v1094_v9  ;;  %v423_v15 = vadd.f32 %v3766_v60, %v422_v11  ;;  %v952_v16 = vadd.f32 %v3766_v60, %v951_v12  ;;  %3123 = vmatprep.mubr.msk.bf16.mxu0 %vm3409_vm2, %v4574_v0  ;;  %3233 = vmatprep.mubr.msk.bf16.mxu1 %vm3409_vm2, %v4574_v0 }
 0x122   :  { %v2905_v17 = vpop.f32.mrf.mxu0  ;;  %v3015_v20 = vpop.f32.mrf.mxu1 }
 0x123   :  { %v566_v21 = vmax.f32 %v423_v15, 0.0  ;;  %v1095_v22 = vmax.f32 %v952_v16, 0.0 }
 0x124   :  { %v425_v23 = vpop.f32.mrf.mxu0  ;;  %v954_v24 = vpop.f32.mrf.mxu1 }
 0x125   :  { %v3962_v28 = vmax.f32 %v566_v21, %v1095_v22  ;;  %v426_v29 = vadd.f32 %v3766_v60, %v425_v23  ;;  %v955_v32 = vadd.f32 %v3766_v60, %v954_v24  ;;  %v3377_v21 = vld [vmem:[%s4571_s0 + $0x1e0] sm:$0xff]  }
 0x126   :  { %v2906_v33 = vpop.f32.mrf.mxu0  ;;  %v3016_v34 = vpop.f32.mrf.mxu1  ;;  %v3378_v22 = vld [vmem:[%s4571_s0 + $0x2a4] sm:$0xff]  }
 0x127   :  { %v567_v35 = vmax.f32 %v426_v29, 0.0  ;;  %v1096_v36 = vmax.f32 %v955_v32, 0.0 }
 0x128   :  { %v430_v37 = vpop.f32.mrf.mxu0  ;;  %v959_v40 = vpop.f32.mrf.mxu1  ;;  %3124 = vmatmul.mubr.msk.bf16.gmra.mxu0 %vm233_vm3, %v3373_v26  ;;  %3234 = vmatmul.mubr.msk.bf16.gmra.mxu1 %vm233_vm3, %v3374_v27 }
 0x129   :  { %v3968_v42 = vmax.f32 %v567_v35, %v1096_v36  ;;  %v431_v43 = vadd.f32 %v3766_v60, %v430_v37  ;;  %v960_v44 = vadd.f32 %v3766_v60, %v959_v40  ;;  %3127 = vmatprep.mubr.msk.bf16.mxu0 %vm3409_vm2, %v4574_v0  ;;  %3237 = vmatprep.mubr.msk.bf16.mxu1 %vm3409_vm2, %v4574_v0 }
 0x12a   :  { %v2909_v45 = vpop.f32.mrf.mxu0  ;;  %v3019_v46 = vpop.f32.mrf.mxu1 }
 0x12b   :  { %v568_v47 = vmax.f32 %v431_v43, 0.0  ;;  %v1097_v48 = vmax.f32 %v960_v44, 0.0 }
 0x12c   :  { %v433_v51 = vpop.f32.mrf.mxu0  ;;  %v962_v52 = vpop.f32.mrf.mxu1 }
 0x12d   :  { %v3982_v56 = vmax.f32 %v568_v47, %v1097_v48  ;;  %v434_v57 = vadd.f32 %v3766_v60, %v433_v51  ;;  %v963_v58 = vadd.f32 %v3766_v60, %v962_v52  ;;  %v3379_v51 = vld [vmem:[%s4571_s0 + $0x1e8] sm:$0xff]  }
 0x12e   :  { %v2910_v61 = vpop.f32.mrf.mxu0  ;;  %v3020_v62 = vpop.f32.mrf.mxu1  ;;  %v3380_v52 = vld [vmem:[%s4571_s0 + $0x2ac] sm:$0xff]  }
 0x12f   :  { %v569_v63 = vmax.f32 %v434_v57, 0.0  ;;  %v1098_v3 = vmax.f32 %v963_v58, 0.0 }
 0x130   :  { %v438_v4 = vpop.f32.mrf.mxu0  ;;  %v967_v5 = vpop.f32.mrf.mxu1  ;;  %3128 = vmatmul.mubr.msk.bf16.gmra.mxu0 %vm233_vm3, %v3375_v54  ;;  %3238 = vmatmul.mubr.msk.bf16.gmra.mxu1 %vm233_vm3, %v3376_v55 }
 0x131   :  { %v3988_v6 = vmax.f32 %v569_v63, %v1098_v3  ;;  %v439_v7 = vadd.f32 %v3766_v60, %v438_v4  ;;  %v968_v9 = vadd.f32 %v3766_v60, %v967_v5  ;;  %3131 = vmatprep.mubr.msk.bf16.mxu0 %vm3409_vm2, %v4574_v0  ;;  %3241 = vmatprep.mubr.msk.bf16.mxu1 %vm3409_vm2, %v4574_v0 }
 0x132   :  { %v2913_v11 = vpop.f32.mrf.mxu0  ;;  %v3023_v12 = vpop.f32.mrf.mxu1 }
 0x133   :  { %v570_v15 = vmax.f32 %v439_v7, 0.0  ;;  %v1099_v16 = vmax.f32 %v968_v9, 0.0 }
 0x134   :  { %v441_v17 = vpop.f32.mrf.mxu0  ;;  %v970_v20 = vpop.f32.mrf.mxu1 }
 0x135   :  { %v4002_v23 = vmax.f32 %v570_v15, %v1099_v16  ;;  %v442_v24 = vadd.f32 %v3766_v60, %v441_v17  ;;  %v971_v26 = vadd.f32 %v3766_v60, %v970_v20 }
 0x136   :  { %v2914_v27 = vpop.f32.mrf.mxu0  ;;  %v3024_v29 = vpop.f32.mrf.mxu1 }
 0x137   :  { %v571_v32 = vmax.f32 %v442_v24, 0.0  ;;  %v1100_v33 = vmax.f32 %v971_v26, 0.0 }
 0x138   :  { %v446_v34 = vpop.f32.mrf.mxu0  ;;  %v975_v35 = vpop.f32.mrf.mxu1  ;;  %3132 = vmatmul.mubr.msk.bf16.gmra.mxu0 %vm233_vm3, %v3377_v21  ;;  %3242 = vmatmul.mubr.msk.bf16.gmra.mxu1 %vm233_vm3, %v3378_v22  ;;  %v3381_v21 = vld [vmem:[%s4571_s0 + $0x1f0] sm:$0xff]  }
 0x139   :  { %v4008_v36 = vmax.f32 %v571_v32, %v1100_v33  ;;  %v447_v37 = vadd.f32 %v3766_v60, %v446_v34  ;;  %v976_v40 = vadd.f32 %v3766_v60, %v975_v35  ;;  %3135 = vmatprep.mubr.msk.bf16.mxu0 %vm3409_vm2, %v4574_v0  ;;  %3245 = vmatprep.mubr.msk.bf16.mxu1 %vm3409_vm2, %v4574_v0  ;;  %v3382_v22 = vld [vmem:[%s4571_s0 + $0x2b4] sm:$0xff]  }
 0x13a   :  { %v2917_v43 = vpop.f32.mrf.mxu0  ;;  %v3027_v44 = vpop.f32.mrf.mxu1 }
 0x13b   :  { %v572_v45 = vmax.f32 %v447_v37, 0.0  ;;  %v1101_v46 = vmax.f32 %v976_v40, 0.0 }
 0x13c   :  { %v449_v47 = vpop.f32.mrf.mxu0  ;;  %v978_v48 = vpop.f32.mrf.mxu1 }
 0x13d   :  { %v4022_v54 = vmax.f32 %v572_v45, %v1101_v46  ;;  %v450_v55 = vadd.f32 %v3766_v60, %v449_v47  ;;  %v979_v57 = vadd.f32 %v3766_v60, %v978_v48 }
 0x13e   :  { %v2918_v58 = vpop.f32.mrf.mxu0  ;;  %v3028_v61 = vpop.f32.mrf.mxu1 }
 0x13f   :  { %v573_v62 = vmax.f32 %v450_v55, 0.0  ;;  %v1102_v63 = vmax.f32 %v979_v57, 0.0  ;;  %v3383_v55 = vld [vmem:[%s4571_s0 + $0x1f8] sm:$0xff]  }
 0x140   :  { %v454_v3 = vpop.f32.mrf.mxu0  ;;  %v983_v4 = vpop.f32.mrf.mxu1  ;;  %3136 = vmatmul.mubr.msk.bf16.gmra.mxu0 %vm233_vm3, %v3379_v51  ;;  %3246 = vmatmul.mubr.msk.bf16.gmra.mxu1 %vm233_vm3, %v3380_v52  ;;  %v3384_v57 = vld [vmem:[%s4571_s0 + $0x2bc] sm:$0xff]  }
 0x141   :  { %v4028_v5 = vmax.f32 %v573_v62, %v1102_v63  ;;  %v455_v7 = vadd.f32 %v3766_v60, %v454_v3  ;;  %v984_v9 = vadd.f32 %v3766_v60, %v983_v4  ;;  %3139 = vmatprep.mubr.msk.bf16.mxu0 %vm3409_vm2, %v4574_v0  ;;  %3249 = vmatprep.mubr.msk.bf16.mxu1 %vm3409_vm2, %v4574_v0 }
 0x142   :  { %v2921_v11 = vpop.f32.mrf.mxu0  ;;  %v3031_v12 = vpop.f32.mrf.mxu1 }
 0x143   :  { %v574_v15 = vmax.f32 %v455_v7, 0.0  ;;  %v1103_v16 = vmax.f32 %v984_v9, 0.0 }
 0x144   :  { %v457_v17 = vpop.f32.mrf.mxu0  ;;  %v986_v20 = vpop.f32.mrf.mxu1 }
 0x145   :  { %v4042_v24 = vmax.f32 %v574_v15, %v1103_v16  ;;  %v458_v26 = vadd.f32 %v3766_v60, %v457_v17  ;;  %v987_v27 = vadd.f32 %v3766_v60, %v986_v20 }
 0x146   :  { %v2922_v29 = vpop.f32.mrf.mxu0  ;;  %v3032_v32 = vpop.f32.mrf.mxu1 }
 0x147   :  { %v575_v33 = vmax.f32 %v458_v26, 0.0  ;;  %v1104_v34 = vmax.f32 %v987_v27, 0.0  ;;  %v3385_v29 = vld [vmem:[%s4571_s0 + $0x200] sm:$0xff]  }
 0x148   :  { %v462_v35 = vpop.f32.mrf.mxu0  ;;  %v991_v37 = vpop.f32.mrf.mxu1  ;;  %3140 = vmatmul.mubr.msk.bf16.gmra.mxu0 %vm233_vm3, %v3381_v21  ;;  %3250 = vmatmul.mubr.msk.bf16.gmra.mxu1 %vm233_vm3, %v3382_v22  ;;  %v3386_v32 = vld [vmem:[%s4571_s0 + $0x2c4] sm:$0xff]  }
 0x149   :  { %v4048_v40 = vmax.f32 %v575_v33, %v1104_v34  ;;  %v463_v43 = vadd.f32 %v3766_v60, %v462_v35  ;;  %v992_v44 = vadd.f32 %v3766_v60, %v991_v37  ;;  %3143 = vmatprep.mubr.msk.bf16.mxu0 %vm3409_vm2, %v4574_v0  ;;  %3253 = vmatprep.mubr.msk.bf16.mxu1 %vm3409_vm2, %v4574_v0 }
 0x14a   :  { %v2925_v45 = vpop.f32.mrf.mxu0  ;;  %v3035_v46 = vpop.f32.mrf.mxu1 }
 0x14b   :  { %v576_v47 = vmax.f32 %v463_v43, 0.0  ;;  %v1105_v48 = vmax.f32 %v992_v44, 0.0 }
 0x14c   :  { %v465_v51 = vpop.f32.mrf.mxu0  ;;  %v994_v52 = vpop.f32.mrf.mxu1 }
 0x14d   :  { %v4062_v58 = vmax.f32 %v576_v47, %v1105_v48  ;;  %v466_v61 = vadd.f32 %v3766_v60, %v465_v51  ;;  %v995_v62 = vadd.f32 %v3766_v60, %v994_v52 }
 0x14e   :  { %v2926_v63 = vpop.f32.mrf.mxu0  ;;  %v3036_v3 = vpop.f32.mrf.mxu1 }
 0x14f   :  { %v577_v4 = vmax.f32 %v466_v61, 0.0  ;;  %v1106_v7 = vmax.f32 %v995_v62, 0.0 }
 0x150   :  { %v470_v9 = vpop.f32.mrf.mxu0  ;;  %v999_v11 = vpop.f32.mrf.mxu1  ;;  %3144 = vmatmul.mubr.msk.bf16.gmra.mxu0 %vm233_vm3, %v3383_v55  ;;  %3254 = vmatmul.mubr.msk.bf16.gmra.mxu1 %vm233_vm3, %v3384_v57 }
 0x151   :  { %v4068_v12 = vmax.f32 %v577_v4, %v1106_v7  ;;  %v471_v15 = vadd.f32 %v3766_v60, %v470_v9  ;;  %v1000_v16 = vadd.f32 %v3766_v60, %v999_v11  ;;  %3147 = vmatprep.mubr.msk.bf16.mxu0 %vm3409_vm2, %v4574_v0  ;;  %3257 = vmatprep.mubr.msk.bf16.mxu1 %vm3409_vm2, %v4574_v0  ;;  %v3387_v4 = vld [vmem:[%s4571_s0 + $0x208] sm:$0xff]  }
 0x152   :  { %v2929_v17 = vpop.f32.mrf.mxu0  ;;  %v3039_v20 = vpop.f32.mrf.mxu1  ;;  %v3388_v7 = vld [vmem:[%s4571_s0 + $0x2cc] sm:$0xff]  }
 0x153   :  { %v578_v21 = vmax.f32 %v471_v15, 0.0  ;;  %v1107_v22 = vmax.f32 %v1000_v16, 0.0 }
 0x154   :  { %v473_v26 = vpop.f32.mrf.mxu0  ;;  %v1002_v27 = vpop.f32.mrf.mxu1 }
 0x155   :  { %v4082_v33 = vmax.f32 %v578_v21, %v1107_v22  ;;  %v474_v34 = vadd.f32 %v3766_v60, %v473_v26  ;;  %v1003_v35 = vadd.f32 %v3766_v60, %v1002_v27 }
 0x156   :  { %v2930_v37 = vpop.f32.mrf.mxu0  ;;  %v3040_v43 = vpop.f32.mrf.mxu1 }
 0x157   :  { %v579_v44 = vmax.f32 %v474_v34, 0.0  ;;  %v1108_v45 = vmax.f32 %v1003_v35, 0.0 }
 0x158   :  { %v478_v46 = vpop.f32.mrf.mxu0  ;;  %v1007_v47 = vpop.f32.mrf.mxu1  ;;  %3148 = vmatmul.mubr.msk.bf16.gmra.mxu0 %vm233_vm3, %v3385_v29  ;;  %3258 = vmatmul.mubr.msk.bf16.gmra.mxu1 %vm233_vm3, %v3386_v32 }
 0x159   :  { %v4088_v48 = vmax.f32 %v579_v44, %v1108_v45  ;;  %v479_v51 = vadd.f32 %v3766_v60, %v478_v46  ;;  %v1008_v52 = vadd.f32 %v3766_v60, %v1007_v47  ;;  %3151 = vmatprep.mubr.msk.bf16.mxu0 %vm3409_vm2, %v4574_v0  ;;  %3261 = vmatprep.mubr.msk.bf16.mxu1 %vm3409_vm2, %v4574_v0  ;;  %v3389_v46 = vld [vmem:[%s4571_s0 + $0x210] sm:$0xff]  }
 0x15a   :  { %v2933_v55 = vpop.f32.mrf.mxu0  ;;  %v3043_v57 = vpop.f32.mrf.mxu1  ;;  %v3390_v47 = vld [vmem:[%s4571_s0 + $0x2d4] sm:$0xff]  }
 0x15b   :  { %v580_v61 = vmax.f32 %v479_v51, 0.0  ;;  %v1109_v62 = vmax.f32 %v1008_v52, 0.0 }
 0x15c   :  { %v481_v63 = vpop.f32.mrf.mxu0  ;;  %v1010_v3 = vpop.f32.mrf.mxu1 }
 0x15d   :  { %v4102_v9 = vmax.f32 %v580_v61, %v1109_v62  ;;  %v482_v11 = vadd.f32 %v3766_v60, %v481_v63  ;;  %v1011_v15 = vadd.f32 %v3766_v60, %v1010_v3 }
 0x15e   :  { %v2934_v16 = vpop.f32.mrf.mxu0  ;;  %v3044_v17 = vpop.f32.mrf.mxu1 }
 0x15f   :  { %v581_v20 = vmax.f32 %v482_v11, 0.0  ;;  %v1110_v21 = vmax.f32 %v1011_v15, 0.0 }
 0x160   :  { %v486_v22 = vpop.f32.mrf.mxu0  ;;  %v1015_v26 = vpop.f32.mrf.mxu1  ;;  %3152 = vmatmul.mubr.msk.bf16.gmra.mxu0 %vm233_vm3, %v3387_v4  ;;  %3262 = vmatmul.mubr.msk.bf16.gmra.mxu1 %vm233_vm3, %v3388_v7 }
 0x161   :  { %v4108_v27 = vmax.f32 %v581_v20, %v1110_v21  ;;  %v487_v29 = vadd.f32 %v3766_v60, %v486_v22  ;;  %v1016_v32 = vadd.f32 %v3766_v60, %v1015_v26  ;;  %3155 = vmatprep.mubr.msk.bf16.mxu0 %vm3409_vm2, %v4574_v0  ;;  %3265 = vmatprep.mubr.msk.bf16.mxu1 %vm3409_vm2, %v4574_v0 }
 0x162   :  { %v2937_v34 = vpop.f32.mrf.mxu0  ;;  %v3047_v35 = vpop.f32.mrf.mxu1 }
 0x163   :  { %v582_v37 = vmax.f32 %v487_v29, 0.0  ;;  %v1111_v43 = vmax.f32 %v1016_v32, 0.0  ;;  %v3391_v29 = vld [vmem:[%s4571_s0 + $0x218] sm:$0xff]  }
 0x164   :  { %v489_v44 = vpop.f32.mrf.mxu0  ;;  %v1018_v45 = vpop.f32.mrf.mxu1  ;;  %v3392_v32 = vld [vmem:[%s4571_s0 + $0x2dc] sm:$0xff]  }
 0x165   :  { %v4122_v51 = vmax.f32 %v582_v37, %v1111_v43  ;;  %v490_v52 = vadd.f32 %v3766_v60, %v489_v44  ;;  %v1019_v55 = vadd.f32 %v3766_v60, %v1018_v45 }
 0x166   :  { %v2938_v57 = vpop.f32.mrf.mxu0  ;;  %v3048_v61 = vpop.f32.mrf.mxu1 }
 0x167   :  { %v583_v62 = vmax.f32 %v490_v52, 0.0  ;;  %v1112_v63 = vmax.f32 %v1019_v55, 0.0 }
 0x168   :  { %v494_v3 = vpop.f32.mrf.mxu0  ;;  %v1023_v4 = vpop.f32.mrf.mxu1  ;;  %3156 = vmatmul.mubr.msk.bf16.gmra.mxu0 %vm233_vm3, %v3389_v46  ;;  %3266 = vmatmul.mubr.msk.bf16.gmra.mxu1 %vm233_vm3, %v3390_v47 }
 0x169   :  { %v4128_v7 = vmax.f32 %v583_v62, %v1112_v63  ;;  %v495_v11 = vadd.f32 %v3766_v60, %v494_v3  ;;  %v1024_v15 = vadd.f32 %v3766_v60, %v1023_v4  ;;  %3159 = vmatprep.mubr.msk.bf16.mxu0 %vm3409_vm2, %v4574_v0  ;;  %3269 = vmatprep.mubr.msk.bf16.mxu1 %vm3409_vm2, %v4574_v0 }
 0x16a   :  { %v2941_v16 = vpop.f32.mrf.mxu0  ;;  %v3051_v17 = vpop.f32.mrf.mxu1 }
 0x16b   :  { %v584_v20 = vmax.f32 %v495_v11, 0.0  ;;  %v1113_v21 = vmax.f32 %v1024_v15, 0.0  ;;  %v3393_v16 = vld [vmem:[%s4571_s0 + $0x220] sm:$0xff]  }
 0x16c   :  { %v497_v22 = vpop.f32.mrf.mxu0  ;;  %v1026_v26 = vpop.f32.mrf.mxu1  ;;  %v3394_v17 = vld [vmem:[%s4571_s0 + $0x2e4] sm:$0xff]  }
 0x16d   :  { %v4142_v34 = vmax.f32 %v584_v20, %v1113_v21  ;;  %v498_v35 = vadd.f32 %v3766_v60, %v497_v22  ;;  %v1027_v37 = vadd.f32 %v3766_v60, %v1026_v26 }
 0x16e   :  { %v2942_v43 = vpop.f32.mrf.mxu0  ;;  %v3052_v44 = vpop.f32.mrf.mxu1 }
 0x16f   :  { %v585_v45 = vmax.f32 %v498_v35, 0.0  ;;  %v1114_v46 = vmax.f32 %v1027_v37, 0.0 }
 0x170   :  { %v502_v47 = vpop.f32.mrf.mxu0  ;;  %v1031_v52 = vpop.f32.mrf.mxu1  ;;  %3160 = vmatmul.mubr.msk.bf16.gmra.mxu0 %vm233_vm3, %v3391_v29  ;;  %3270 = vmatmul.mubr.msk.bf16.gmra.mxu1 %vm233_vm3, %v3392_v32 }
 0x171   :  { %v4148_v55 = vmax.f32 %v585_v45, %v1114_v46  ;;  %v503_v57 = vadd.f32 %v3766_v60, %v502_v47  ;;  %v1032_v61 = vadd.f32 %v3766_v60, %v1031_v52  ;;  %3163 = vmatprep.mubr.msk.bf16.mxu0 %vm3409_vm2, %v4574_v0  ;;  %3273 = vmatprep.mubr.msk.bf16.mxu1 %vm3409_vm2, %v4574_v0 }
 0x172   :  { %v2945_v62 = vpop.f32.mrf.mxu0  ;;  %v3055_v63 = vpop.f32.mrf.mxu1 }
 0x173   :  { %v586_v3 = vmax.f32 %v503_v57, 0.0  ;;  %v1115_v4 = vmax.f32 %v1032_v61, 0.0 }
 0x174   :  { %v505_v11 = vpop.f32.mrf.mxu0  ;;  %v1034_v15 = vpop.f32.mrf.mxu1 }
 0x175   :  { %v4162_v20 = vmax.f32 %v586_v3, %v1115_v4  ;;  %v506_v21 = vadd.f32 %v3766_v60, %v505_v11  ;;  %v1035_v22 = vadd.f32 %v3766_v60, %v1034_v15  ;;  %v3395_v3 = vld [vmem:[%s4571_s0 + $0x228] sm:$0xff]  }
 0x176   :  { %v2946_v26 = vpop.f32.mrf.mxu0  ;;  %v3056_v29 = vpop.f32.mrf.mxu1  ;;  %v3396_v4 = vld [vmem:[%s4571_s0 + $0x2ec] sm:$0xff]  }
 0x177   :  { %v587_v32 = vmax.f32 %v506_v21, 0.0  ;;  %v1116_v35 = vmax.f32 %v1035_v22, 0.0 }
 0x178   :  { %v510_v37 = vpop.f32.mrf.mxu0  ;;  %v1039_v43 = vpop.f32.mrf.mxu1  ;;  %3164 = vmatmul.mubr.msk.bf16.gmra.mxu0 %vm233_vm3, %v3393_v16  ;;  %3274 = vmatmul.mubr.msk.bf16.gmra.mxu1 %vm233_vm3, %v3394_v17 }
 0x179   :  { %v4168_v44 = vmax.f32 %v587_v32, %v1116_v35  ;;  %v511_v45 = vadd.f32 %v3766_v60, %v510_v37  ;;  %v1040_v46 = vadd.f32 %v3766_v60, %v1039_v43  ;;  %3167 = vmatprep.mubr.msk.bf16.mxu0 %vm3409_vm2, %v4574_v0  ;;  %3277 = vmatprep.mubr.msk.bf16.mxu1 %vm3409_vm2, %v4574_v0 }
 0x17a   :  { %v2949_v47 = vpop.f32.mrf.mxu0  ;;  %v3059_v52 = vpop.f32.mrf.mxu1 }
 0x17b   :  { %v588_v57 = vmax.f32 %v511_v45, 0.0  ;;  %v1117_v61 = vmax.f32 %v1040_v46, 0.0 }
 0x17c   :  { %v513_v62 = vpop.f32.mrf.mxu0  ;;  %v1042_v63 = vpop.f32.mrf.mxu1 }
 0x17d   :  { %v4182_v11 = vmax.f32 %v588_v57, %v1117_v61  ;;  %v514_v15 = vadd.f32 %v3766_v60, %v513_v62  ;;  %v1043_v16 = vadd.f32 %v3766_v60, %v1042_v63  ;;  %v3397_v62 = vld [vmem:[%s4571_s0 + $0x230] sm:$0xff]  }
 0x17e   :  { %v2950_v17 = vpop.f32.mrf.mxu0  ;;  %v3060_v21 = vpop.f32.mrf.mxu1 }
 0x17f   :  { %v589_v22 = vmax.f32 %v514_v15, 0.0  ;;  %v1118_v26 = vmax.f32 %v1043_v16, 0.0 }
 0x180   :  { %v518_v29 = vpop.f32.mrf.mxu0  ;;  %v1047_v32 = vpop.f32.mrf.mxu1  ;;  %3168 = vmatmul.mubr.msk.bf16.gmra.mxu0 %vm233_vm3, %v3395_v3  ;;  %3278 = vmatmul.mubr.msk.bf16.gmra.mxu1 %vm233_vm3, %v3396_v4  ;;  %v4207_v3 = vld [vmem:[%s4572_s2] ss:$0 sm:$0xff] }
 0x181   :  { %v4188_v35 = vmax.f32 %v589_v22, %v1118_v26  ;;  %v519_v37 = vadd.f32 %v3766_v60, %v518_v29  ;;  %v1048_v43 = vadd.f32 %v3766_v60, %v1047_v32  ;;  %3171 = vmatprep.mubr.msk.bf16.mxu0 %vm3409_vm2, %v4574_v0  ;;  %3281 = vmatprep.mubr.msk.bf16.mxu1 %vm3409_vm2, %v4574_v0  ;;  %v3398_v60 = vld [vmem:[%s4571_s0 + $0x2f4] sm:$0xff]  }
 0x182   :  { %v2953_v45 = vpop.f32.mrf.mxu0  ;;  %v3063_v46 = vpop.f32.mrf.mxu1 }
 0x183   :  { %v590_v47 = vmax.f32 %v519_v37, 0.0  ;;  %v1119_v52 = vmax.f32 %v1048_v43, 0.0 }
 0x184   :  { %v521_v57 = vpop.f32.mrf.mxu0  ;;  %v1050_v61 = vpop.f32.mrf.mxu1 }
 0x185   :  { %v4202_v63 = vmax.f32 %v590_v47, %v1119_v52  ;;  %v522_v4 = vadd.f32 %v4207_v3, %v521_v57  ;;  %v1051_v15 = vadd.f32 %v4207_v3, %v1050_v61 }
 0x186   :  { %v2954_v16 = vpop.f32.mrf.mxu0  ;;  %v3064_v17 = vpop.f32.mrf.mxu1 }
 0x187   :  { %v591_v21 = vmax.f32 %v522_v4, 0.0  ;;  %v1120_v22 = vmax.f32 %v1051_v15, 0.0 }
 0x188   :  { %v526_v26 = vpop.f32.mrf.mxu0  ;;  %v1055_v29 = vpop.f32.mrf.mxu1  ;;  %3172 = vmatmul.mubr.msk.bf16.gmra.mxu0 %vm233_vm3, %v3397_v62  ;;  %3282 = vmatmul.mubr.msk.bf16.gmra.mxu1 %vm233_vm3, %v3398_v60  ;;  %v3399_v62 = vld [vmem:[%s4571_s0 + $0x238] sm:$0xff]  }
 0x189   :  { %v4213_v32 = vmax.f32 %v591_v21, %v1120_v22  ;;  %v527_v37 = vadd.f32 %v4207_v3, %v526_v26  ;;  %v1056_v43 = vadd.f32 %v4207_v3, %v1055_v29  ;;  %3175 = vmatprep.mubr.msk.bf16.mxu0 %vm3409_vm2, %v4574_v0  ;;  %3285 = vmatprep.mubr.msk.bf16.mxu1 %vm3409_vm2, %v4574_v0  ;;  %v3400_v60 = vld [vmem:[%s4571_s0 + $0x2fc] sm:$0xff]  }
 0x18a   :  { %v2957_v45 = vpop.f32.mrf.mxu0  ;;  %v3067_v46 = vpop.f32.mrf.mxu1 }
 0x18b   :  { %v592_v47 = vmax.f32 %v527_v37, 0.0  ;;  %v1121_v52 = vmax.f32 %v1056_v43, 0.0 }
 0x18c   :  { %v529_v57 = vpop.f32.mrf.mxu0  ;;  %v1058_v61 = vpop.f32.mrf.mxu1 }
 0x18d   :  { %v4227_v4 = vmax.f32 %v592_v47, %v1121_v52  ;;  %v530_v15 = vadd.f32 %v4207_v3, %v529_v57  ;;  %v1059_v16 = vadd.f32 %v4207_v3, %v1058_v61 }
 0x18e   :  { %v2958_v17 = vpop.f32.mrf.mxu0  ;;  %v3068_v21 = vpop.f32.mrf.mxu1 }
 0x18f   :  { %v593_v22 = vmax.f32 %v530_v15, 0.0  ;;  %v1122_v26 = vmax.f32 %v1059_v16, 0.0  ;;  %v3402_v16 = vld [vmem:[%s4571_s0 + $0x304] sm:$0xff]  }
 0x190   :  { %v534_v29 = vpop.f32.mrf.mxu0  ;;  %v1063_v37 = vpop.f32.mrf.mxu1  ;;  %3176 = vmatmul.mubr.msk.bf16.gmra.mxu0 %vm233_vm3, %v3399_v62  ;;  %3286 = vmatmul.mubr.msk.bf16.gmra.mxu1 %vm233_vm3, %v3400_v60  ;;  %v3401_v60 = vld [vmem:[%s4571_s0 + $0x240] sm:$0xff]  }
 0x191   :  { %v4233_v43 = vmax.f32 %v593_v22, %v1122_v26  ;;  %v535_v45 = vadd.f32 %v4207_v3, %v534_v29  ;;  %v1064_v46 = vadd.f32 %v4207_v3, %v1063_v37  ;;  %3179 = vmatprep.mubr.msk.bf16.mxu0 %vm3409_vm2, %v4574_v0  ;;  %3289 = vmatprep.mubr.msk.bf16.mxu1 %vm3409_vm2, %v4574_v0 }
 0x192   :  { %v2961_v47 = vpop.f32.mrf.mxu0  ;;  %v3071_v52 = vpop.f32.mrf.mxu1 }
 0x193   :  { %4576 = vst [vmem:[#allocation2_spill] sm:$0xff] %v4233_v43  ;;  %v594_v57 = vmax.f32 %v535_v45, 0.0  ;;  %v1123_v61 = vmax.f32 %v1064_v46, 0.0 }
 0x194   :  { %v537_v15 = vpop.f32.mrf.mxu0  ;;  %v1066_v62 = vpop.f32.mrf.mxu1 }
 0x195   :  { %v4247_v17 = vmax.f32 %v594_v57, %v1123_v61  ;;  %v538_v21 = vadd.f32 %v4207_v3, %v537_v15  ;;  %v1067_v22 = vadd.f32 %v4207_v3, %v1066_v62  ;;  %v4579_v61 = vmov 0.0  }
 0x196   :  { %v2962_v26 = vpop.f32.mrf.mxu0  ;;  %v3072_v29 = vpop.f32.mrf.mxu1 }
 0x197   :  { %4577 = vst [vmem:[#allocation3_spill] sm:$0xff] %v4247_v17  ;;  %v595_v37 = vmax.f32 %v538_v21, 0.0  ;;  %v1124_v45 = vmax.f32 %v1067_v22, 0.0  ;;  %v3404_v29 = vld [vmem:[%s4571_s0 + $0x30c] ss:$0 sps:$4 sm:$0xff]  }
 0x198   :  { %v542_v46 = vpop.f32.mrf.mxu0  ;;  %v1071_v47 = vpop.f32.mrf.mxu1  ;;  %3180 = vmatmul.mubr.msk.bf16.gmra.mxu0 %vm233_vm3, %v3401_v60  ;;  %3290 = vmatmul.mubr.msk.bf16.gmra.mxu1 %vm233_vm3, %v3402_v16  ;;  %v3403_v16 = vld [vmem:[%s4571_s0 + $0x248] ss:$0 sps:$4 sm:$0xff]  }
 0x199   :  { %v4253_v52 = vmax.f32 %v595_v37, %v1124_v45  ;;  %v543_v0 = vadd.f32 %v4207_v3, %v542_v46  ;;  %v1072_v57 = vadd.f32 %v4207_v3, %v1071_v47  ;;  %3183 = vmatprep.mubr.msk.bf16.mxu0 %vm3409_vm2, %v4579_v61  ;;  %3293 = vmatprep.mubr.msk.bf16.mxu1 %vm3409_vm2, %v4579_v61 }
 0x19a   :  { %v2965_v15 = vpop.f32.mrf.mxu0  ;;  %v3075_v62 = vpop.f32.mrf.mxu1 }
 0x19b   :  { %4578 = vst [vmem:[#allocation4_spill] sm:$0xff] %v4253_v52  ;;  %v596_v21 = vmax.f32 %v543_v0, 0.0  ;;  %v1125_v22 = vmax.f32 %v1072_v57, 0.0 }
 0x19c   :  { %v545_v26 = vpop.f32.mrf.mxu0  ;;  %v1074_v60 = vpop.f32.mrf.mxu1 }
 0x19d   :  { %v4267_v37 = vmax.f32 %v596_v21, %v1125_v22 }
 0x19e   :  { %v2966_v45 = vpop.f32.mrf.mxu0  ;;  %v3076_v46 = vpop.f32.mrf.mxu1 }
 0x19f   :  { %4580 = vst [vmem:[#allocation5_spill] sm:$0xff] %v4267_v37 }
 0x1a0   :  { %v1457_v47 = vpop.f32.mrf.mxu0  ;;  %3184 = vmatmul.mubr.msk.bf16.gmra.mxu0 %vm233_vm3, %v3403_v16  ;;  %v2035_v61 = vpop.f32.mrf.mxu1  ;;  %3294 = vmatmul.mubr.msk.bf16.gmra.mxu1 %vm233_vm3, %v3404_v29 }
 0x1a1   :  { %v1458_v0 = vadd.f32 %v4207_v3, %v1457_v47  ;;  %v2036_v57 = vadd.f32 %v4207_v3, %v2035_v61 }
 0x1a2   :  { %v3089_v15 = vpop.f32.mrf.mxu0  ;;  %v3199_v62 = vpop.f32.mrf.mxu1 }
 0x1a3   :  { %v1655_v26 = vmax.f32 %v1458_v0, 0.0  ;;  %v2233_v60 = vmax.f32 %v2036_v57, 0.0 }
 0x1a4   :  { %v1460_v52 = vpop.f32.mrf.mxu0  ;;  %v2038_v17 = vpop.f32.mrf.mxu1 }
 0x1a5   :  { %v1704_v21 = vmax.f32 %v3782_v10, %v1655_v26  ;;  %v1461_v22 = vadd.f32 %v4207_v3, %v1460_v52  ;;  %v2039_v45 = vadd.f32 %v4207_v3, %v2038_v17 }
 0x1a6   :  { %v3090_v16 = vpop.f32.mrf.mxu0  ;;  %v3200_v46 = vpop.f32.mrf.mxu1 }
 0x1a7   :  { %v2282_v37 = vmax.f32 %v1704_v21, %v2233_v60  ;;  %v1656_v29 = vmax.f32 %v1461_v22, 0.0  ;;  %v2234_v0 = vmax.f32 %v2039_v45, 0.0 }
 0x1a8   :  { %v1465_v43 = vpop.f32.mrf.mxu0  ;;  %v2043_v47 = vpop.f32.mrf.mxu1 }
 0x1a9   :  { %2331 = vst [vmem:[%s4573_s3] sm:$0xff] %v2282_v37  ;;  %v1705_v61 = vmax.f32 %v3788_v19, %v1656_v29  ;;  %v1466_v57 = vadd.f32 %v4207_v3, %v1465_v43  ;;  %v2044_v10 = vadd.f32 %v4207_v3, %v2043_v47 }
 0x1aa   :  { %v3093_v52 = vpop.f32.mrf.mxu0  ;;  %v3203_v15 = vpop.f32.mrf.mxu1 }
 0x1ab   :  { %v2283_v17 = vmax.f32 %v1705_v61, %v2234_v0  ;;  %v1657_v62 = vmax.f32 %v1466_v57, 0.0  ;;  %v2235_v26 = vmax.f32 %v2044_v10, 0.0 }
 0x1ac   :  { %v1468_v60 = vpop.f32.mrf.mxu0  ;;  %v2046_v21 = vpop.f32.mrf.mxu1 }
 0x1ad   :  { %2332 = vst [vmem:[%s4573_s3 + $0x8] sm:$0xff] %v2283_v17  ;;  %v1706_v37 = vmax.f32 %v3802_v30, %v1657_v62  ;;  %v1469_v19 = vadd.f32 %v4207_v3, %v1468_v60  ;;  %v2047_v22 = vadd.f32 %v4207_v3, %v2046_v21 }
 0x1ae   :  { %v3094_v43 = vpop.f32.mrf.mxu0  ;;  %v3204_v45 = vpop.f32.mrf.mxu1 }
 0x1af   :  { %v2284_v16 = vmax.f32 %v1706_v37, %v2235_v26  ;;  %v1658_v46 = vmax.f32 %v1469_v19, 0.0  ;;  %v2236_v0 = vmax.f32 %v2047_v22, 0.0 }
 0x1b0   :  { %v1473_v29 = vpop.f32.mrf.mxu0  ;;  %v2051_v47 = vpop.f32.mrf.mxu1 }
 0x1b1   :  { %2333 = vst [vmem:[%s4573_s3 + $0x10] sm:$0xff] %v2284_v16  ;;  %v1707_v61 = vmax.f32 %v3808_v39, %v1658_v46  ;;  %v1474_v57 = vadd.f32 %v4207_v3, %v1473_v29  ;;  %v2052_v30 = vadd.f32 %v4207_v3, %v2051_v47 }
 0x1b2   :  { %v3097_v10 = vpop.f32.mrf.mxu0  ;;  %v3207_v52 = vpop.f32.mrf.mxu1 }
 0x1b3   :  { %v2285_v15 = vmax.f32 %v1707_v61, %v2236_v0  ;;  %v1659_v17 = vmax.f32 %v1474_v57, 0.0  ;;  %v2237_v62 = vmax.f32 %v2052_v30, 0.0 }
 0x1b4   :  { %v1476_v26 = vpop.f32.mrf.mxu0  ;;  %v2054_v60 = vpop.f32.mrf.mxu1 }
 0x1b5   :  { %2334 = vst [vmem:[%s4573_s3 + $0x18] sm:$0xff] %v2285_v15  ;;  %v1708_v21 = vmax.f32 %v3822_v50, %v1659_v17  ;;  %v1477_v39 = vadd.f32 %v4207_v3, %v1476_v26  ;;  %v2055_v37 = vadd.f32 %v4207_v3, %v2054_v60 }
 0x1b6   :  { %v3098_v19 = vpop.f32.mrf.mxu0  ;;  %v3208_v22 = vpop.f32.mrf.mxu1 }
 0x1b7   :  { %v2286_v43 = vmax.f32 %v1708_v21, %v2237_v62  ;;  %v1660_v45 = vmax.f32 %v1477_v39, 0.0  ;;  %v2238_v47 = vmax.f32 %v2055_v37, 0.0 }
 0x1b8   :  { %v1481_v16 = vpop.f32.mrf.mxu0  ;;  %v2059_v46 = vpop.f32.mrf.mxu1 }
 0x1b9   :  { %2335 = vst [vmem:[%s4573_s3 + $0x20] sm:$0xff] %v2286_v43  ;;  %v1709_v29 = vmax.f32 %v3828_v59, %v1660_v45  ;;  %v1482_v61 = vadd.f32 %v4207_v3, %v1481_v16  ;;  %v2060_v50 = vadd.f32 %v4207_v3, %v2059_v46 }
 0x1ba   :  { %v3101_v0 = vpop.f32.mrf.mxu0  ;;  %v3211_v57 = vpop.f32.mrf.mxu1 }
 0x1bb   :  { %v2287_v30 = vmax.f32 %v1709_v29, %v2238_v47  ;;  %v1661_v10 = vmax.f32 %v1482_v61, 0.0  ;;  %v2239_v52 = vmax.f32 %v2060_v50, 0.0 }
 0x1bc   :  { %v1484_v15 = vpop.f32.mrf.mxu0  ;;  %v2062_v17 = vpop.f32.mrf.mxu1 }
 0x1bd   :  { %2336 = vst [vmem:[%s4573_s3 + $0x28] sm:$0xff] %v2287_v30  ;;  %v1710_v62 = vmax.f32 %v3842_v8, %v1661_v10  ;;  %v1485_v59 = vadd.f32 %v4207_v3, %v1484_v15  ;;  %v2063_v26 = vadd.f32 %v4207_v3, %v2062_v17 }
 0x1be   :  { %v3102_v60 = vpop.f32.mrf.mxu0  ;;  %v3212_v21 = vpop.f32.mrf.mxu1 }
 0x1bf   :  { %v2288_v39 = vmax.f32 %v1710_v62, %v2239_v52  ;;  %v1662_v37 = vmax.f32 %v1485_v59, 0.0  ;;  %v2240_v45 = vmax.f32 %v2063_v26, 0.0 }
 0x1c0   :  { %v1489_v19 = vpop.f32.mrf.mxu0  ;;  %v2067_v22 = vpop.f32.mrf.mxu1 }
 0x1c1   :  { %2337 = vst [vmem:[%s4573_s3 + $0x30] sm:$0xff] %v2288_v39  ;;  %v1711_v43 = vmax.f32 %v3848_v18, %v1662_v37  ;;  %v1490_v16 = vadd.f32 %v4207_v3, %v1489_v19  ;;  %v2068_v8 = vadd.f32 %v4207_v3, %v2067_v22 }
 0x1c2   :  { %v3105_v46 = vpop.f32.mrf.mxu0  ;;  %v3215_v29 = vpop.f32.mrf.mxu1 }
 0x1c3   :  { %v2289_v47 = vmax.f32 %v1711_v43, %v2240_v45  ;;  %v1663_v61 = vmax.f32 %v1490_v16, 0.0  ;;  %v2241_v50 = vmax.f32 %v2068_v8, 0.0 }
 0x1c4   :  { %v1492_v0 = vpop.f32.mrf.mxu0  ;;  %v2070_v57 = vpop.f32.mrf.mxu1 }
 0x1c5   :  { %2338 = vst [vmem:[%s4573_s3 + $0x38] sm:$0xff] %v2289_v47  ;;  %v1712_v30 = vmax.f32 %v3862_v31, %v1663_v61  ;;  %v1493_v18 = vadd.f32 %v4207_v3, %v1492_v0  ;;  %v2071_v10 = vadd.f32 %v4207_v3, %v2070_v57 }
 0x1c6   :  { %v3106_v52 = vpop.f32.mrf.mxu0  ;;  %v3216_v15 = vpop.f32.mrf.mxu1 }
 0x1c7   :  { %v2290_v17 = vmax.f32 %v1712_v30, %v2241_v50  ;;  %v1664_v62 = vmax.f32 %v1493_v18, 0.0  ;;  %v2242_v21 = vmax.f32 %v2071_v10, 0.0 }
 0x1c8   :  { %v1497_v59 = vpop.f32.mrf.mxu0  ;;  %v2075_v26 = vpop.f32.mrf.mxu1 }
 0x1c9   :  { %2339 = vst [vmem:[%s4573_s3 + $0x40] sm:$0xff] %v2290_v17  ;;  %v1713_v60 = vmax.f32 %v3868_v41, %v1664_v62  ;;  %v1498_v39 = vadd.f32 %v4207_v3, %v1497_v59  ;;  %v2076_v31 = vadd.f32 %v4207_v3, %v2075_v26 }
 0x1ca   :  { %v3109_v37 = vpop.f32.mrf.mxu0  ;;  %v3219_v19 = vpop.f32.mrf.mxu1 }
 0x1cb   :  { %v2291_v22 = vmax.f32 %v1713_v60, %v2242_v21  ;;  %v1665_v43 = vmax.f32 %v1498_v39, 0.0  ;;  %v2243_v45 = vmax.f32 %v2076_v31, 0.0 }
 0x1cc   :  { %v1500_v16 = vpop.f32.mrf.mxu0  ;;  %v2078_v8 = vpop.f32.mrf.mxu1 }
 0x1cd   :  { %2340 = vst [vmem:[%s4573_s3 + $0x48] sm:$0xff] %v2291_v22  ;;  %v1714_v46 = vmax.f32 %v3882_v53, %v1665_v43  ;;  %v1501_v41 = vadd.f32 %v4207_v3, %v1500_v16  ;;  %v2079_v29 = vadd.f32 %v4207_v3, %v2078_v8 }
 0x1ce   :  { %v3110_v47 = vpop.f32.mrf.mxu0  ;;  %v3220_v61 = vpop.f32.mrf.mxu1 }
 0x1cf   :  { %v2292_v50 = vmax.f32 %v1714_v46, %v2243_v45  ;;  %v1666_v0 = vmax.f32 %v1501_v41, 0.0  ;;  %v2244_v10 = vmax.f32 %v2079_v29, 0.0 }
 0x1d0   :  { %v1505_v57 = vpop.f32.mrf.mxu0  ;;  %v2083_v30 = vpop.f32.mrf.mxu1 }
 0x1d1   :  { %2341 = vst [vmem:[%s4573_s3 + $0x50] sm:$0xff] %v2292_v50  ;;  %v1715_v18 = vmax.f32 %v3888_v1, %v1666_v0  ;;  %v1506_v52 = vadd.f32 %v4207_v3, %v1505_v57  ;;  %v2084_v53 = vadd.f32 %v4207_v3, %v2083_v30 }
 0x1d2   :  { %v3113_v15 = vpop.f32.mrf.mxu0  ;;  %v3223_v17 = vpop.f32.mrf.mxu1 }
 0x1d3   :  { %v2293_v62 = vmax.f32 %v1715_v18, %v2244_v10  ;;  %v1667_v59 = vmax.f32 %v1506_v52, 0.0  ;;  %v2245_v26 = vmax.f32 %v2084_v53, 0.0 }
 0x1d4   :  { %v1508_v60 = vpop.f32.mrf.mxu0  ;;  %v2086_v21 = vpop.f32.mrf.mxu1 }
 0x1d5   :  { %2342 = vst [vmem:[%s4573_s3 + $0x58] sm:$0xff] %v2293_v62  ;;  %v1716_v39 = vmax.f32 %v3902_v14, %v1667_v59  ;;  %v1509_v1 = vadd.f32 %v4207_v3, %v1508_v60  ;;  %v2087_v31 = vadd.f32 %v4207_v3, %v2086_v21 }
 0x1d6   :  { %v3114_v37 = vpop.f32.mrf.mxu0  ;;  %v3224_v19 = vpop.f32.mrf.mxu1 }
 0x1d7   :  { %v2294_v22 = vmax.f32 %v1716_v39, %v2245_v26  ;;  %v1668_v43 = vmax.f32 %v1509_v1, 0.0  ;;  %v2246_v46 = vmax.f32 %v2087_v31, 0.0 }
 0x1d8   :  { %v1513_v45 = vpop.f32.mrf.mxu0  ;;  %v2091_v16 = vpop.f32.mrf.mxu1 }
 0x1d9   :  { %2343 = vst [vmem:[%s4573_s3 + $0x60] sm:$0xff] %v2294_v22  ;;  %v1717_v8 = vmax.f32 %v3908_v25, %v1668_v43  ;;  %v1514_v41 = vadd.f32 %v4207_v3, %v1513_v45  ;;  %v2092_v14 = vadd.f32 %v4207_v3, %v2091_v16 }
 0x1da   :  { %v3117_v29 = vpop.f32.mrf.mxu0  ;;  %v3227_v47 = vpop.f32.mrf.mxu1 }
 0x1db   :  { %v2295_v61 = vmax.f32 %v1717_v8, %v2246_v46  ;;  %v1669_v50 = vmax.f32 %v1514_v41, 0.0  ;;  %v2247_v0 = vmax.f32 %v2092_v14, 0.0 }
 0x1dc   :  { %v1516_v57 = vpop.f32.mrf.mxu0  ;;  %v2094_v30 = vpop.f32.mrf.mxu1 }
 0x1dd   :  { %2344 = vst [vmem:[%s4573_s3 + $0x68] sm:$0xff] %v2295_v61  ;;  %v1718_v18 = vmax.f32 %v3922_v38, %v1669_v50  ;;  %v1517_v25 = vadd.f32 %v4207_v3, %v1516_v57  ;;  %v2095_v10 = vadd.f32 %v4207_v3, %v2094_v30 }
 0x1de   :  { %v3118_v52 = vpop.f32.mrf.mxu0  ;;  %v3228_v53 = vpop.f32.mrf.mxu1 }
 0x1df   :  { %v2296_v15 = vmax.f32 %v1718_v18, %v2247_v0  ;;  %v1670_v17 = vmax.f32 %v1517_v25, 0.0  ;;  %v2248_v60 = vmax.f32 %v2095_v10, 0.0 }
 0x1e0   :  { %v1521_v62 = vpop.f32.mrf.mxu0  ;;  %v2099_v59 = vpop.f32.mrf.mxu1 }
 0x1e1   :  { %2345 = vst [vmem:[%s4573_s3 + $0x70] sm:$0xff] %v2296_v15  ;;  %v1719_v26 = vmax.f32 %v3928_v49, %v1670_v17  ;;  %v1522_v21 = vadd.f32 %v4207_v3, %v1521_v62  ;;  %v2100_v38 = vadd.f32 %v4207_v3, %v2099_v59 }
 0x1e2   :  { %v3121_v39 = vpop.f32.mrf.mxu0  ;;  %v3231_v1 = vpop.f32.mrf.mxu1 }
 0x1e3   :  { %v2297_v31 = vmax.f32 %v1719_v26, %v2248_v60  ;;  %v1671_v37 = vmax.f32 %v1522_v21, 0.0  ;;  %v2249_v19 = vmax.f32 %v2100_v38, 0.0 }
 0x1e4   :  { %v1524_v22 = vpop.f32.mrf.mxu0  ;;  %v2102_v43 = vpop.f32.mrf.mxu1 }
 0x1e5   :  { %2346 = vst [vmem:[%s4573_s3 + $0x78] sm:$0xff] %v2297_v31  ;;  %v1720_v45 = vmax.f32 %v3942_v2, %v1671_v37  ;;  %v1525_v49 = vadd.f32 %v4207_v3, %v1524_v22  ;;  %v2103_v16 = vadd.f32 %v4207_v3, %v2102_v43 }
 0x1e6   :  { %v3122_v8 = vpop.f32.mrf.mxu0  ;;  %v3232_v46 = vpop.f32.mrf.mxu1 }
 0x1e7   :  { %v2298_v41 = vmax.f32 %v1720_v45, %v2249_v19  ;;  %v1672_v14 = vmax.f32 %v1525_v49, 0.0  ;;  %v2250_v50 = vmax.f32 %v2103_v16, 0.0 }
 0x1e8   :  { %v1529_v29 = vpop.f32.mrf.mxu0  ;;  %v2107_v47 = vpop.f32.mrf.mxu1 }
 0x1e9   :  { %2347 = vst [vmem:[%s4573_s3 + $0x80] sm:$0xff] %v2298_v41  ;;  %v1721_v61 = vmax.f32 %v3948_v13, %v1672_v14  ;;  %v1530_v0 = vadd.f32 %v4207_v3, %v1529_v29  ;;  %v2108_v2 = vadd.f32 %v4207_v3, %v2107_v47 }
 0x1ea   :  { %v3125_v57 = vpop.f32.mrf.mxu0  ;;  %v3235_v30 = vpop.f32.mrf.mxu1 }
 0x1eb   :  { %v2299_v18 = vmax.f32 %v1721_v61, %v2250_v50  ;;  %v1673_v25 = vmax.f32 %v1530_v0, 0.0  ;;  %v2251_v10 = vmax.f32 %v2108_v2, 0.0 }
 0x1ec   :  { %v1532_v52 = vpop.f32.mrf.mxu0  ;;  %v2110_v53 = vpop.f32.mrf.mxu1 }
 0x1ed   :  { %2348 = vst [vmem:[%s4573_s3 + $0x88] sm:$0xff] %v2299_v18  ;;  %v1722_v15 = vmax.f32 %v3962_v28, %v1673_v25  ;;  %v1533_v13 = vadd.f32 %v4207_v3, %v1532_v52  ;;  %v2111_v17 = vadd.f32 %v4207_v3, %v2110_v53 }
 0x1ee   :  { %v3126_v62 = vpop.f32.mrf.mxu0  ;;  %v3236_v59 = vpop.f32.mrf.mxu1 }
 0x1ef   :  { %v2300_v26 = vmax.f32 %v1722_v15, %v2251_v10  ;;  %v1674_v60 = vmax.f32 %v1533_v13, 0.0  ;;  %v2252_v1 = vmax.f32 %v2111_v17, 0.0 }
 0x1f0   :  { %v1537_v21 = vpop.f32.mrf.mxu0  ;;  %v2115_v38 = vpop.f32.mrf.mxu1 }
 0x1f1   :  { %2349 = vst [vmem:[%s4573_s3 + $0x90] sm:$0xff] %v2300_v26  ;;  %v1723_v39 = vmax.f32 %v3968_v42, %v1674_v60  ;;  %v1538_v31 = vadd.f32 %v4207_v3, %v1537_v21  ;;  %v2116_v28 = vadd.f32 %v4207_v3, %v2115_v38 }
 0x1f2   :  { %v3129_v37 = vpop.f32.mrf.mxu0  ;;  %v3239_v19 = vpop.f32.mrf.mxu1 }
 0x1f3   :  { %v2301_v22 = vmax.f32 %v1723_v39, %v2252_v1  ;;  %v1675_v43 = vmax.f32 %v1538_v31, 0.0  ;;  %v2253_v45 = vmax.f32 %v2116_v28, 0.0 }
 0x1f4   :  { %v1540_v49 = vpop.f32.mrf.mxu0  ;;  %v2118_v16 = vpop.f32.mrf.mxu1 }
 0x1f5   :  { %2350 = vst [vmem:[%s4573_s3 + $0x98] sm:$0xff] %v2301_v22  ;;  %v1724_v8 = vmax.f32 %v3982_v56, %v1675_v43  ;;  %v1541_v42 = vadd.f32 %v4207_v3, %v1540_v49  ;;  %v2119_v46 = vadd.f32 %v4207_v3, %v2118_v16 }
 0x1f6   :  { %v3130_v41 = vpop.f32.mrf.mxu0  ;;  %v3240_v14 = vpop.f32.mrf.mxu1 }
 0x1f7   :  { %v2302_v29 = vmax.f32 %v1724_v8, %v2253_v45  ;;  %v1676_v47 = vmax.f32 %v1541_v42, 0.0  ;;  %v2254_v2 = vmax.f32 %v2119_v46, 0.0 }
 0x1f8   :  { %v1545_v61 = vpop.f32.mrf.mxu0  ;;  %v2123_v50 = vpop.f32.mrf.mxu1 }
 0x1f9   :  { %2351 = vst [vmem:[%s4573_s3 + $0xa0] sm:$0xff] %v2302_v29  ;;  %v1725_v0 = vmax.f32 %v3988_v6, %v1676_v47  ;;  %v1546_v57 = vadd.f32 %v4207_v3, %v1545_v61  ;;  %v2124_v56 = vadd.f32 %v4207_v3, %v2123_v50 }
 0x1fa   :  { %v3133_v30 = vpop.f32.mrf.mxu0  ;;  %v3243_v18 = vpop.f32.mrf.mxu1 }
 0x1fb   :  { %v2303_v25 = vmax.f32 %v1725_v0, %v2254_v2  ;;  %v1677_v10 = vmax.f32 %v1546_v57, 0.0  ;;  %v2255_v52 = vmax.f32 %v2124_v56, 0.0 }
 0x1fc   :  { %v1548_v53 = vpop.f32.mrf.mxu0  ;;  %v2126_v15 = vpop.f32.mrf.mxu1 }
 0x1fd   :  { %2352 = vst [vmem:[%s4573_s3 + $0xa8] sm:$0xff] %v2303_v25  ;;  %v1726_v13 = vmax.f32 %v4002_v23, %v1677_v10  ;;  %v1549_v6 = vadd.f32 %v4207_v3, %v1548_v53  ;;  %v2127_v17 = vadd.f32 %v4207_v3, %v2126_v15 }
 0x1fe   :  { %v3134_v62 = vpop.f32.mrf.mxu0  ;;  %v3244_v59 = vpop.f32.mrf.mxu1 }
 0x1ff   :  { %v2304_v26 = vmax.f32 %v1726_v13, %v2255_v52  ;;  %v1678_v60 = vmax.f32 %v1549_v6, 0.0  ;;  %v2256_v1 = vmax.f32 %v2127_v17, 0.0 }
 0x200   :  { %v1553_v21 = vpop.f32.mrf.mxu0  ;;  %v2131_v38 = vpop.f32.mrf.mxu1 }
 0x201   :  { %2353 = vst [vmem:[%s4573_s3 + $0xb0] sm:$0xff] %v2304_v26  ;;  %v1727_v39 = vmax.f32 %v4008_v36, %v1678_v60  ;;  %v1554_v31 = vadd.f32 %v4207_v3, %v1553_v21  ;;  %v2132_v23 = vadd.f32 %v4207_v3, %v2131_v38 }
 0x202   :  { %v3137_v28 = vpop.f32.mrf.mxu0  ;;  %v3247_v37 = vpop.f32.mrf.mxu1 }
 0x203   :  { %v2305_v19 = vmax.f32 %v1727_v39, %v2256_v1  ;;  %v1679_v22 = vmax.f32 %v1554_v31, 0.0  ;;  %v2257_v43 = vmax.f32 %v2132_v23, 0.0 }
 0x204   :  { %v1556_v45 = vpop.f32.mrf.mxu0  ;;  %v2134_v49 = vpop.f32.mrf.mxu1 }
 0x205   :  { %2354 = vst [vmem:[%s4573_s3 + $0xb8] sm:$0xff] %v2305_v19  ;;  %v1728_v16 = vmax.f32 %v4022_v54, %v1679_v22  ;;  %v1557_v36 = vadd.f32 %v4207_v3, %v1556_v45  ;;  %v2135_v8 = vadd.f32 %v4207_v3, %v2134_v49 }
 0x206   :  { %v3138_v42 = vpop.f32.mrf.mxu0  ;;  %v3248_v46 = vpop.f32.mrf.mxu1 }
 0x207   :  { %v2306_v41 = vmax.f32 %v1728_v16, %v2257_v43  ;;  %v1680_v14 = vmax.f32 %v1557_v36, 0.0  ;;  %v2258_v50 = vmax.f32 %v2135_v8, 0.0 }
 0x208   :  { %v1561_v29 = vpop.f32.mrf.mxu0  ;;  %v2139_v47 = vpop.f32.mrf.mxu1 }
 0x209   :  { %2355 = vst [vmem:[%s4573_s3 + $0xc0] sm:$0xff] %v2306_v41  ;;  %v1729_v61 = vmax.f32 %v4028_v5, %v1680_v14  ;;  %v1562_v0 = vadd.f32 %v4207_v3, %v1561_v29  ;;  %v2140_v54 = vadd.f32 %v4207_v3, %v2139_v47 }
 0x20a   :  { %v3141_v2 = vpop.f32.mrf.mxu0  ;;  %v3251_v57 = vpop.f32.mrf.mxu1 }
 0x20b   :  { %v2307_v56 = vmax.f32 %v1729_v61, %v2258_v50  ;;  %v1681_v30 = vmax.f32 %v1562_v0, 0.0  ;;  %v2259_v18 = vmax.f32 %v2140_v54, 0.0 }
 0x20c   :  { %v1564_v25 = vpop.f32.mrf.mxu0  ;;  %v2142_v10 = vpop.f32.mrf.mxu1 }
 0x20d   :  { %2356 = vst [vmem:[%s4573_s3 + $0xc8] sm:$0xff] %v2307_v56  ;;  %v1730_v52 = vmax.f32 %v4042_v24, %v1681_v30  ;;  %v1565_v5 = vadd.f32 %v4207_v3, %v1564_v25  ;;  %v2143_v53 = vadd.f32 %v4207_v3, %v2142_v10 }
 0x20e   :  { %v3142_v15 = vpop.f32.mrf.mxu0  ;;  %v3252_v13 = vpop.f32.mrf.mxu1 }
 0x20f   :  { %v2308_v6 = vmax.f32 %v1730_v52, %v2259_v18  ;;  %v1682_v17 = vmax.f32 %v1565_v5, 0.0  ;;  %v2260_v60 = vmax.f32 %v2143_v53, 0.0 }
 0x210   :  { %v1569_v62 = vpop.f32.mrf.mxu0  ;;  %v2147_v59 = vpop.f32.mrf.mxu1 }
 0x211   :  { %2357 = vst [vmem:[%s4573_s3 + $0xd0] sm:$0xff] %v2308_v6  ;;  %v1731_v26 = vmax.f32 %v4048_v40, %v1682_v17  ;;  %v1570_v21 = vadd.f32 %v4207_v3, %v1569_v62  ;;  %v2148_v24 = vadd.f32 %v4207_v3, %v2147_v59 }
 0x212   :  { %v3145_v38 = vpop.f32.mrf.mxu0  ;;  %v3255_v39 = vpop.f32.mrf.mxu1 }
 0x213   :  { %v2309_v1 = vmax.f32 %v1731_v26, %v2260_v60  ;;  %v1683_v31 = vmax.f32 %v1570_v21, 0.0  ;;  %v2261_v23 = vmax.f32 %v2148_v24, 0.0 }
 0x214   :  { %v1572_v28 = vpop.f32.mrf.mxu0  ;;  %v2150_v37 = vpop.f32.mrf.mxu1 }
 0x215   :  { %2358 = vst [vmem:[%s4573_s3 + $0xd8] sm:$0xff] %v2309_v1  ;;  %v1732_v19 = vmax.f32 %v4062_v58, %v1683_v31  ;;  %v1573_v40 = vadd.f32 %v4207_v3, %v1572_v28  ;;  %v2151_v22 = vadd.f32 %v4207_v3, %v2150_v37 }
 0x216   :  { %v3146_v43 = vpop.f32.mrf.mxu0  ;;  %v3256_v45 = vpop.f32.mrf.mxu1 }
 0x217   :  { %v2310_v49 = vmax.f32 %v1732_v19, %v2261_v23  ;;  %v1684_v16 = vmax.f32 %v1573_v40, 0.0  ;;  %v2262_v46 = vmax.f32 %v2151_v22, 0.0 }
 0x218   :  { %v1577_v36 = vpop.f32.mrf.mxu0  ;;  %v2155_v8 = vpop.f32.mrf.mxu1 }
 0x219   :  { %2359 = vst [vmem:[%s4573_s3 + $0xe0] sm:$0xff] %v2310_v49  ;;  %v1733_v42 = vmax.f32 %v4068_v12, %v1684_v16  ;;  %v1578_v41 = vadd.f32 %v4207_v3, %v1577_v36  ;;  %v2156_v58 = vadd.f32 %v4207_v3, %v2155_v8 }
 0x21a   :  { %v3149_v14 = vpop.f32.mrf.mxu0  ;;  %v3259_v29 = vpop.f32.mrf.mxu1 }
 0x21b   :  { %v2311_v47 = vmax.f32 %v1733_v42, %v2262_v46  ;;  %v1685_v61 = vmax.f32 %v1578_v41, 0.0  ;;  %v2263_v50 = vmax.f32 %v2156_v58, 0.0 }
 0x21c   :  { %v1580_v0 = vpop.f32.mrf.mxu0  ;;  %v2158_v54 = vpop.f32.mrf.mxu1 }
 0x21d   :  { %2360 = vst [vmem:[%s4573_s3 + $0xe8] sm:$0xff] %v2311_v47  ;;  %v1734_v2 = vmax.f32 %v4082_v33, %v1685_v61  ;;  %v1581_v12 = vadd.f32 %v4207_v3, %v1580_v0  ;;  %v2159_v57 = vadd.f32 %v4207_v3, %v2158_v54 }
 0x21e   :  { %v3150_v56 = vpop.f32.mrf.mxu0  ;;  %v3260_v30 = vpop.f32.mrf.mxu1 }
 0x21f   :  { %v2312_v18 = vmax.f32 %v1734_v2, %v2263_v50  ;;  %v1686_v25 = vmax.f32 %v1581_v12, 0.0  ;;  %v2264_v53 = vmax.f32 %v2159_v57, 0.0 }
 0x220   :  { %v1585_v10 = vpop.f32.mrf.mxu0  ;;  %v2163_v52 = vpop.f32.mrf.mxu1 }
 0x221   :  { %2361 = vst [vmem:[%s4573_s3 + $0xf0] sm:$0xff] %v2312_v18  ;;  %v1735_v5 = vmax.f32 %v4088_v48, %v1686_v25  ;;  %v1586_v15 = vadd.f32 %v4207_v3, %v1585_v10  ;;  %v2164_v33 = vadd.f32 %v4207_v3, %v2163_v52 }
 0x222   :  { %v3153_v13 = vpop.f32.mrf.mxu0  ;;  %v3263_v6 = vpop.f32.mrf.mxu1 }
 0x223   :  { %v2313_v17 = vmax.f32 %v1735_v5, %v2264_v53  ;;  %v1687_v62 = vmax.f32 %v1586_v15, 0.0  ;;  %v2265_v59 = vmax.f32 %v2164_v33, 0.0 }
 0x224   :  { %v1588_v26 = vpop.f32.mrf.mxu0  ;;  %v2166_v60 = vpop.f32.mrf.mxu1 }
 0x225   :  { %2362 = vst [vmem:[%s4573_s3 + $0xf8] sm:$0xff] %v2313_v17  ;;  %v1736_v21 = vmax.f32 %v4102_v9, %v1687_v62  ;;  %v1589_v48 = vadd.f32 %v4207_v3, %v1588_v26  ;;  %v2167_v24 = vadd.f32 %v4207_v3, %v2166_v60 }
 0x226   :  { %v3154_v38 = vpop.f32.mrf.mxu0  ;;  %v3264_v39 = vpop.f32.mrf.mxu1 }
 0x227   :  { %v2314_v1 = vmax.f32 %v1736_v21, %v2265_v59  ;;  %v1688_v31 = vmax.f32 %v1589_v48, 0.0  ;;  %v2266_v19 = vmax.f32 %v2167_v24, 0.0 }
 0x228   :  { %v1593_v23 = vpop.f32.mrf.mxu0  ;;  %v2171_v28 = vpop.f32.mrf.mxu1 }
 0x229   :  { %2363 = vst [vmem:[%s4573_s3 + $0x100] sm:$0xff] %v2314_v1  ;;  %v1737_v37 = vmax.f32 %v4108_v27, %v1688_v31  ;;  %v1594_v40 = vadd.f32 %v4207_v3, %v1593_v23  ;;  %v2172_v9 = vadd.f32 %v4207_v3, %v2171_v28 }
 0x22a   :  { %v3157_v22 = vpop.f32.mrf.mxu0  ;;  %v3267_v43 = vpop.f32.mrf.mxu1 }
 0x22b   :  { %v2315_v45 = vmax.f32 %v1737_v37, %v2266_v19  ;;  %v1689_v49 = vmax.f32 %v1594_v40, 0.0  ;;  %v2267_v16 = vmax.f32 %v2172_v9, 0.0 }
 0x22c   :  { %v1596_v36 = vpop.f32.mrf.mxu0  ;;  %v2174_v8 = vpop.f32.mrf.mxu1 }
 0x22d   :  { %2364 = vst [vmem:[%s4573_s3 + $0x108] sm:$0xff] %v2315_v45  ;;  %v1738_v42 = vmax.f32 %v4122_v51, %v1689_v49  ;;  %v1597_v27 = vadd.f32 %v4207_v3, %v1596_v36  ;;  %v2175_v46 = vadd.f32 %v4207_v3, %v2174_v8 }
 0x22e   :  { %v3158_v41 = vpop.f32.mrf.mxu0  ;;  %v3268_v58 = vpop.f32.mrf.mxu1 }
 0x22f   :  { %v2316_v14 = vmax.f32 %v1738_v42, %v2267_v16  ;;  %v1690_v29 = vmax.f32 %v1597_v27, 0.0  ;;  %v2268_v0 = vmax.f32 %v2175_v46, 0.0 }
 0x230   :  { %v1601_v47 = vpop.f32.mrf.mxu0  ;;  %v2179_v61 = vpop.f32.mrf.mxu1 }
 0x231   :  { %2365 = vst [vmem:[%s4573_s3 + $0x110] sm:$0xff] %v2316_v14  ;;  %v1739_v50 = vmax.f32 %v4128_v7, %v1690_v29  ;;  %v1602_v54 = vadd.f32 %v4207_v3, %v1601_v47  ;;  %v2180_v51 = vadd.f32 %v4207_v3, %v2179_v61 }
 0x232   :  { %v3161_v2 = vpop.f32.mrf.mxu0  ;;  %v3271_v12 = vpop.f32.mrf.mxu1 }
 0x233   :  { %v2317_v57 = vmax.f32 %v1739_v50, %v2268_v0  ;;  %v1691_v56 = vmax.f32 %v1602_v54, 0.0  ;;  %v2269_v30 = vmax.f32 %v2180_v51, 0.0 }
 0x234   :  { %v1604_v18 = vpop.f32.mrf.mxu0  ;;  %v2182_v25 = vpop.f32.mrf.mxu1 }
 0x235   :  { %2366 = vst [vmem:[%s4573_s3 + $0x118] sm:$0xff] %v2317_v57  ;;  %v1740_v10 = vmax.f32 %v4142_v34, %v1691_v56  ;;  %v1605_v7 = vadd.f32 %v4207_v3, %v1604_v18  ;;  %v2183_v52 = vadd.f32 %v4207_v3, %v2182_v25 }
 0x236   :  { %v3162_v5 = vpop.f32.mrf.mxu0  ;;  %v3272_v53 = vpop.f32.mrf.mxu1 }
 0x237   :  { %v2318_v15 = vmax.f32 %v1740_v10, %v2269_v30  ;;  %v1692_v33 = vmax.f32 %v1605_v7, 0.0  ;;  %v2270_v62 = vmax.f32 %v2183_v52, 0.0 }
 0x238   :  { %v1609_v13 = vpop.f32.mrf.mxu0  ;;  %v2187_v6 = vpop.f32.mrf.mxu1 }
 0x239   :  { %2367 = vst [vmem:[%s4573_s3 + $0x120] sm:$0xff] %v2318_v15  ;;  %v1741_v17 = vmax.f32 %v4148_v55, %v1692_v33  ;;  %v1610_v59 = vadd.f32 %v4207_v3, %v1609_v13  ;;  %v2188_v34 = vadd.f32 %v4207_v3, %v2187_v6 }
 0x23a   :  { %v3165_v26 = vpop.f32.mrf.mxu0  ;;  %v3275_v60 = vpop.f32.mrf.mxu1 }
 0x23b   :  { %v2319_v21 = vmax.f32 %v1741_v17, %v2270_v62  ;;  %v1693_v48 = vmax.f32 %v1610_v59, 0.0  ;;  %v2271_v24 = vmax.f32 %v2188_v34, 0.0 }
 0x23c   :  { %v1612_v38 = vpop.f32.mrf.mxu0  ;;  %v2190_v39 = vpop.f32.mrf.mxu1 }
 0x23d   :  { %2368 = vst [vmem:[%s4573_s3 + $0x128] sm:$0xff] %v2319_v21  ;;  %v1742_v1 = vmax.f32 %v4162_v20, %v1693_v48  ;;  %v1613_v55 = vadd.f32 %v4207_v3, %v1612_v38  ;;  %v2191_v31 = vadd.f32 %v4207_v3, %v2190_v39  ;;  %v4511_v20 = vld [vmem:[%s4572_s2] ss:$0 sm:$0xff] }
 0x23e   :  { %v3166_v23 = vpop.f32.mrf.mxu0  ;;  %v3276_v28 = vpop.f32.mrf.mxu1 }
 0x23f   :  { %v2320_v37 = vmax.f32 %v1742_v1, %v2271_v24  ;;  %v1694_v19 = vmax.f32 %v1613_v55, 0.0  ;;  %v2272_v43 = vmax.f32 %v2191_v31, 0.0 }
 0x240   :  { %v1617_v40 = vpop.f32.mrf.mxu0  ;;  %v2195_v9 = vpop.f32.mrf.mxu1 }
 0x241   :  { %2369 = vst [vmem:[%s4573_s3 + $0x130] sm:$0xff] %v2320_v37  ;;  %v1743_v22 = vmax.f32 %v4168_v44, %v1694_v19  ;;  %v1618_v3 = vadd.f32 %v4511_v20, %v1617_v40  ;;  %v2196_v45 = vadd.f32 %v4511_v20, %v2195_v9  ;;  %v4581_v40 = vld [vmem:[#allocation2_spill] sm:$0xff] }
 0x242   :  { %v3169_v49 = vpop.f32.mrf.mxu0  ;;  %v3279_v16 = vpop.f32.mrf.mxu1 }
 0x243   :  { %v2321_v36 = vmax.f32 %v1743_v22, %v2272_v43  ;;  %v1695_v8 = vmax.f32 %v1618_v3, 0.0  ;;  %v2273_v42 = vmax.f32 %v2196_v45, 0.0 }
 0x244   :  { %v1620_v27 = vpop.f32.mrf.mxu0  ;;  %v2198_v46 = vpop.f32.mrf.mxu1 }
 0x245   :  { %2370 = vst [vmem:[%s4573_s3 + $0x138] sm:$0xff] %v2321_v36  ;;  %v1744_v44 = vmax.f32 %v4182_v11, %v1695_v8  ;;  %v1621_v41 = vadd.f32 %v4511_v20, %v1620_v27  ;;  %v2199_v58 = vadd.f32 %v4511_v20, %v2198_v46  ;;  %v4582_v27 = vld [vmem:[#allocation3_spill] sm:$0xff] }
 0x246   :  { %v3170_v14 = vpop.f32.mrf.mxu0  ;;  %v3280_v29 = vpop.f32.mrf.mxu1 }
 0x247   :  { %v2322_v47 = vmax.f32 %v1744_v44, %v2273_v42  ;;  %v1696_v61 = vmax.f32 %v1621_v41, 0.0  ;;  %v2274_v51 = vmax.f32 %v2199_v58, 0.0 }
 0x248   :  { %v1625_v50 = vpop.f32.mrf.mxu0  ;;  %v2203_v0 = vpop.f32.mrf.mxu1 }
 0x249   :  { %2371 = vst [vmem:[%s4573_s3 + $0x140] sm:$0xff] %v2322_v47  ;;  %v1745_v54 = vmax.f32 %v4188_v35, %v1696_v61  ;;  %v1626_v2 = vadd.f32 %v4511_v20, %v1625_v50  ;;  %v2204_v11 = vadd.f32 %v4511_v20, %v2203_v0  ;;  %v4583_v0 = vld [vmem:[#allocation4_spill] sm:$0xff] }
 0x24a   :  { %v3173_v12 = vpop.f32.mrf.mxu0  ;;  %v3283_v57 = vpop.f32.mrf.mxu1 }
 0x24b   :  { %v2323_v56 = vmax.f32 %v1745_v54, %v2274_v51  ;;  %v1697_v30 = vmax.f32 %v1626_v2, 0.0  ;;  %v2275_v18 = vmax.f32 %v2204_v11, 0.0 }
 0x24c   :  { %v1628_v25 = vpop.f32.mrf.mxu0  ;;  %v2206_v10 = vpop.f32.mrf.mxu1 }
 0x24d   :  { %2372 = vst [vmem:[%s4573_s3 + $0x148] sm:$0xff] %v2323_v56  ;;  %v1746_v7 = vmax.f32 %v4202_v63, %v1697_v30  ;;  %v1629_v35 = vadd.f32 %v4511_v20, %v1628_v25  ;;  %v2207_v52 = vadd.f32 %v4511_v20, %v2206_v10 }
 0x24e   :  { %v3174_v5 = vpop.f32.mrf.mxu0  ;;  %v3284_v53 = vpop.f32.mrf.mxu1 }
 0x24f   :  { %v2324_v15 = vmax.f32 %v1746_v7, %v2275_v18  ;;  %v1698_v33 = vmax.f32 %v1629_v35, 0.0  ;;  %v2276_v62 = vmax.f32 %v2207_v52, 0.0  ;;  %v4584_v7 = vld [vmem:[#allocation5_spill] sm:$0xff] }
 0x250   :  { %v1633_v13 = vpop.f32.mrf.mxu0  ;;  %v2211_v6 = vpop.f32.mrf.mxu1 }
 0x251   :  { %2373 = vst [vmem:[%s4573_s3 + $0x150] sm:$0xff] %v2324_v15  ;;  %v1747_v17 = vmax.f32 %v4213_v32, %v1698_v33  ;;  %v1634_v59 = vadd.f32 %v4511_v20, %v1633_v13  ;;  %v2212_v63 = vadd.f32 %v4511_v20, %v2211_v6 }
 0x252   :  { %v3177_v34 = vpop.f32.mrf.mxu0  ;;  %v3287_v26 = vpop.f32.mrf.mxu1 }
 0x253   :  { %v2325_v60 = vmax.f32 %v1747_v17, %v2276_v62  ;;  %v1699_v21 = vmax.f32 %v1634_v59, 0.0  ;;  %v2277_v48 = vmax.f32 %v2212_v63, 0.0 }
 0x254   :  { %v1636_v24 = vpop.f32.mrf.mxu0  ;;  %v2214_v38 = vpop.f32.mrf.mxu1 }
 0x255   :  { %2374 = vst [vmem:[%s4573_s3 + $0x158] sm:$0xff] %v2325_v60  ;;  %v1748_v39 = vmax.f32 %v4227_v4, %v1699_v21  ;;  %v1637_v32 = vadd.f32 %v4511_v20, %v1636_v24  ;;  %v2215_v1 = vadd.f32 %v4511_v20, %v2214_v38 }
 0x256   :  { %v3178_v55 = vpop.f32.mrf.mxu0  ;;  %v3288_v31 = vpop.f32.mrf.mxu1 }
 0x257   :  { %v2326_v23 = vmax.f32 %v1748_v39, %v2277_v48  ;;  %v1700_v28 = vmax.f32 %v1637_v32, 0.0  ;;  %v2278_v22 = vmax.f32 %v2215_v1, 0.0 }
 0x258   :  { %v1641_v37 = vpop.f32.mrf.mxu0  ;;  %v2219_v19 = vpop.f32.mrf.mxu1 }
 0x259   :  { %2375 = vst [vmem:[%s4573_s3 + $0x160] sm:$0xff] %v2326_v23  ;;  %v1749_v9 = vmax.f32 %v4581_v40, %v1700_v28  ;;  %v1642_v43 = vadd.f32 %v4511_v20, %v1641_v37  ;;  %v2220_v4 = vadd.f32 %v4511_v20, %v2219_v19 }
 0x25a   :  { %v3181_v3 = vpop.f32.mrf.mxu0  ;;  %v3291_v45 = vpop.f32.mrf.mxu1 }
 0x25b   :  { %v2327_v49 = vmax.f32 %v1749_v9, %v2278_v22  ;;  %v1701_v16 = vmax.f32 %v1642_v43, 0.0  ;;  %v2279_v36 = vmax.f32 %v2220_v4, 0.0 }
 0x25c   :  { %v1644_v8 = vpop.f32.mrf.mxu0  ;;  %v2222_v42 = vpop.f32.mrf.mxu1 }
 0x25d   :  { %2376 = vst [vmem:[%s4573_s3 + $0x168] sm:$0xff] %v2327_v49  ;;  %v1750_v46 = vmax.f32 %v4582_v27, %v1701_v16  ;;  %v1645_v44 = vadd.f32 %v4511_v20, %v1644_v8  ;;  %v2223_v41 = vadd.f32 %v4511_v20, %v2222_v42 }
 0x25e   :  { %v3182_v58 = vpop.f32.mrf.mxu0  ;;  %v3292_v14 = vpop.f32.mrf.mxu1 }
 0x25f   :  { %v2328_v29 = vmax.f32 %v1750_v46, %v2279_v36  ;;  %v1702_v47 = vmax.f32 %v1645_v44, 0.0  ;;  %v2280_v51 = vmax.f32 %v2223_v41, 0.0 }
 0x260   :  { %v1649_v61 = vpop.f32.mrf.mxu0  ;;  %v2227_v50 = vpop.f32.mrf.mxu1 }
 0x261   :  { %2377 = vst [vmem:[%s4573_s3 + $0x170] sm:$0xff] %v2328_v29  ;;  %v1751_v54 = vmax.f32 %v4583_v0, %v1702_v47  ;;  %v1650_v2 = vadd.f32 %v4511_v20, %v1649_v61  ;;  %v2228_v11 = vadd.f32 %v4511_v20, %v2227_v50 }
 0x262   :  { %v3185_v12 = vpop.f32.mrf.mxu0  ;;  %v3295_v57 = vpop.f32.mrf.mxu1 }
 0x263   :  { %v2329_v56 = vmax.f32 %v1751_v54, %v2280_v51  ;;  %v1703_v30 = vmax.f32 %v1650_v2, 0.0  ;;  %v2281_v18 = vmax.f32 %v2228_v11, 0.0 }
 0x264   :  { %v1652_v25 = vpop.f32.mrf.mxu0  ;;  %v2230_v10 = vpop.f32.mrf.mxu1 }
 0x265   :  { %2378 = vst [vmem:[%s4573_s3 + $0x178] sm:$0xff] %v2329_v56  ;;  %v1752_v35 = vmax.f32 %v4584_v7, %v1703_v30 }
 0x266   :  { %v3186_v52 = vpop.f32.mrf.mxu0  ;;  %v3296_v5 = vpop.f32.mrf.mxu1 }
 0x267   :  { %v2330_v53 = vmax.f32 %v1752_v35, %v2281_v18 }
 0x269   :  { %2379 = vst [vmem:[%s4573_s3 + $0x180] sm:$0xff] %v2330_v53 }

// kernel: net_forward.4
= control target key start
LH: loop header
LB: loop body
LE: loop exit
PB: predicated region body
PF: predicated region fallthrough
CT: control target
= control target key end

     0   :  { %v765_v0 = vmov 0   ;;  %vm138_vm0 = vcmask 179200   ;;  %vm151_vm1 = vcmask 1042432   ;;  %s1082_s1 = inlined_call_operand.vmem [shape: bf16[150,128], index: 1, kind: input, shape index: {}]   ;;  %s1083_s0 = inlined_call_operand.vmem [shape: bf16[4,56,150], index: 0, kind: input, shape index: {}]   ;;  %s1084_s2 = inlined_call_operand.vmem [shape: f32[1,128], index: 2, kind: input, shape index: {}]   ;;  %s1085_s3 = inlined_call_operand.vmem [shape: f32[56,128], index: 3, kind: output, shape index: {}]  }
   0x1   :  { %155 = vmatprep.subr.bf16.mxu0 %v765_v0  ;;  %279 = vmatprep.subr.bf16.mxu1 %v765_v0  ;;  %v791_v1 = vld [vmem:[%s1082_s1 + $0x38] sm:$0xff]   ;;  %v798_v2 = vld [vmem:[%s1082_s1 + $0x30] sm:$0xff]   ;;  %v807_v3 = vld [vmem:[%s1082_s1 + $0x28] sm:$0xff]  }
   0x2   :  { %156 = vmatpush1.bf16.msra.mxu0 %v791_v1  ;;  %280 = vmatpush1.bf16.msra.mxu1 %v791_v1  ;;  %v816_v4 = vld [vmem:[%s1082_s1 + $0x20] sm:$0xff]   ;;  %v832_v7 = vld [vmem:[%s1082_s1 + $0x18] sm:$0xff]   ;;  %v842_v8 = vld [vmem:[%s1082_s1 + $0x10] sm:$0xff]  }
   0x3   :  { %157 = vmatprep.subr.bf16.mxu0 %v765_v0  ;;  %281 = vmatprep.subr.bf16.mxu1 %v765_v0  ;;  %v723_v5 = vld [vmem:[%s1083_s0 + $0x4] ss:$8 sps:$4 sm:$0xff]   ;;  %v719_v11 = vld [vmem:[%s1082_s1 + $0x48] ss:$0 sps:$4 sm:$0x77]   ;;  %v41_v24 = vld [vmem:[%s1083_s0 + $0x30] sm:$0xff] }
   0x4   :  { %649 = vmatprep.mubr.msk.bf16.mxu0 %vm138_vm0, %v723_v5  ;;  %v726_v6 = vld [vmem:[%s1083_s0 + $0x3c] ss:$8 sps:$4 sm:$0xff]   ;;  %v851_v9 = vld [vmem:[%s1082_s1 + $0x8] sm:$0xff]   ;;  %v871_v12 = vsel %vm151_vm1, %v719_v11, 0  ;;  %v724_v15 = vld [vmem:[%s1083_s0 + $0x38] ss:$8 sps:$4 sm:$0xff]   ;;  %v638_v26 = vcombine.high %v41_v24, %v41_v24  ;;  %v637_v28 = vcombine.low %v41_v24, %v41_v24 }
   0x5   :  { %668 = vmatprep.mubr.msk.bf16.mxu1 %vm138_vm0, %v726_v6  ;;  %v860_v10 = vld [vmem:[%s1082_s1] sm:$0xff]   ;;  %v727_v16 = vld [vmem:[%s1083_s0 + $0x14] ss:$8 sps:$4 sm:$0xff]   ;;  %v729_v18 = vld [vmem:[%s1083_s0 + $0x10] ss:$8 sps:$4 sm:$0xff]  }
   0x6   :  { %158 = vmatpush1.bf16.msra.mxu0 %v798_v2  ;;  %282 = vmatpush1.bf16.msra.mxu1 %v798_v2  ;;  %v878_v13 = vld [vmem:[%s1082_s1 + $0x40] sm:$0xff]   ;;  %v730_v17 = vld [vmem:[%s1083_s0 + $0x4c] ss:$8 sps:$4 sm:$0xff]   ;;  %v732_v19 = vld [vmem:[%s1083_s0 + $0x48] ss:$8 sps:$4 sm:$0xff]  }
   0x7   :  { %159 = vmatprep.subr.bf16.mxu0 %v765_v0  ;;  %283 = vmatprep.subr.bf16.mxu1 %v765_v0  ;;  %v721_v14 = vld [vmem:[%s1083_s0] ss:$8 sps:$4 sm:$0xff]   ;;  %v733_v20 = vld [vmem:[%s1083_s0 + $0x24] ss:$8 sps:$4 sm:$0xff]   ;;  %v745_v30 = vld [vmem:[%s1083_s0 + $0x74] ss:$8 sps:$4 sm:$0xff]  }
   0x8   :  { %v736_v21 = vld [vmem:[%s1083_s0 + $0x5c] ss:$8 sps:$4 sm:$0xff]   ;;  %v735_v22 = vld [vmem:[%s1083_s0 + $0x20] ss:$8 sps:$4 sm:$0xff]   ;;  %v748_v31 = vld [vmem:[%s1083_s0 + $0xac] ss:$8 sps:$4 sm:$0xff]  }
   0x9   :  { %v738_v23 = vld [vmem:[%s1083_s0 + $0x58] ss:$8 sps:$4 sm:$0xff]   ;;  %v659_v25 = vld [vmem:[%s1083_s0 + $0x68] sm:$0xff]  ;;  %v751_v35 = vld [vmem:[%s1083_s0 + $0xbc] ss:$8 sps:$4 sm:$0xff]  }
   0xa   :  { %160 = vmatpush1.bf16.msra.mxu0 %v807_v3  ;;  %284 = vmatpush1.bf16.msra.mxu1 %v807_v3  ;;  %v667_v27 = vcombine.high %v659_v25, %v659_v25  ;;  %v666_v29 = vcombine.low %v659_v25, %v659_v25  ;;  %v743_v32 = vld [vmem:[%s1083_s0 + $0x70] ss:$8 sps:$4 sm:$0xff]   ;;  %v749_v34 = vld [vmem:[%s1083_s0 + $0x84] ss:$8 sps:$4 sm:$0xff]   ;;  %v753_v36 = vld [vmem:[%s1083_s0 + $0x80] ss:$8 sps:$4 sm:$0xff]  }
   0xb   :  { %161 = vmatprep.subr.bf16.mxu0 %v765_v0  ;;  %285 = vmatprep.subr.bf16.mxu1 %v765_v0  ;;  %v746_v33 = vld [vmem:[%s1083_s0 + $0xa8] ss:$8 sps:$4 sm:$0xff]   ;;  %v754_v37 = vld [vmem:[%s1083_s0 + $0xb8] ss:$8 sps:$4 sm:$0xff]   ;;  %v755_v38 = vld [vmem:[%s1083_s0 + $0x94] ss:$8 sps:$4 sm:$0xff]  }
   0xc   :  { %v757_v39 = vld [vmem:[%s1083_s0 + $0xcc] ss:$8 sps:$4 sm:$0xff]   ;;  %v678_v40 = vld [vmem:[%s1083_s0 + $0xa0] sm:$0xff]  ;;  %v697_v41 = vld [vmem:[%s1083_s0 + $0xd8] sm:$0xff] }
   0xd   :  { %v759_v42 = vld [vmem:[%s1083_s0 + $0x90] ss:$8 sps:$4 sm:$0xff]   ;;  %v686_v44 = vcombine.high %v678_v40, %v678_v40  ;;  %v705_v45 = vcombine.high %v697_v41, %v697_v41  ;;  %v685_v46 = vcombine.low %v678_v40, %v678_v40  ;;  %v704_v47 = vcombine.low %v697_v41, %v697_v41 }
   0xe   :  { %162 = vmatpush1.bf16.msra.mxu0 %v816_v4  ;;  %286 = vmatpush1.bf16.msra.mxu1 %v816_v4  ;;  %v760_v43 = vld [vmem:[%s1083_s0 + $0xc8] ss:$8 sps:$4 sm:$0xff]  }
   0xf   :  { %163 = vmatprep.subr.bf16.mxu0 %v765_v0  ;;  %287 = vmatprep.subr.bf16.mxu1 %v765_v0 }
  0x12   :  { %164 = vmatpush1.bf16.msra.mxu0 %v832_v7  ;;  %288 = vmatpush1.bf16.msra.mxu1 %v832_v7 }
  0x13   :  { %165 = vmatprep.subr.bf16.mxu0 %v765_v0  ;;  %289 = vmatprep.subr.bf16.mxu1 %v765_v0 }
  0x16   :  { %166 = vmatpush1.bf16.msra.mxu0 %v842_v8  ;;  %290 = vmatpush1.bf16.msra.mxu1 %v842_v8 }
  0x17   :  { %167 = vmatprep.subr.bf16.mxu0 %v765_v0  ;;  %291 = vmatprep.subr.bf16.mxu1 %v765_v0 }
  0x1a   :  { %168 = vmatpush1.bf16.msra.mxu0 %v851_v9  ;;  %292 = vmatpush1.bf16.msra.mxu1 %v851_v9 }
  0x1b   :  { %169 = vmatprep.subr.bf16.mxu0 %v765_v0  ;;  %293 = vmatprep.subr.bf16.mxu1 %v765_v0 }
  0x1e   :  { %170 = vmatpush1.bf16.msra.mxu0 %v860_v10  ;;  %294 = vmatpush1.bf16.msra.mxu1 %v860_v10 }
  0x1f   :  { %183 = vmatprep.subr.bf16.mxu0 %v765_v0  ;;  %307 = vmatprep.subr.bf16.mxu1 %v765_v0 }
  0x22   :  { %184 = vmatpush2.bf16.msra.mxu0 %v871_v12  ;;  %308 = vmatpush2.bf16.msra.mxu1 %v871_v12 }
  0x23   :  { %185 = vmatprep.subr.bf16.mxu0 %v765_v0  ;;  %309 = vmatprep.subr.bf16.mxu1 %v765_v0 }
  0x26   :  { %186 = vmatpush2.bf16.msra.mxu0 %v878_v13  ;;  %310 = vmatpush2.bf16.msra.mxu1 %v878_v13 }
  0x27   :  { %410 = vmatprep.subr.bf16.mxu0 %v765_v0  ;;  %541 = vmatprep.subr.bf16.mxu1 %v765_v0 }
  0x29   :  { %188 = vmatmul.mubr.bf16.vlgmr.msra.gmra.mxu0 %v721_v14  ;;  %312 = vmatmul.mubr.bf16.vlgmr.msra.gmra.mxu1 %v724_v15 }
  0x2a   :  { %411 = vmatpush1.bf16.msra.mxu0 %v791_v1  ;;  %542 = vmatpush1.bf16.msra.mxu1 %v791_v1 }
  0x2b   :  { %412 = vmatprep.subr.bf16.mxu0 %v765_v0  ;;  %543 = vmatprep.subr.bf16.mxu1 %v765_v0 }
  0x2c   :  { %650 = vmatprep.mubr.msk.bf16.mxu0 %vm138_vm0, %v727_v16  ;;  %669 = vmatprep.mubr.msk.bf16.mxu1 %vm138_vm0, %v730_v17  ;;  %v1027_v16 = vld [vmem:[%s1084_s2] ss:$0 sm:$0xff] }
  0x2e   :  { %413 = vmatpush1.bf16.msra.mxu0 %v798_v2  ;;  %544 = vmatpush1.bf16.msra.mxu1 %v798_v2 }
  0x2f   :  { %414 = vmatprep.subr.bf16.mxu0 %v765_v0  ;;  %545 = vmatprep.subr.bf16.mxu1 %v765_v0 }
  0x31   :  { %196 = vmatmul.mubr.bf16.gmra.mxu0 %v729_v18  ;;  %320 = vmatmul.mubr.bf16.gmra.mxu1 %v732_v19 }
  0x32   :  { %415 = vmatpush1.bf16.msra.mxu0 %v807_v3  ;;  %546 = vmatpush1.bf16.msra.mxu1 %v807_v3 }
  0x33   :  { %416 = vmatprep.subr.bf16.mxu0 %v765_v0  ;;  %547 = vmatprep.subr.bf16.mxu1 %v765_v0 }
  0x34   :  { %651 = vmatprep.mubr.msk.bf16.mxu0 %vm138_vm0, %v733_v20  ;;  %670 = vmatprep.mubr.msk.bf16.mxu1 %vm138_vm0, %v736_v21 }
  0x36   :  { %417 = vmatpush1.bf16.msra.mxu0 %v816_v4  ;;  %548 = vmatpush1.bf16.msra.mxu1 %v816_v4 }
  0x37   :  { %418 = vmatprep.subr.bf16.mxu0 %v765_v0  ;;  %549 = vmatprep.subr.bf16.mxu1 %v765_v0 }
  0x39   :  { %204 = vmatmul.mubr.bf16.gmra.mxu0 %v735_v22  ;;  %328 = vmatmul.mubr.bf16.gmra.mxu1 %v738_v23 }
  0x3a   :  { %419 = vmatpush1.bf16.msra.mxu0 %v832_v7  ;;  %550 = vmatpush1.bf16.msra.mxu1 %v832_v7 }
  0x3b   :  { %420 = vmatprep.subr.bf16.mxu0 %v765_v0  ;;  %551 = vmatprep.subr.bf16.mxu1 %v765_v0 }
  0x3c   :  { %652 = vmatprep.mubr.msk.bf16.mxu0 %vm138_vm0, %v638_v26  ;;  %671 = vmatprep.mubr.msk.bf16.mxu1 %vm138_vm0, %v667_v27 }
  0x3e   :  { %421 = vmatpush1.bf16.msra.mxu0 %v842_v8  ;;  %552 = vmatpush1.bf16.msra.mxu1 %v842_v8 }
  0x3f   :  { %422 = vmatprep.subr.bf16.mxu0 %v765_v0  ;;  %553 = vmatprep.subr.bf16.mxu1 %v765_v0 }
  0x41   :  { %212 = vmatmul.mubr.bf16.gmra.mxu0 %v637_v28  ;;  %336 = vmatmul.mubr.bf16.gmra.mxu1 %v666_v29 }
  0x42   :  { %423 = vmatpush1.bf16.msra.mxu0 %v851_v9  ;;  %554 = vmatpush1.bf16.msra.mxu1 %v851_v9 }
  0x43   :  { %424 = vmatprep.subr.bf16.mxu0 %v765_v0  ;;  %555 = vmatprep.subr.bf16.mxu1 %v765_v0 }
  0x44   :  { %687 = vmatprep.mubr.msk.bf16.mxu0 %vm138_vm0, %v745_v30  ;;  %706 = vmatprep.mubr.msk.bf16.mxu1 %vm138_vm0, %v748_v31 }
  0x46   :  { %425 = vmatpush1.bf16.msra.mxu0 %v860_v10  ;;  %556 = vmatpush1.bf16.msra.mxu1 %v860_v10 }
  0x47   :  { %438 = vmatprep.subr.bf16.mxu0 %v765_v0  ;;  %569 = vmatprep.subr.bf16.mxu1 %v765_v0 }
  0x4a   :  { %439 = vmatpush2.bf16.msra.mxu0 %v871_v12  ;;  %570 = vmatpush2.bf16.msra.mxu1 %v871_v12 }
  0x4b   :  { %440 = vmatprep.subr.bf16.mxu0 %v765_v0  ;;  %571 = vmatprep.subr.bf16.mxu1 %v765_v0 }
  0x4e   :  { %441 = vmatpush2.bf16.msra.mxu0 %v878_v13  ;;  %572 = vmatpush2.bf16.msra.mxu1 %v878_v13 }
  0x51   :  { %443 = vmatmul.mubr.bf16.vlgmr.msra.gmra.mxu0 %v743_v32  ;;  %574 = vmatmul.mubr.bf16.vlgmr.msra.gmra.mxu1 %v746_v33 }
  0x52   :  { %688 = vmatprep.mubr.msk.bf16.mxu0 %vm138_vm0, %v749_v34  ;;  %707 = vmatprep.mubr.msk.bf16.mxu1 %vm138_vm0, %v751_v35 }
  0x59   :  { %451 = vmatmul.mubr.bf16.gmra.mxu0 %v753_v36  ;;  %582 = vmatmul.mubr.bf16.gmra.mxu1 %v754_v37 }
  0x5a   :  { %689 = vmatprep.mubr.msk.bf16.mxu0 %vm138_vm0, %v755_v38  ;;  %708 = vmatprep.mubr.msk.bf16.mxu1 %vm138_vm0, %v757_v39 }
  0x61   :  { %459 = vmatmul.mubr.bf16.gmra.mxu0 %v759_v42  ;;  %590 = vmatmul.mubr.bf16.gmra.mxu1 %v760_v43 }
  0x62   :  { %690 = vmatprep.mubr.msk.bf16.mxu0 %vm138_vm0, %v686_v44  ;;  %709 = vmatprep.mubr.msk.bf16.mxu1 %vm138_vm0, %v705_v45 }
  0x69   :  { %467 = vmatmul.mubr.bf16.gmra.mxu0 %v685_v46  ;;  %598 = vmatmul.mubr.bf16.gmra.mxu1 %v704_v47 }
  0xe9   :  { %v189_v48 = vpop.f32.mrf.mxu0  ;;  %v313_v49 = vpop.f32.mrf.mxu1 }
  0xea   :  { %v190_v17 = vadd.f32 %v1027_v16, %v189_v48  ;;  %v314_v18 = vadd.f32 %v1027_v16, %v313_v49 }
  0xeb   :  { %v191_v50 = vpop.f32.mrf.mxu0  ;;  %v315_v51 = vpop.f32.mrf.mxu1 }
  0xec   :  { %v219_v19 = vmax.f32 %v190_v17, 0.0  ;;  %v343_v20 = vmax.f32 %v314_v18, 0.0 }
  0xed   :  { %v192_v52 = vpop.f32.mrf.mxu0  ;;  %v316_v53 = vpop.f32.mrf.mxu1 }
  0xee   :  { %v193_v21 = vadd.f32 %v1027_v16, %v192_v52  ;;  %v317_v22 = vadd.f32 %v1027_v16, %v316_v53  ;;  %v350_v27 = vmax.f32 %v219_v19, %v343_v20 }
  0xef   :  { %v194_v54 = vpop.f32.mrf.mxu0  ;;  %v318_v55 = vpop.f32.mrf.mxu1 }
  0xf0   :  { %v220_v32 = vmax.f32 %v193_v21, 0.0  ;;  %v344_v33 = vmax.f32 %v317_v22, 0.0 }
  0xf1   :  { %v197_v56 = vpop.f32.mrf.mxu0  ;;  %v321_v57 = vpop.f32.mrf.mxu1 }
  0xf2   :  { %v198_v28 = vadd.f32 %v1027_v16, %v197_v56  ;;  %v322_v29 = vadd.f32 %v1027_v16, %v321_v57  ;;  %v351_v46 = vmax.f32 %v220_v32, %v344_v33 }
  0xf3   :  { %v199_v58 = vpop.f32.mrf.mxu0  ;;  %v323_v59 = vpop.f32.mrf.mxu1 }
  0xf4   :  { %v221_v41 = vmax.f32 %v198_v28, 0.0  ;;  %v345_v42 = vmax.f32 %v322_v29, 0.0 }
  0xf5   :  { %v200_v60 = vpop.f32.mrf.mxu0  ;;  %v324_v61 = vpop.f32.mrf.mxu1 }
  0xf6   :  { %v201_v43 = vadd.f32 %v1027_v16, %v200_v60  ;;  %v325_v47 = vadd.f32 %v1027_v16, %v324_v61  ;;  %v352_v56 = vmax.f32 %v221_v41, %v345_v42 }
  0xf7   :  { %v202_v62 = vpop.f32.mrf.mxu0  ;;  %v326_v63 = vpop.f32.mrf.mxu1 }
  0xf8   :  { %v222_v57 = vmax.f32 %v201_v43, 0.0  ;;  %v346_v62 = vmax.f32 %v325_v47, 0.0 }
  0xf9   :  { %v205_v0 = vpop.f32.mrf.mxu0  ;;  %v329_v1 = vpop.f32.mrf.mxu1 }
  0xfa   :  { %v206_v58 = vadd.f32 %v1027_v16, %v205_v0  ;;  %v330_v59 = vadd.f32 %v1027_v16, %v329_v1  ;;  %v353_v18 = vmax.f32 %v222_v57, %v346_v62 }
  0xfb   :  { %v207_v2 = vpop.f32.mrf.mxu0  ;;  %v331_v3 = vpop.f32.mrf.mxu1 }
  0xfc   :  { %v223_v0 = vmax.f32 %v206_v58, 0.0 }
  0xfd   :  { %v1016_v4 = vpop.f32.mrf.mxu0  ;;  %v1018_v5 = vpop.f32.mrf.mxu1 }
  0xfe   :  { %v209_v1 = vadd.f32 %v1027_v16, %v1016_v4 }
  0xff   :  { %v210_v6 = vpop.f32.mrf.mxu0  ;;  %v334_v7 = vpop.f32.mrf.mxu1 }
 0x101   :  { %v1020_v8 = vpop.f32.mrf.mxu0  ;;  %v1022_v9 = vpop.f32.mrf.mxu1 }
 0x102   :  { %v214_v28 = vadd.f32 %v1027_v16, %v1020_v8 }
 0x103   :  { %v215_v10 = vpop.f32.mrf.mxu0  ;;  %v339_v11 = vpop.f32.mrf.mxu1 }
 0x104   :  { %v225_v42 = vmax.f32 %v214_v28, 0.0 }
 0x105   :  { %v216_v12 = vpop.f32.mrf.mxu0  ;;  %v340_v13 = vpop.f32.mrf.mxu1 }
 0x106   :  { %v347_v13 = vmax.f32 %v330_v59, 0.0 }
 0x107   :  { %v217_v14 = vpop.f32.mrf.mxu0  ;;  %v341_v15 = vpop.f32.mrf.mxu1 }
 0x108   :  { %v333_v14 = vadd.f32 %v1027_v16, %v1018_v5 }
 0x10a   :  { %v348_v5 = vmax.f32 %v333_v14, 0.0 }
 0x111   :  { %v444_v23 = vpop.f32.mrf.mxu0  ;;  %v575_v24 = vpop.f32.mrf.mxu1 }
 0x112   :  { %v445_v25 = vadd.f32 %v1027_v16, %v444_v23  ;;  %v576_v26 = vadd.f32 %v1027_v16, %v575_v24 }
 0x113   :  { %v446_v30 = vpop.f32.mrf.mxu0  ;;  %v577_v31 = vpop.f32.mrf.mxu1 }
 0x114   :  { %v474_v34 = vmax.f32 %v445_v25, 0.0  ;;  %v605_v35 = vmax.f32 %v576_v26, 0.0  ;;  %v354_v26 = vmax.f32 %v223_v0, %v347_v13  ;;  %v338_v31 = vadd.f32 %v1027_v16, %v1022_v9 }
 0x115   :  { %v447_v36 = vpop.f32.mrf.mxu0  ;;  %v578_v37 = vpop.f32.mrf.mxu1 }
 0x116   :  { %v481_v38 = vmax.f32 %v350_v27, %v474_v34  ;;  %v448_v39 = vadd.f32 %v1027_v16, %v447_v36  ;;  %v579_v40 = vadd.f32 %v1027_v16, %v578_v37  ;;  %v224_v27 = vmax.f32 %v209_v1, 0.0 }
 0x117   :  { %v449_v44 = vpop.f32.mrf.mxu0  ;;  %v580_v45 = vpop.f32.mrf.mxu1  ;;  %v349_v43 = vmax.f32 %v338_v31, 0.0 }
 0x118   :  { %v612_v48 = vmax.f32 %v481_v38, %v605_v35  ;;  %v475_v49 = vmax.f32 %v448_v39, 0.0  ;;  %v606_v53 = vmax.f32 %v579_v40, 0.0  ;;  %v355_v8 = vmax.f32 %v224_v27, %v348_v5 }
 0x119   :  { %v452_v50 = vpop.f32.mrf.mxu0  ;;  %v583_v51 = vpop.f32.mrf.mxu1 }
 0x11a   :  { %619 = vst [vmem:[%s1085_s3] sm:$0xff] %v612_v48  ;;  %v482_v52 = vmax.f32 %v351_v46, %v475_v49  ;;  %v453_v54 = vadd.f32 %v1027_v16, %v452_v50  ;;  %v584_v55 = vadd.f32 %v1027_v16, %v583_v51 }
 0x11b   :  { %v454_v60 = vpop.f32.mrf.mxu0  ;;  %v585_v61 = vpop.f32.mrf.mxu1 }
 0x11c   :  { %v613_v63 = vmax.f32 %v482_v52, %v606_v53  ;;  %v476_v2 = vmax.f32 %v453_v54, 0.0  ;;  %v607_v3 = vmax.f32 %v584_v55, 0.0  ;;  %v356_v53 = vmax.f32 %v225_v42, %v349_v43 }
 0x11d   :  { %v455_v6 = vpop.f32.mrf.mxu0  ;;  %v586_v7 = vpop.f32.mrf.mxu1 }
 0x11e   :  { %620 = vst [vmem:[%s1085_s3 + $0x8] sm:$0xff] %v613_v63  ;;  %v483_v10 = vmax.f32 %v352_v56, %v476_v2  ;;  %v456_v11 = vadd.f32 %v1027_v16, %v455_v6  ;;  %v587_v12 = vadd.f32 %v1027_v16, %v586_v7 }
 0x11f   :  { %v457_v15 = vpop.f32.mrf.mxu0  ;;  %v588_v17 = vpop.f32.mrf.mxu1 }
 0x120   :  { %v614_v19 = vmax.f32 %v483_v10, %v607_v3  ;;  %v477_v20 = vmax.f32 %v456_v11, 0.0  ;;  %v608_v24 = vmax.f32 %v587_v12, 0.0 }
 0x121   :  { %v460_v21 = vpop.f32.mrf.mxu0  ;;  %v591_v22 = vpop.f32.mrf.mxu1 }
 0x122   :  { %621 = vst [vmem:[%s1085_s3 + $0x10] sm:$0xff] %v614_v19  ;;  %v484_v23 = vmax.f32 %v353_v18, %v477_v20  ;;  %v461_v25 = vadd.f32 %v1027_v16, %v460_v21  ;;  %v592_v4 = vadd.f32 %v1027_v16, %v591_v22 }
 0x123   :  { %v462_v29 = vpop.f32.mrf.mxu0  ;;  %v593_v30 = vpop.f32.mrf.mxu1 }
 0x124   :  { %v615_v32 = vmax.f32 %v484_v23, %v608_v24  ;;  %v478_v33 = vmax.f32 %v461_v25, 0.0  ;;  %v609_v34 = vmax.f32 %v592_v4, 0.0 }
 0x125   :  { %v463_v35 = vpop.f32.mrf.mxu0  ;;  %v594_v36 = vpop.f32.mrf.mxu1 }
 0x126   :  { %622 = vst [vmem:[%s1085_s3 + $0x18] sm:$0xff] %v615_v32  ;;  %v485_v37 = vmax.f32 %v354_v26, %v478_v33  ;;  %v464_v38 = vadd.f32 %v1027_v16, %v463_v35  ;;  %v595_v39 = vadd.f32 %v1027_v16, %v594_v36 }
 0x127   :  { %v465_v40 = vpop.f32.mrf.mxu0  ;;  %v596_v41 = vpop.f32.mrf.mxu1 }
 0x128   :  { %v616_v9 = vmax.f32 %v485_v37, %v609_v34  ;;  %v479_v44 = vmax.f32 %v464_v38, 0.0  ;;  %v610_v48 = vmax.f32 %v595_v39, 0.0 }
 0x129   :  { %v468_v45 = vpop.f32.mrf.mxu0  ;;  %v599_v46 = vpop.f32.mrf.mxu1 }
 0x12a   :  { %623 = vst [vmem:[%s1085_s3 + $0x20] sm:$0xff] %v616_v9  ;;  %v486_v47 = vmax.f32 %v355_v8, %v479_v44  ;;  %v469_v49 = vadd.f32 %v1027_v16, %v468_v45  ;;  %v600_v50 = vadd.f32 %v1027_v16, %v599_v46 }
 0x12b   :  { %v470_v51 = vpop.f32.mrf.mxu0  ;;  %v601_v52 = vpop.f32.mrf.mxu1 }
 0x12c   :  { %v617_v54 = vmax.f32 %v486_v47, %v610_v48  ;;  %v480_v55 = vmax.f32 %v469_v49, 0.0  ;;  %v611_v56 = vmax.f32 %v600_v50, 0.0 }
 0x12d   :  { %v471_v57 = vpop.f32.mrf.mxu0  ;;  %v602_v58 = vpop.f32.mrf.mxu1 }
 0x12e   :  { %624 = vst [vmem:[%s1085_s3 + $0x28] sm:$0xff] %v617_v54  ;;  %v487_v59 = vmax.f32 %v356_v53, %v480_v55 }
 0x12f   :  { %v472_v60 = vpop.f32.mrf.mxu0  ;;  %v603_v61 = vpop.f32.mrf.mxu1 }
 0x130   :  { %v618_v62 = vmax.f32 %v487_v59, %v611_v56 }
 0x132   :  { %625 = vst [vmem:[%s1085_s3 + $0x30] sm:$0xff] %v618_v62 }

// kernel: net_forward.5
= control target key start
LH: loop header
LB: loop body
LE: loop exit
PB: predicated region body
PF: predicated region fallthrough
CT: control target
= control target key end

     0   :  { %vm3325_vm0 = vmmov 0   ;;  %s4095_s1 = inlined_call_operand.vmem [shape: bf16[3200,128], index: 1, kind: input, shape index: {}]   ;;  %s4096_s0 = inlined_call_operand.vmem [shape: bf16[8,3200], index: 0, kind: input, shape index: {}]   ;;  %s4097_s2 = inlined_call_operand.vmem [shape: f32[1,128], index: 2, kind: input, shape index: {}]   ;;  %s4098_s3 = inlined_call_operand.vmem [shape: bf16[128,128], index: 3, kind: input, shape index: {}]   ;;  %s4099_s5 = inlined_call_operand.vmem [shape: bf16[128,128], index: 5, kind: input, shape index: {}]   ;;  %s4100_s4 = inlined_call_operand.vmem [shape: f32[1,128], index: 4, kind: input, shape index: {}]   ;;  %s4101_s6 = inlined_call_operand.vmem [shape: f32[1,128], index: 6, kind: input, shape index: {}]   ;;  %s4102_s7 = inlined_call_operand.vmem [shape: f32[8,128], index: 7, kind: output, shape index: {}]  }
   0x1   :  { %v3083_v0 = vld [vmem:[%s4095_s1 + $0x78] sm:$0xff]   ;;  %v3087_v4 = vld [vmem:[%s4095_s1 + $0x70] sm:$0xff]   ;;  %v3091_v8 = vld [vmem:[%s4095_s1 + $0x68] sm:$0xff]  }
   0x2   :  { %v3084_v1 = vld [vmem:[%s4095_s1 + $0x38] sm:$0xff]   ;;  %2730 = vmatprep.subr.bf16.mxu0 %v3083_v0  ;;  %v3088_v5 = vld [vmem:[%s4095_s1 + $0x30] sm:$0xff]   ;;  %v3092_v9 = vld [vmem:[%s4095_s1 + $0x28] sm:$0xff]  }
   0x3   :  { %v3085_v2 = vld [vmem:[%s4095_s1 + $0xf8] sm:$0xff]   ;;  %2731 = vmatpush3.bf16.msra.mxu0 %v3084_v1  ;;  %v3089_v6 = vld [vmem:[%s4095_s1 + $0xf0] sm:$0xff]   ;;  %v3093_v10 = vld [vmem:[%s4095_s1 + $0xe8] sm:$0xff]  }
   0x4   :  { %v3086_v3 = vld [vmem:[%s4095_s1 + $0xb8] sm:$0xff]   ;;  %2752 = vmatprep.subr.bf16.mxu1 %v3085_v2  ;;  %2732 = vmatprep.subr.bf16.mxu0 %v3087_v4  ;;  %v3090_v7 = vld [vmem:[%s4095_s1 + $0xb0] sm:$0xff]   ;;  %v3094_v11 = vld [vmem:[%s4095_s1 + $0xa8] sm:$0xff]  }
   0x5   :  { %2753 = vmatpush3.bf16.msra.mxu1 %v3086_v3  ;;  %v3095_v12 = vld [vmem:[%s4095_s1 + $0x60] sm:$0xff]   ;;  %v3099_v16 = vld [vmem:[%s4095_s1 + $0x58] sm:$0xff]   ;;  %v3103_v20 = vld [vmem:[%s4095_s1 + $0x50] sm:$0xff]  }
   0x6   :  { %2754 = vmatprep.subr.bf16.mxu1 %v3089_v6  ;;  %v3096_v13 = vld [vmem:[%s4095_s1 + $0x20] sm:$0xff]   ;;  %v3100_v17 = vld [vmem:[%s4095_s1 + $0x18] sm:$0xff]   ;;  %v3104_v21 = vld [vmem:[%s4095_s1 + $0x10] sm:$0xff]  }
   0x7   :  { %2733 = vmatpush3.bf16.msra.mxu0 %v3088_v5  ;;  %v3097_v14 = vld [vmem:[%s4095_s1 + $0xe0] sm:$0xff]   ;;  %v3101_v18 = vld [vmem:[%s4095_s1 + $0xd8] sm:$0xff]   ;;  %v3105_v22 = vld [vmem:[%s4095_s1 + $0xd0] sm:$0xff]  }
   0x8   :  { %2734 = vmatprep.subr.bf16.mxu0 %v3091_v8  ;;  %v3098_v15 = vld [vmem:[%s4095_s1 + $0xa0] sm:$0xff]   ;;  %v3102_v19 = vld [vmem:[%s4095_s1 + $0x98] sm:$0xff]   ;;  %v3106_v23 = vld [vmem:[%s4095_s1 + $0x90] sm:$0xff]  }
   0x9   :  { %2755 = vmatpush3.bf16.msra.mxu1 %v3090_v7  ;;  %v3107_v24 = vld [vmem:[%s4095_s1 + $0x48] sm:$0xff]   ;;  %v3111_v28 = vld [vmem:[%s4095_s1 + $0x40] sm:$0xff]   ;;  %v3117_v35 = vld [vmem:[%s4095_s1 + $0x178] sm:$0xff]  }
   0xa   :  { %2756 = vmatprep.subr.bf16.mxu1 %v3093_v10  ;;  %v3108_v25 = vld [vmem:[%s4095_s1 + $0x8] sm:$0xff]   ;;  %v3112_v29 = vld [vmem:[%s4095_s1] sm:$0xff]   ;;  %v3120_v39 = vld [vmem:[%s4095_s1 + $0x138] sm:$0xff]  }
   0xb   :  { %2735 = vmatpush3.bf16.msra.mxu0 %v3092_v9  ;;  %v3109_v26 = vld [vmem:[%s4095_s1 + $0xc8] sm:$0xff]   ;;  %v3113_v30 = vld [vmem:[%s4095_s1 + $0xc0] sm:$0xff]   ;;  %v3121_v40 = vld [vmem:[%s4095_s1 + $0x1f8] sm:$0xff]  }
   0xc   :  { %2736 = vmatprep.subr.bf16.mxu0 %v3095_v12  ;;  %v3110_v27 = vld [vmem:[%s4095_s1 + $0x88] sm:$0xff]   ;;  %v27_v31 = vld [vmem:[%s4096_s0] sm:$0xff]  ;;  %v3122_v41 = vld [vmem:[%s4095_s1 + $0x1b8] sm:$0xff]  }
   0xd   :  { %2757 = vmatpush3.bf16.msra.mxu1 %v3094_v11  ;;  %v2487_v32 = vcombine.low %v27_v31, %v27_v31  ;;  %v2488_v33 = vcombine.high %v27_v31, %v27_v31  ;;  %v3116_v34 = vld [vmem:[%s4095_s1 + $0x80] sm:$0xff]   ;;  %v28_v36 = vld [vmem:[%s4096_s0 + $0x8] sm:$0xff]  ;;  %v3123_v42 = vld [vmem:[%s4095_s1 + $0x170] sm:$0xff]  }
   0xe   :  { %2758 = vmatprep.subr.bf16.mxu1 %v3097_v14  ;;  %v2489_v37 = vcombine.low %v28_v36, %v28_v36  ;;  %v2490_v38 = vcombine.high %v28_v36, %v28_v36  ;;  %v3124_v43 = vld [vmem:[%s4095_s1 + $0x130] sm:$0xff]   ;;  %v3127_v46 = vld [vmem:[%s4095_s1 + $0x168] sm:$0xff]   ;;  %v3131_v50 = vld [vmem:[%s4095_s1 + $0x160] sm:$0xff]  }
   0xf   :  { %2737 = vmatpush3.bf16.msra.mxu0 %v3096_v13  ;;  %1767 = vmatprep.mubr.bf16.mxu0 %v2488_v33  ;;  %v3125_v44 = vld [vmem:[%s4095_s1 + $0x1f0] sm:$0xff]   ;;  %v3128_v47 = vld [vmem:[%s4095_s1 + $0x128] sm:$0xff]   ;;  %v3132_v51 = vld [vmem:[%s4095_s1 + $0x120] sm:$0xff]  }
  0x10   :  { %2738 = vmatprep.subr.bf16.mxu0 %v3099_v16  ;;  %1807 = vmatprep.mubr.bf16.mxu1 %v2490_v38  ;;  %v3126_v45 = vld [vmem:[%s4095_s1 + $0x1b0] sm:$0xff]   ;;  %v3129_v48 = vld [vmem:[%s4095_s1 + $0x1e8] sm:$0xff]   ;;  %v3133_v52 = vld [vmem:[%s4095_s1 + $0x1e0] sm:$0xff]  }
  0x11   :  { %2759 = vmatpush3.bf16.msra.mxu1 %v3098_v15  ;;  %v3130_v49 = vld [vmem:[%s4095_s1 + $0x1a8] sm:$0xff]   ;;  %v3134_v53 = vld [vmem:[%s4095_s1 + $0x1a0] sm:$0xff]   ;;  %v3135_v54 = vld [vmem:[%s4095_s1 + $0x158] sm:$0xff]  }
  0x12   :  { %2760 = vmatprep.subr.bf16.mxu1 %v3101_v18  ;;  %v3136_v55 = vld [vmem:[%s4095_s1 + $0x118] sm:$0xff]   ;;  %v3139_v58 = vld [vmem:[%s4095_s1 + $0x150] sm:$0xff]   ;;  %v3143_v62 = vld [vmem:[%s4095_s1 + $0x148] sm:$0xff]  }
  0x13   :  { %2739 = vmatpush3.bf16.msra.mxu0 %v3100_v17  ;;  %v3137_v56 = vld [vmem:[%s4095_s1 + $0x1d8] sm:$0xff]   ;;  %v3140_v59 = vld [vmem:[%s4095_s1 + $0x110] sm:$0xff]   ;;  %v3144_v63 = vld [vmem:[%s4095_s1 + $0x108] sm:$0xff]  }
  0x14   :  { %2740 = vmatprep.subr.bf16.mxu0 %v3103_v20  ;;  %v3138_v57 = vld [vmem:[%s4095_s1 + $0x198] sm:$0xff]   ;;  %v3141_v60 = vld [vmem:[%s4095_s1 + $0x1d0] sm:$0xff]   ;;  %v3145_v0 = vld [vmem:[%s4095_s1 + $0x1c8] sm:$0xff]  }
  0x15   :  { %2761 = vmatpush3.bf16.msra.mxu1 %v3102_v19  ;;  %v3142_v61 = vld [vmem:[%s4095_s1 + $0x190] sm:$0xff]   ;;  %v3146_v1 = vld [vmem:[%s4095_s1 + $0x188] sm:$0xff]   ;;  %v3147_v2 = vld [vmem:[%s4095_s1 + $0x140] sm:$0xff]  }
  0x16   :  { %2762 = vmatprep.subr.bf16.mxu1 %v3105_v22  ;;  %v3148_v3 = vld [vmem:[%s4095_s1 + $0x100] sm:$0xff]   ;;  %v29_v5 = vld [vmem:[%s4096_s0 + $0x10] sm:$0xff]  ;;  %v3153_v9 = vld [vmem:[%s4095_s1 + $0x278] sm:$0xff]  }
  0x17   :  { %2741 = vmatpush3.bf16.msra.mxu0 %v3104_v21  ;;  %v3149_v4 = vld [vmem:[%s4095_s1 + $0x1c0] sm:$0xff]   ;;  %v2491_v6 = vcombine.low %v29_v5, %v29_v5  ;;  %v2492_v7 = vcombine.high %v29_v5, %v29_v5  ;;  %v30_v10 = vld [vmem:[%s4096_s0 + $0x18] sm:$0xff]  ;;  %v3159_v16 = vld [vmem:[%s4095_s1 + $0x270] sm:$0xff]  }
  0x18   :  { %2742 = vmatprep.subr.bf16.mxu0 %v3107_v24  ;;  %v3152_v8 = vld [vmem:[%s4095_s1 + $0x180] sm:$0xff]   ;;  %v2493_v11 = vcombine.low %v30_v10, %v30_v10  ;;  %v2494_v12 = vcombine.high %v30_v10, %v30_v10  ;;  %v3156_v13 = vld [vmem:[%s4095_s1 + $0x238] sm:$0xff]   ;;  %v3160_v17 = vld [vmem:[%s4095_s1 + $0x230] sm:$0xff]  }
  0x19   :  { %2763 = vmatpush3.bf16.msra.mxu1 %v3106_v23  ;;  %v3157_v14 = vld [vmem:[%s4095_s1 + $0x2f8] sm:$0xff]   ;;  %v3161_v18 = vld [vmem:[%s4095_s1 + $0x2f0] sm:$0xff]   ;;  %v3163_v20 = vld [vmem:[%s4095_s1 + $0x268] sm:$0xff]  }
  0x1a   :  { %2764 = vmatprep.subr.bf16.mxu1 %v3109_v26  ;;  %v3158_v15 = vld [vmem:[%s4095_s1 + $0x2b8] sm:$0xff]   ;;  %v3162_v19 = vld [vmem:[%s4095_s1 + $0x2b0] sm:$0xff]   ;;  %v3164_v21 = vld [vmem:[%s4095_s1 + $0x228] sm:$0xff]  }
  0x1b   :  { %2743 = vmatpush3.bf16.msra.mxu0 %v3108_v25  ;;  %v3165_v22 = vld [vmem:[%s4095_s1 + $0x2e8] sm:$0xff]   ;;  %v3167_v24 = vld [vmem:[%s4095_s1 + $0x260] sm:$0xff]   ;;  %v3174_v31 = vld [vmem:[%s4095_s1 + $0x298] sm:$0xff]  }
  0x1c   :  { %2744 = vmatprep.subr.bf16.mxu0 %v3111_v28  ;;  %v3166_v23 = vld [vmem:[%s4095_s1 + $0x2a8] sm:$0xff]   ;;  %v3168_v25 = vld [vmem:[%s4095_s1 + $0x220] sm:$0xff]   ;;  %v3171_v28 = vld [vmem:[%s4095_s1 + $0x258] sm:$0xff]  }
  0x1d   :  { %2765 = vmatpush3.bf16.msra.mxu1 %v3110_v27  ;;  %v3169_v26 = vld [vmem:[%s4095_s1 + $0x2e0] sm:$0xff]   ;;  %v3176_v33 = vld [vmem:[%s4095_s1 + $0x210] sm:$0xff]   ;;  %v3179_v36 = vld [vmem:[%s4095_s1 + $0x248] sm:$0xff]  }
  0x1e   :  { %2766 = vmatprep.subr.bf16.mxu1 %v3113_v30  ;;  %v3170_v27 = vld [vmem:[%s4095_s1 + $0x2a0] sm:$0xff]   ;;  %v3173_v30 = vld [vmem:[%s4095_s1 + $0x2d8] sm:$0xff]   ;;  %v3181_v38 = vld [vmem:[%s4095_s1 + $0x2c8] sm:$0xff]  }
  0x1f   :  { %2745 = vmatpush3.bf16.msra.mxu0 %v3112_v29  ;;  %v3172_v29 = vld [vmem:[%s4095_s1 + $0x218] sm:$0xff]   ;;  %v3215_v10 = vld [vmem:[%s4095_s1 + $0x348] sm:$0xff]  }
  0x20   :  { %2774 = vmatprep.subr.bf16.mxu0 %v3117_v35  ;;  %v3178_v35 = vld [vmem:[%s4095_s1 + $0x290] sm:$0xff]   ;;  %v3210_v5 = vld [vmem:[%s4095_s1 + $0x398] sm:$0xff]  }
  0x21   :  { %2767 = vmatpush3.bf16.msra.mxu1 %v3116_v34  ;;  %v3177_v34 = vld [vmem:[%s4095_s1 + $0x2d0] sm:$0xff]  }
  0x22   :  { %1768 = vmatmul.mubr.bf16.vlgmr.msra.gmra.mxu0 %v2487_v32  ;;  %2796 = vmatprep.subr.bf16.mxu1 %v3121_v40  ;;  %v3175_v32 = vld [vmem:[%s4095_s1 + $0x250] sm:$0xff]   ;;  %v3183_v40 = vld [vmem:[%s4095_s1 + $0x240] sm:$0xff]  }
  0x23   :  { %2775 = vmatpush3.bf16.msra.mxu0 %v3120_v39  ;;  %1847 = vmatprep.mubr.bf16.mxu0 %v2492_v7  ;;  %v3182_v39 = vld [vmem:[%s4095_s1 + $0x288] sm:$0xff]   ;;  %v3212_v7 = vld [vmem:[%s4095_s1 + $0x310] sm:$0xff]  }
  0x24   :  { %1808 = vmatmul.mubr.bf16.vlgmr.msra.gmra.mxu1 %v2489_v37  ;;  %2776 = vmatprep.subr.bf16.mxu0 %v3123_v42  ;;  %v3180_v37 = vld [vmem:[%s4095_s1 + $0x208] sm:$0xff]   ;;  %v3185_v42 = vld [vmem:[%s4095_s1 + $0x2c0] sm:$0xff]  }
  0x25   :  { %2797 = vmatpush3.bf16.msra.mxu1 %v3122_v41  ;;  %1887 = vmatprep.mubr.bf16.mxu1 %v2494_v12  ;;  %v3184_v41 = vld [vmem:[%s4095_s1 + $0x200] sm:$0xff]   ;;  %v3217_v12 = vld [vmem:[%s4095_s1 + $0x3c8] sm:$0xff]  }
  0x26   :  { %2798 = vmatprep.subr.bf16.mxu1 %v3125_v44 }
  0x27   :  { %2777 = vmatpush3.bf16.msra.mxu0 %v3124_v43  ;;  %v31_v43 = vld [vmem:[%s4096_s0 + $0x20] sm:$0xff] }
  0x28   :  { %2778 = vmatprep.subr.bf16.mxu0 %v3127_v46  ;;  %v2495_v44 = vcombine.low %v31_v43, %v31_v43  ;;  %v3188_v46 = vld [vmem:[%s4095_s1 + $0x280] sm:$0xff]  }
  0x29   :  { %2799 = vmatpush3.bf16.msra.mxu1 %v3126_v45  ;;  %v2496_v45 = vcombine.high %v31_v43, %v31_v43  ;;  %v3246_v43 = vld [vmem:[%s4095_s1 + $0x498] sm:$0xff]  }
  0x2a   :  { %2800 = vmatprep.subr.bf16.mxu1 %v3129_v48  ;;  %v32_v48 = vld [vmem:[%s4096_s0 + $0x28] sm:$0xff] }
  0x2b   :  { %2779 = vmatpush3.bf16.msra.mxu0 %v3128_v47  ;;  %v3189_v47 = vld [vmem:[%s4095_s1 + $0x378] sm:$0xff]  }
  0x2c   :  { %2780 = vmatprep.subr.bf16.mxu0 %v3131_v50  ;;  %v2498_v50 = vcombine.high %v32_v48, %v32_v48 }
  0x2d   :  { %2801 = vmatpush3.bf16.msra.mxu1 %v3130_v49  ;;  %v2497_v49 = vcombine.low %v32_v48, %v32_v48  ;;  %v3251_v48 = vld [vmem:[%s4095_s1 + $0x448] sm:$0xff]  }
  0x2e   :  { %2802 = vmatprep.subr.bf16.mxu1 %v3133_v52  ;;  %v3193_v52 = vld [vmem:[%s4095_s1 + $0x3f8] sm:$0xff]  }
  0x2f   :  { %2781 = vmatpush3.bf16.msra.mxu0 %v3132_v51  ;;  %v3192_v51 = vld [vmem:[%s4095_s1 + $0x338] sm:$0xff]  }
  0x30   :  { %2782 = vmatprep.subr.bf16.mxu0 %v3135_v54  ;;  %v3195_v54 = vld [vmem:[%s4095_s1 + $0x370] sm:$0xff]  }
  0x31   :  { %2803 = vmatpush3.bf16.msra.mxu1 %v3134_v53  ;;  %v3194_v53 = vld [vmem:[%s4095_s1 + $0x3b8] sm:$0xff]  }
  0x32   :  { %2804 = vmatprep.subr.bf16.mxu1 %v3137_v56  ;;  %v3197_v56 = vld [vmem:[%s4095_s1 + $0x3f0] sm:$0xff]  }
  0x33   :  { %2783 = vmatpush3.bf16.msra.mxu0 %v3136_v55  ;;  %v3196_v55 = vld [vmem:[%s4095_s1 + $0x330] sm:$0xff]  }
  0x34   :  { %2784 = vmatprep.subr.bf16.mxu0 %v3139_v58  ;;  %v3199_v58 = vld [vmem:[%s4095_s1 + $0x368] sm:$0xff]  }
  0x35   :  { %2805 = vmatpush3.bf16.msra.mxu1 %v3138_v57  ;;  %v3198_v57 = vld [vmem:[%s4095_s1 + $0x3b0] sm:$0xff]  }
  0x36   :  { %2806 = vmatprep.subr.bf16.mxu1 %v3141_v60  ;;  %v3201_v60 = vld [vmem:[%s4095_s1 + $0x3e8] sm:$0xff]  }
  0x37   :  { %2785 = vmatpush3.bf16.msra.mxu0 %v3140_v59  ;;  %v3200_v59 = vld [vmem:[%s4095_s1 + $0x328] sm:$0xff]  }
  0x38   :  { %2786 = vmatprep.subr.bf16.mxu0 %v3143_v62  ;;  %v3203_v62 = vld [vmem:[%s4095_s1 + $0x360] sm:$0xff]  }
  0x39   :  { %2807 = vmatpush3.bf16.msra.mxu1 %v3142_v61  ;;  %v3202_v61 = vld [vmem:[%s4095_s1 + $0x3a8] sm:$0xff]  }
  0x3a   :  { %2808 = vmatprep.subr.bf16.mxu1 %v3145_v0  ;;  %v3205_v0 = vld [vmem:[%s4095_s1 + $0x3e0] sm:$0xff]  }
  0x3b   :  { %2787 = vmatpush3.bf16.msra.mxu0 %v3144_v63  ;;  %v3204_v63 = vld [vmem:[%s4095_s1 + $0x320] sm:$0xff]  }
  0x3c   :  { %2788 = vmatprep.subr.bf16.mxu0 %v3147_v2  ;;  %v3207_v2 = vld [vmem:[%s4095_s1 + $0x358] sm:$0xff]  }
  0x3d   :  { %2809 = vmatpush3.bf16.msra.mxu1 %v3146_v1  ;;  %v3206_v1 = vld [vmem:[%s4095_s1 + $0x3a0] sm:$0xff]  }
  0x3e   :  { %2810 = vmatprep.subr.bf16.mxu1 %v3149_v4  ;;  %v3209_v4 = vld [vmem:[%s4095_s1 + $0x3d8] sm:$0xff]  }
  0x3f   :  { %2789 = vmatpush3.bf16.msra.mxu0 %v3148_v3  ;;  %v3208_v3 = vld [vmem:[%s4095_s1 + $0x318] sm:$0xff]  }
  0x40   :  { %2818 = vmatprep.subr.bf16.mxu0 %v3153_v9  ;;  %v3214_v9 = vld [vmem:[%s4095_s1 + $0x390] sm:$0xff]  }
  0x41   :  { %2811 = vmatpush3.bf16.msra.mxu1 %v3152_v8  ;;  %v3213_v8 = vld [vmem:[%s4095_s1 + $0x3d0] sm:$0xff]  }
  0x42   :  { %1848 = vmatmul.mubr.bf16.vlgmr.msra.gmra.mxu0 %v2491_v6  ;;  %2840 = vmatprep.subr.bf16.mxu1 %v3157_v14  ;;  %v3211_v6 = vld [vmem:[%s4095_s1 + $0x350] sm:$0xff]   ;;  %v3219_v14 = vld [vmem:[%s4095_s1 + $0x340] sm:$0xff]  }
  0x43   :  { %2819 = vmatpush3.bf16.msra.mxu0 %v3156_v13  ;;  %1927 = vmatprep.mubr.bf16.mxu0 %v2496_v45  ;;  %v3218_v13 = vld [vmem:[%s4095_s1 + $0x388] sm:$0xff]   ;;  %v3248_v45 = vld [vmem:[%s4095_s1 + $0x410] sm:$0xff]  }
  0x44   :  { %1888 = vmatmul.mubr.bf16.vlgmr.msra.gmra.mxu1 %v2493_v11  ;;  %2820 = vmatprep.subr.bf16.mxu0 %v3159_v16  ;;  %v3216_v11 = vld [vmem:[%s4095_s1 + $0x308] sm:$0xff]   ;;  %v3221_v16 = vld [vmem:[%s4095_s1 + $0x3c0] sm:$0xff]  }
  0x45   :  { %2841 = vmatpush3.bf16.msra.mxu1 %v3158_v15  ;;  %1967 = vmatprep.mubr.bf16.mxu1 %v2498_v50  ;;  %v3220_v15 = vld [vmem:[%s4095_s1 + $0x300] sm:$0xff]   ;;  %v3253_v50 = vld [vmem:[%s4095_s1 + $0x4c8] sm:$0xff]  }
  0x46   :  { %2842 = vmatprep.subr.bf16.mxu1 %v3161_v18 }
  0x47   :  { %2821 = vmatpush3.bf16.msra.mxu0 %v3160_v17  ;;  %v33_v17 = vld [vmem:[%s4096_s0 + $0x30] sm:$0xff] }
  0x48   :  { %2822 = vmatprep.subr.bf16.mxu0 %v3163_v20  ;;  %v2499_v18 = vcombine.low %v33_v17, %v33_v17  ;;  %v3224_v20 = vld [vmem:[%s4095_s1 + $0x380] sm:$0xff]  }
  0x49   :  { %2843 = vmatpush3.bf16.msra.mxu1 %v3162_v19  ;;  %v2500_v19 = vcombine.high %v33_v17, %v33_v17  ;;  %v3282_v17 = vld [vmem:[%s4095_s1 + $0x598] sm:$0xff]  }
  0x4a   :  { %2844 = vmatprep.subr.bf16.mxu1 %v3165_v22  ;;  %v34_v22 = vld [vmem:[%s4096_s0 + $0x38] sm:$0xff] }
  0x4b   :  { %2823 = vmatpush3.bf16.msra.mxu0 %v3164_v21  ;;  %v3225_v21 = vld [vmem:[%s4095_s1 + $0x478] sm:$0xff]  }
  0x4c   :  { %2824 = vmatprep.subr.bf16.mxu0 %v3167_v24  ;;  %v2502_v24 = vcombine.high %v34_v22, %v34_v22 }
  0x4d   :  { %2845 = vmatpush3.bf16.msra.mxu1 %v3166_v23  ;;  %v2501_v23 = vcombine.low %v34_v22, %v34_v22  ;;  %v3287_v22 = vld [vmem:[%s4095_s1 + $0x548] sm:$0xff]  }
  0x4e   :  { %2846 = vmatprep.subr.bf16.mxu1 %v3169_v26  ;;  %v3229_v26 = vld [vmem:[%s4095_s1 + $0x4f8] sm:$0xff]  }
  0x4f   :  { %2825 = vmatpush3.bf16.msra.mxu0 %v3168_v25  ;;  %v3228_v25 = vld [vmem:[%s4095_s1 + $0x438] sm:$0xff]  }
  0x50   :  { %2826 = vmatprep.subr.bf16.mxu0 %v3171_v28  ;;  %v3231_v28 = vld [vmem:[%s4095_s1 + $0x470] sm:$0xff]  }
  0x51   :  { %2847 = vmatpush3.bf16.msra.mxu1 %v3170_v27  ;;  %v3230_v27 = vld [vmem:[%s4095_s1 + $0x4b8] sm:$0xff]  }
  0x52   :  { %2848 = vmatprep.subr.bf16.mxu1 %v3173_v30  ;;  %v3233_v30 = vld [vmem:[%s4095_s1 + $0x4f0] sm:$0xff]  }
  0x53   :  { %2827 = vmatpush3.bf16.msra.mxu0 %v3172_v29  ;;  %v3232_v29 = vld [vmem:[%s4095_s1 + $0x430] sm:$0xff]  }
  0x54   :  { %2828 = vmatprep.subr.bf16.mxu0 %v3175_v32  ;;  %v3235_v32 = vld [vmem:[%s4095_s1 + $0x468] sm:$0xff]  }
  0x55   :  { %2849 = vmatpush3.bf16.msra.mxu1 %v3174_v31  ;;  %v3234_v31 = vld [vmem:[%s4095_s1 + $0x4b0] sm:$0xff]  }
  0x56   :  { %2850 = vmatprep.subr.bf16.mxu1 %v3177_v34  ;;  %v3237_v34 = vld [vmem:[%s4095_s1 + $0x4e8] sm:$0xff]  }
  0x57   :  { %2829 = vmatpush3.bf16.msra.mxu0 %v3176_v33  ;;  %v3236_v33 = vld [vmem:[%s4095_s1 + $0x428] sm:$0xff]  }
  0x58   :  { %2830 = vmatprep.subr.bf16.mxu0 %v3179_v36  ;;  %v3239_v36 = vld [vmem:[%s4095_s1 + $0x460] sm:$0xff]  }
  0x59   :  { %2851 = vmatpush3.bf16.msra.mxu1 %v3178_v35  ;;  %v3238_v35 = vld [vmem:[%s4095_s1 + $0x4a8] sm:$0xff]  }
  0x5a   :  { %2852 = vmatprep.subr.bf16.mxu1 %v3181_v38  ;;  %v3241_v38 = vld [vmem:[%s4095_s1 + $0x4e0] sm:$0xff]  }
  0x5b   :  { %2831 = vmatpush3.bf16.msra.mxu0 %v3180_v37  ;;  %v3240_v37 = vld [vmem:[%s4095_s1 + $0x420] sm:$0xff]  }
  0x5c   :  { %2832 = vmatprep.subr.bf16.mxu0 %v3183_v40  ;;  %v3243_v40 = vld [vmem:[%s4095_s1 + $0x458] sm:$0xff]  }
  0x5d   :  { %2853 = vmatpush3.bf16.msra.mxu1 %v3182_v39  ;;  %v3242_v39 = vld [vmem:[%s4095_s1 + $0x4a0] sm:$0xff]  }
  0x5e   :  { %2854 = vmatprep.subr.bf16.mxu1 %v3185_v42  ;;  %v3245_v42 = vld [vmem:[%s4095_s1 + $0x4d8] sm:$0xff]  }
  0x5f   :  { %2833 = vmatpush3.bf16.msra.mxu0 %v3184_v41  ;;  %v3244_v41 = vld [vmem:[%s4095_s1 + $0x418] sm:$0xff]  }
  0x60   :  { %2862 = vmatprep.subr.bf16.mxu0 %v3189_v47  ;;  %v3250_v47 = vld [vmem:[%s4095_s1 + $0x490] sm:$0xff]  }
  0x61   :  { %2855 = vmatpush3.bf16.msra.mxu1 %v3188_v46  ;;  %v3249_v46 = vld [vmem:[%s4095_s1 + $0x4d0] sm:$0xff]  }
  0x62   :  { %1928 = vmatmul.mubr.bf16.vlgmr.msra.gmra.mxu0 %v2495_v44  ;;  %2884 = vmatprep.subr.bf16.mxu1 %v3193_v52  ;;  %v3247_v44 = vld [vmem:[%s4095_s1 + $0x450] sm:$0xff]   ;;  %v3255_v52 = vld [vmem:[%s4095_s1 + $0x440] sm:$0xff]  }
  0x63   :  { %2863 = vmatpush3.bf16.msra.mxu0 %v3192_v51  ;;  %2007 = vmatprep.mubr.bf16.mxu0 %v2500_v19  ;;  %v3254_v51 = vld [vmem:[%s4095_s1 + $0x488] sm:$0xff]   ;;  %v3284_v19 = vld [vmem:[%s4095_s1 + $0x510] sm:$0xff]  }
  0x64   :  { %1968 = vmatmul.mubr.bf16.vlgmr.msra.gmra.mxu1 %v2497_v49  ;;  %2864 = vmatprep.subr.bf16.mxu0 %v3195_v54  ;;  %v3252_v49 = vld [vmem:[%s4095_s1 + $0x408] sm:$0xff]   ;;  %v3257_v54 = vld [vmem:[%s4095_s1 + $0x4c0] sm:$0xff]  }
  0x65   :  { %2885 = vmatpush3.bf16.msra.mxu1 %v3194_v53  ;;  %2047 = vmatprep.mubr.bf16.mxu1 %v2502_v24  ;;  %v3256_v53 = vld [vmem:[%s4095_s1 + $0x400] sm:$0xff]   ;;  %v3289_v24 = vld [vmem:[%s4095_s1 + $0x5c8] sm:$0xff]  }
  0x66   :  { %2886 = vmatprep.subr.bf16.mxu1 %v3197_v56 }
  0x67   :  { %2865 = vmatpush3.bf16.msra.mxu0 %v3196_v55  ;;  %v35_v55 = vld [vmem:[%s4096_s0 + $0x40] sm:$0xff] }
  0x68   :  { %2866 = vmatprep.subr.bf16.mxu0 %v3199_v58  ;;  %v2503_v56 = vcombine.low %v35_v55, %v35_v55  ;;  %v3260_v58 = vld [vmem:[%s4095_s1 + $0x480] sm:$0xff]  }
  0x69   :  { %2887 = vmatpush3.bf16.msra.mxu1 %v3198_v57  ;;  %v2504_v57 = vcombine.high %v35_v55, %v35_v55 }
  0x6a   :  { %2888 = vmatprep.subr.bf16.mxu1 %v3201_v60  ;;  %v36_v60 = vld [vmem:[%s4096_s0 + $0x48] sm:$0xff] }
  0x6b   :  { %2867 = vmatpush3.bf16.msra.mxu0 %v3200_v59  ;;  %v3261_v59 = vld [vmem:[%s4095_s1 + $0x578] sm:$0xff]  }
  0x6c   :  { %2868 = vmatprep.subr.bf16.mxu0 %v3203_v62  ;;  %v2506_v62 = vcombine.high %v36_v60, %v36_v60 }
  0x6d   :  { %2889 = vmatpush3.bf16.msra.mxu1 %v3202_v61  ;;  %v2505_v61 = vcombine.low %v36_v60, %v36_v60 }
  0x6e   :  { %2890 = vmatprep.subr.bf16.mxu1 %v3205_v0  ;;  %v3265_v0 = vld [vmem:[%s4095_s1 + $0x5f8] sm:$0xff]  }
  0x6f   :  { %2869 = vmatpush3.bf16.msra.mxu0 %v3204_v63  ;;  %v3264_v63 = vld [vmem:[%s4095_s1 + $0x538] sm:$0xff]  }
  0x70   :  { %2870 = vmatprep.subr.bf16.mxu0 %v3207_v2  ;;  %v3267_v2 = vld [vmem:[%s4095_s1 + $0x570] sm:$0xff]  }
  0x71   :  { %2891 = vmatpush3.bf16.msra.mxu1 %v3206_v1  ;;  %v3266_v1 = vld [vmem:[%s4095_s1 + $0x5b8] sm:$0xff]  }
  0x72   :  { %2892 = vmatprep.subr.bf16.mxu1 %v3209_v4  ;;  %v3269_v4 = vld [vmem:[%s4095_s1 + $0x5f0] sm:$0xff]  }
  0x73   :  { %2871 = vmatpush3.bf16.msra.mxu0 %v3208_v3  ;;  %v3268_v3 = vld [vmem:[%s4095_s1 + $0x530] sm:$0xff]  }
  0x74   :  { %2872 = vmatprep.subr.bf16.mxu0 %v3211_v6  ;;  %v3271_v6 = vld [vmem:[%s4095_s1 + $0x568] sm:$0xff]  }
  0x75   :  { %2893 = vmatpush3.bf16.msra.mxu1 %v3210_v5  ;;  %v3270_v5 = vld [vmem:[%s4095_s1 + $0x5b0] sm:$0xff]  }
  0x76   :  { %2894 = vmatprep.subr.bf16.mxu1 %v3213_v8  ;;  %v3273_v8 = vld [vmem:[%s4095_s1 + $0x5e8] sm:$0xff]  }
  0x77   :  { %2873 = vmatpush3.bf16.msra.mxu0 %v3212_v7  ;;  %v3272_v7 = vld [vmem:[%s4095_s1 + $0x528] sm:$0xff]  }
  0x78   :  { %2874 = vmatprep.subr.bf16.mxu0 %v3215_v10  ;;  %v3275_v10 = vld [vmem:[%s4095_s1 + $0x560] sm:$0xff]  }
  0x79   :  { %2895 = vmatpush3.bf16.msra.mxu1 %v3214_v9  ;;  %v3274_v9 = vld [vmem:[%s4095_s1 + $0x5a8] sm:$0xff]  }
  0x7a   :  { %2896 = vmatprep.subr.bf16.mxu1 %v3217_v12  ;;  %v3277_v12 = vld [vmem:[%s4095_s1 + $0x5e0] sm:$0xff]  }
  0x7b   :  { %2875 = vmatpush3.bf16.msra.mxu0 %v3216_v11  ;;  %v3276_v11 = vld [vmem:[%s4095_s1 + $0x520] sm:$0xff]  }
  0x7c   :  { %2876 = vmatprep.subr.bf16.mxu0 %v3219_v14  ;;  %v3279_v14 = vld [vmem:[%s4095_s1 + $0x558] sm:$0xff]  }
  0x7d   :  { %2897 = vmatpush3.bf16.msra.mxu1 %v3218_v13  ;;  %v3278_v13 = vld [vmem:[%s4095_s1 + $0x5a0] sm:$0xff]  }
  0x7e   :  { %2898 = vmatprep.subr.bf16.mxu1 %v3221_v16  ;;  %v3281_v16 = vld [vmem:[%s4095_s1 + $0x5d8] sm:$0xff]  }
  0x7f   :  { %2877 = vmatpush3.bf16.msra.mxu0 %v3220_v15  ;;  %v3280_v15 = vld [vmem:[%s4095_s1 + $0x518] sm:$0xff]  }
  0x80   :  { %2906 = vmatprep.subr.bf16.mxu0 %v3225_v21  ;;  %v3286_v21 = vld [vmem:[%s4095_s1 + $0x590] sm:$0xff]  }
  0x81   :  { %2899 = vmatpush3.bf16.msra.mxu1 %v3224_v20  ;;  %v3285_v20 = vld [vmem:[%s4095_s1 + $0x5d0] sm:$0xff]  }
  0x82   :  { %2008 = vmatmul.mubr.bf16.vlgmr.msra.gmra.mxu0 %v2499_v18  ;;  %2928 = vmatprep.subr.bf16.mxu1 %v3229_v26  ;;  %v3283_v18 = vld [vmem:[%s4095_s1 + $0x550] sm:$0xff]   ;;  %v3291_v26 = vld [vmem:[%s4095_s1 + $0x540] sm:$0xff]  }
  0x83   :  { %2907 = vmatpush3.bf16.msra.mxu0 %v3228_v25  ;;  %2087 = vmatprep.mubr.bf16.mxu0 %v2504_v57  ;;  %v3290_v25 = vld [vmem:[%s4095_s1 + $0x588] sm:$0xff]  }
  0x84   :  { %2048 = vmatmul.mubr.bf16.vlgmr.msra.gmra.mxu1 %v2501_v23  ;;  %2908 = vmatprep.subr.bf16.mxu0 %v3231_v28  ;;  %v3288_v23 = vld [vmem:[%s4095_s1 + $0x508] sm:$0xff]   ;;  %v3293_v28 = vld [vmem:[%s4095_s1 + $0x5c0] sm:$0xff]  }
  0x85   :  { %2929 = vmatpush3.bf16.msra.mxu1 %v3230_v27  ;;  %2127 = vmatprep.mubr.bf16.mxu1 %v2506_v62  ;;  %v3292_v27 = vld [vmem:[%s4095_s1 + $0x500] sm:$0xff]  }
  0x86   :  { %2930 = vmatprep.subr.bf16.mxu1 %v3233_v30 }
  0x87   :  { %2909 = vmatpush3.bf16.msra.mxu0 %v3232_v29  ;;  %v37_v29 = vld [vmem:[%s4096_s0 + $0x50] sm:$0xff] }
  0x88   :  { %2910 = vmatprep.subr.bf16.mxu0 %v3235_v32  ;;  %v2507_v30 = vcombine.low %v37_v29, %v37_v29  ;;  %v3296_v32 = vld [vmem:[%s4095_s1 + $0x580] sm:$0xff]  }
  0x89   :  { %2931 = vmatpush3.bf16.msra.mxu1 %v3234_v31  ;;  %v2508_v31 = vcombine.high %v37_v29, %v37_v29  ;;  %v3318_v29 = vld [vmem:[%s4099_s5 + $0x28] sm:$0xff]  }
  0x8a   :  { %2932 = vmatprep.subr.bf16.mxu1 %v3237_v34  ;;  %v3324_v34 = vmov 0.0  }
  0x8b   :  { %2911 = vmatpush3.bf16.msra.mxu0 %v3236_v33  ;;  %v38_v33 = vld [vmem:[%s4096_s0 + $0x58] sm:$0xff] }
  0x8c   :  { %2912 = vmatprep.subr.bf16.mxu0 %v3239_v36  ;;  %v2510_v36 = vcombine.high %v38_v33, %v38_v33 }
  0x8d   :  { %2933 = vmatpush3.bf16.msra.mxu1 %v3238_v35  ;;  %v2509_v35 = vcombine.low %v38_v33, %v38_v33 }
  0x8e   :  { %2934 = vmatprep.subr.bf16.mxu1 %v3241_v38  ;;  %v3300_v38 = vld [vmem:[%s4095_s1 + $0x630] sm:$0xff]  }
  0x8f   :  { %2913 = vmatpush3.bf16.msra.mxu0 %v3240_v37  ;;  %v3299_v37 = vld [vmem:[%s4095_s1 + $0x638] sm:$0xff]  }
  0x90   :  { %2914 = vmatprep.subr.bf16.mxu0 %v3243_v40  ;;  %v3302_v40 = vld [vmem:[%s4095_s1 + $0x620] sm:$0xff]  }
  0x91   :  { %2935 = vmatpush3.bf16.msra.mxu1 %v3242_v39  ;;  %v3301_v39 = vld [vmem:[%s4095_s1 + $0x628] sm:$0xff]  }
  0x92   :  { %2936 = vmatprep.subr.bf16.mxu1 %v3245_v42  ;;  %v3304_v42 = vld [vmem:[%s4095_s1 + $0x610] sm:$0xff]  }
  0x93   :  { %2915 = vmatpush3.bf16.msra.mxu0 %v3244_v41  ;;  %v3303_v41 = vld [vmem:[%s4095_s1 + $0x618] sm:$0xff]  }
  0x94   :  { %2916 = vmatprep.subr.bf16.mxu0 %v3247_v44  ;;  %v3306_v44 = vld [vmem:[%s4095_s1 + $0x600] sm:$0xff]  }
  0x95   :  { %2937 = vmatpush3.bf16.msra.mxu1 %v3246_v43  ;;  %v3305_v43 = vld [vmem:[%s4095_s1 + $0x608] sm:$0xff]  }
  0x96   :  { %2938 = vmatprep.subr.bf16.mxu1 %v3249_v46 }
  0x97   :  { %2917 = vmatpush3.bf16.msra.mxu0 %v3248_v45  ;;  %v3307_v45 = vld [vmem:[%s4096_s0 + $0x60] ss:$0 sps:$4 sm:$0xff]  }
  0x98   :  { %2918 = vmatprep.subr.bf16.mxu0 %v3251_v48 }
  0x99   :  { %2939 = vmatpush3.bf16.msra.mxu1 %v3250_v47  ;;  %v2486_v47 = vld [vmem:[%s4097_s2] ss:$0 sm:$0xff] }
  0x9a   :  { %2940 = vmatprep.subr.bf16.mxu1 %v3253_v50 }
  0x9b   :  { %2919 = vmatpush3.bf16.msra.mxu0 %v3252_v49 }
  0x9c   :  { %2920 = vmatprep.subr.bf16.mxu0 %v3255_v52 }
  0x9d   :  { %2941 = vmatpush3.bf16.msra.mxu1 %v3254_v51 }
  0x9e   :  { %2942 = vmatprep.subr.bf16.mxu1 %v3257_v54 }
  0x9f   :  { %2921 = vmatpush3.bf16.msra.mxu0 %v3256_v53 }
  0xa0   :  { %2950 = vmatprep.subr.bf16.mxu0 %v3261_v59 }
  0xa1   :  { %2943 = vmatpush3.bf16.msra.mxu1 %v3260_v58 }
  0xa2   :  { %2088 = vmatmul.mubr.bf16.vlgmr.msra.gmra.mxu0 %v2503_v56  ;;  %2972 = vmatprep.subr.bf16.mxu1 %v3265_v0 }
  0xa3   :  { %2951 = vmatpush3.bf16.msra.mxu0 %v3264_v63  ;;  %2167 = vmatprep.mubr.bf16.mxu0 %v2508_v31  ;;  %v3320_v31 = vld [vmem:[%s4099_s5 + $0x18] sm:$0xff]  }
  0xa4   :  { %2128 = vmatmul.mubr.bf16.vlgmr.msra.gmra.mxu1 %v2505_v61  ;;  %2952 = vmatprep.subr.bf16.mxu0 %v3267_v2 }
  0xa5   :  { %2973 = vmatpush3.bf16.msra.mxu1 %v3266_v1  ;;  %2207 = vmatprep.mubr.bf16.mxu1 %v2510_v36 }
  0xa6   :  { %2974 = vmatprep.subr.bf16.mxu1 %v3269_v4 }
  0xa7   :  { %2953 = vmatpush3.bf16.msra.mxu0 %v3268_v3 }
  0xa8   :  { %2954 = vmatprep.subr.bf16.mxu0 %v3271_v6 }
  0xa9   :  { %2975 = vmatpush3.bf16.msra.mxu1 %v3270_v5 }
  0xaa   :  { %2976 = vmatprep.subr.bf16.mxu1 %v3273_v8  ;;  %v3309_v8 = vld [vmem:[%s4098_s3 + $0x30] sm:$0xff]  }
  0xab   :  { %2955 = vmatpush3.bf16.msra.mxu0 %v3272_v7  ;;  %v3308_v7 = vld [vmem:[%s4098_s3 + $0x38] sm:$0xff]  }
  0xac   :  { %2956 = vmatprep.subr.bf16.mxu0 %v3275_v10  ;;  %v3311_v10 = vld [vmem:[%s4098_s3 + $0x20] sm:$0xff]  }
  0xad   :  { %2977 = vmatpush3.bf16.msra.mxu1 %v3274_v9  ;;  %v3310_v9 = vld [vmem:[%s4098_s3 + $0x28] sm:$0xff]  }
  0xae   :  { %2978 = vmatprep.subr.bf16.mxu1 %v3277_v12  ;;  %v3313_v12 = vld [vmem:[%s4098_s3 + $0x10] sm:$0xff]  }
  0xaf   :  { %2957 = vmatpush3.bf16.msra.mxu0 %v3276_v11  ;;  %v3312_v11 = vld [vmem:[%s4098_s3 + $0x18] sm:$0xff]  }
  0xb0   :  { %2958 = vmatprep.subr.bf16.mxu0 %v3279_v14  ;;  %v3314_v14 = vld [vmem:[%s4098_s3 + $0x8] sm:$0xff]  }
  0xb1   :  { %2979 = vmatpush3.bf16.msra.mxu1 %v3278_v13 }
  0xb2   :  { %2980 = vmatprep.subr.bf16.mxu1 %v3281_v16 }
  0xb3   :  { %2959 = vmatpush3.bf16.msra.mxu0 %v3280_v15 }
  0xb4   :  { %2960 = vmatprep.subr.bf16.mxu0 %v3283_v18 }
  0xb5   :  { %2981 = vmatpush3.bf16.msra.mxu1 %v3282_v17 }
  0xb6   :  { %2982 = vmatprep.subr.bf16.mxu1 %v3285_v20  ;;  %v3315_v20 = vld [vmem:[%s4098_s3] sm:$0xff]  }
  0xb7   :  { %2961 = vmatpush3.bf16.msra.mxu0 %v3284_v19 }
  0xb8   :  { %2962 = vmatprep.subr.bf16.mxu0 %v3287_v22 }
  0xb9   :  { %2983 = vmatpush3.bf16.msra.mxu1 %v3286_v21 }
  0xba   :  { %2984 = vmatprep.subr.bf16.mxu1 %v3289_v24 }
  0xbb   :  { %2963 = vmatpush3.bf16.msra.mxu0 %v3288_v23 }
  0xbc   :  { %2964 = vmatprep.subr.bf16.mxu0 %v3291_v26 }
  0xbd   :  { %2985 = vmatpush3.bf16.msra.mxu1 %v3290_v25 }
  0xbe   :  { %2986 = vmatprep.subr.bf16.mxu1 %v3293_v28  ;;  %v3317_v28 = vld [vmem:[%s4099_s5 + $0x30] sm:$0xff]  }
  0xbf   :  { %2965 = vmatpush3.bf16.msra.mxu0 %v3292_v27  ;;  %v3316_v27 = vld [vmem:[%s4099_s5 + $0x38] sm:$0xff]  }
  0xc0   :  { %3021 = vmatprep.subr.bf16.mxu0 %v3324_v34 }
  0xc1   :  { %2987 = vmatpush3.bf16.msra.mxu1 %v3296_v32  ;;  %v3321_v32 = vld [vmem:[%s4099_s5 + $0x10] sm:$0xff]  }
  0xc2   :  { %2168 = vmatmul.mubr.bf16.vlgmr.msra.gmra.mxu0 %v2507_v30  ;;  %3041 = vmatprep.subr.bf16.mxu1 %v3324_v34  ;;  %v3319_v30 = vld [vmem:[%s4099_s5 + $0x20] sm:$0xff]  }
  0xc3   :  { %3022 = vmatpush3.bf16.msra.mxu0 %v3299_v37  ;;  %3037 = vmatprep.mubr.msk.bf16.mxu0 %vm3325_vm0, %v3324_v34 }
  0xc4   :  { %2208 = vmatmul.mubr.bf16.vlgmr.msra.gmra.mxu1 %v2509_v35  ;;  %3023 = vmatprep.subr.bf16.mxu0 %v3324_v34 }
  0xc5   :  { %3057 = vmatprep.mubr.msk.bf16.mxu1 %vm3325_vm0, %v3324_v34  ;;  %3042 = vmatpush3.bf16.msra.mxu1 %v3308_v7 }
  0xc6   :  { %3043 = vmatprep.subr.bf16.mxu1 %v3324_v34 }
  0xc7   :  { %3024 = vmatpush3.bf16.msra.mxu0 %v3300_v38 }
  0xc8   :  { %3025 = vmatprep.subr.bf16.mxu0 %v3324_v34 }
  0xc9   :  { %3044 = vmatpush3.bf16.msra.mxu1 %v3309_v8 }
  0xca   :  { %3045 = vmatprep.subr.bf16.mxu1 %v3324_v34 }
  0xcb   :  { %3026 = vmatpush3.bf16.msra.mxu0 %v3301_v39 }
  0xcc   :  { %3027 = vmatprep.subr.bf16.mxu0 %v3324_v34 }
  0xcd   :  { %3046 = vmatpush3.bf16.msra.mxu1 %v3310_v9 }
  0xce   :  { %3047 = vmatprep.subr.bf16.mxu1 %v3324_v34 }
  0xcf   :  { %3028 = vmatpush3.bf16.msra.mxu0 %v3302_v40 }
  0xd0   :  { %3029 = vmatprep.subr.bf16.mxu0 %v3324_v34 }
  0xd1   :  { %3048 = vmatpush3.bf16.msra.mxu1 %v3311_v10 }
  0xd2   :  { %3049 = vmatprep.subr.bf16.mxu1 %v3324_v34 }
  0xd3   :  { %3030 = vmatpush3.bf16.msra.mxu0 %v3303_v41 }
  0xd4   :  { %3031 = vmatprep.subr.bf16.mxu0 %v3324_v34 }
  0xd5   :  { %3050 = vmatpush3.bf16.msra.mxu1 %v3312_v11 }
  0xd6   :  { %3051 = vmatprep.subr.bf16.mxu1 %v3324_v34 }
  0xd7   :  { %3032 = vmatpush3.bf16.msra.mxu0 %v3304_v42 }
  0xd8   :  { %3033 = vmatprep.subr.bf16.mxu0 %v3324_v34 }
  0xd9   :  { %3052 = vmatpush3.bf16.msra.mxu1 %v3313_v12 }
  0xda   :  { %3053 = vmatprep.subr.bf16.mxu1 %v3324_v34 }
  0xdb   :  { %3034 = vmatpush3.bf16.msra.mxu0 %v3305_v43 }
  0xdc   :  { %3035 = vmatprep.subr.bf16.mxu0 %v3324_v34 }
  0xdd   :  { %3054 = vmatpush3.bf16.msra.mxu1 %v3314_v14  ;;  %v3323_v14 = vld [vmem:[%s4099_s5] sm:$0xff]  }
  0xde   :  { %3055 = vmatprep.subr.bf16.mxu1 %v3324_v34 }
  0xdf   :  { %3036 = vmatpush3.bf16.msra.mxu0 %v3306_v44 }
  0xe0   :  { %3061 = vmatprep.subr.bf16.mxu0 %v3324_v34 }
  0xe1   :  { %3056 = vmatpush3.bf16.msra.mxu1 %v3315_v20 }
  0xe2   :  { %v2746_v46 = vpop.f32.mrf.mxu0  ;;  %3038 = vmatmul.mubr.bf16.vlgmr.msra.gmra.mxu0 %v3307_v45 }
  0xe3   :  { %3077 = vmatprep.mubr.msk.bf16.mxu0 %vm3325_vm0, %v3324_v34  ;;  %3062 = vmatpush3.bf16.msra.mxu0 %v3316_v27 }
  0xe4   :  { %v2747_v48 = vpop.f32.mrf.mxu0  ;;  %v2768_v49 = vpop.f32.mrf.mxu1  ;;  %3063 = vmatprep.subr.bf16.mxu0 %v3324_v34 }
  0xe5   :  { %v2748_v50 = vadd.f32 %v2747_v48, %v2746_v46 }
  0xe6   :  { %v2749_v51 = vpop.f32.mrf.mxu0  ;;  %v2769_v52 = vpop.f32.mrf.mxu1 }
  0xe7   :  { %v1770_v53 = vadd.f32 %v2748_v50, %v2486_v47  ;;  %v2770_v54 = vadd.f32 %v2769_v52, %v2768_v49  ;;  %3064 = vmatpush3.bf16.msra.mxu0 %v3317_v28 }
  0xe8   :  { %v2750_v55 = vpop.f32.mrf.mxu0  ;;  %v2771_v56 = vpop.f32.mrf.mxu1  ;;  %3065 = vmatprep.subr.bf16.mxu0 %v3324_v34 }
  0xe9   :  { %v1810_v57 = vadd.f32 %v2770_v54, %v1770_v53 }
  0xea   :  { %v2772_v58 = vpop.f32.mrf.mxu1 }
  0xeb   :  { %3066 = vmatpush3.bf16.msra.mxu0 %v3318_v29 }
  0xec   :  { %3067 = vmatprep.subr.bf16.mxu0 %v3324_v34 }
  0xef   :  { %3068 = vmatpush3.bf16.msra.mxu0 %v3319_v30 }
  0xf0   :  { %3069 = vmatprep.subr.bf16.mxu0 %v3324_v34 }
  0xf3   :  { %3070 = vmatpush3.bf16.msra.mxu0 %v3320_v31 }
  0xf4   :  { %3071 = vmatprep.subr.bf16.mxu0 %v3324_v34 }
  0xf7   :  { %3072 = vmatpush3.bf16.msra.mxu0 %v3321_v32 }
  0xf8   :  { %3073 = vmatprep.subr.bf16.mxu0 %v3324_v34 }
 0x102   :  { %v2790_v59 = vpop.f32.mrf.mxu0 }
 0x104   :  { %v2791_v60 = vpop.f32.mrf.mxu0  ;;  %v2812_v62 = vpop.f32.mrf.mxu1 }
 0x105   :  { %v2792_v61 = vadd.f32 %v2791_v60, %v2790_v59 }
 0x106   :  { %v2793_v63 = vpop.f32.mrf.mxu0  ;;  %v2813_v1 = vpop.f32.mrf.mxu1 }
 0x107   :  { %v1850_v0 = vadd.f32 %v2792_v61, %v1810_v57  ;;  %v2814_v2 = vadd.f32 %v2813_v1, %v2812_v62 }
 0x108   :  { %v2794_v3 = vpop.f32.mrf.mxu0  ;;  %v2815_v4 = vpop.f32.mrf.mxu1 }
 0x109   :  { %v1890_v5 = vadd.f32 %v2814_v2, %v1850_v0 }
 0x10a   :  { %v2816_v6 = vpop.f32.mrf.mxu1 }
 0x122   :  { %v2834_v13 = vpop.f32.mrf.mxu0 }
 0x124   :  { %v2835_v15 = vpop.f32.mrf.mxu0  ;;  %v2856_v16 = vpop.f32.mrf.mxu1 }
 0x125   :  { %v2836_v17 = vadd.f32 %v2835_v15, %v2834_v13  ;;  %v3322_v13 = vld [vmem:[%s4099_s5 + $0x8] sm:$0xff]   ;;  %v2712_v15 = vld [vmem:[%s4100_s4] ss:$0 sm:$0xff] }
 0x126   :  { %v2837_v18 = vpop.f32.mrf.mxu0  ;;  %v2857_v19 = vpop.f32.mrf.mxu1  ;;  %3074 = vmatpush3.bf16.msra.mxu0 %v3322_v13 }
 0x127   :  { %v1930_v21 = vadd.f32 %v2836_v17, %v1890_v5  ;;  %v2858_v22 = vadd.f32 %v2857_v19, %v2856_v16  ;;  %3075 = vmatprep.subr.bf16.mxu0 %v3324_v34  ;;  %v2721_v34 = vld [vmem:[%s4101_s6] ss:$0 sm:$0xff] }
 0x128   :  { %v2838_v23 = vpop.f32.mrf.mxu0  ;;  %v2859_v24 = vpop.f32.mrf.mxu1 }
 0x129   :  { %v1970_v25 = vadd.f32 %v2858_v22, %v1930_v21 }
 0x12a   :  { %v2860_v26 = vpop.f32.mrf.mxu1  ;;  %3076 = vmatpush3.bf16.msra.mxu0 %v3323_v14 }
 0x142   :  { %v2878_v33 = vpop.f32.mrf.mxu0 }
 0x144   :  { %v2879_v35 = vpop.f32.mrf.mxu0  ;;  %v2900_v36 = vpop.f32.mrf.mxu1 }
 0x145   :  { %v2880_v37 = vadd.f32 %v2879_v35, %v2878_v33 }
 0x146   :  { %v2881_v38 = vpop.f32.mrf.mxu0  ;;  %v2901_v39 = vpop.f32.mrf.mxu1 }
 0x147   :  { %v2010_v40 = vadd.f32 %v2880_v37, %v1970_v25  ;;  %v2902_v41 = vadd.f32 %v2901_v39, %v2900_v36 }
 0x148   :  { %v2882_v42 = vpop.f32.mrf.mxu0  ;;  %v2903_v43 = vpop.f32.mrf.mxu1 }
 0x149   :  { %v2050_v44 = vadd.f32 %v2902_v41, %v2010_v40 }
 0x14a   :  { %v2904_v45 = vpop.f32.mrf.mxu1 }
 0x162   :  { %v2922_v46 = vpop.f32.mrf.mxu0 }
 0x164   :  { %v2923_v47 = vpop.f32.mrf.mxu0  ;;  %v2944_v48 = vpop.f32.mrf.mxu1 }
 0x165   :  { %v2924_v62 = vadd.f32 %v2923_v47, %v2922_v46 }
 0x166   :  { %v2925_v49 = vpop.f32.mrf.mxu0  ;;  %v2945_v50 = vpop.f32.mrf.mxu1 }
 0x167   :  { %v2090_v63 = vadd.f32 %v2924_v62, %v2050_v44  ;;  %v2946_v0 = vadd.f32 %v2945_v50, %v2944_v48 }
 0x168   :  { %v2926_v51 = vpop.f32.mrf.mxu0  ;;  %v2947_v52 = vpop.f32.mrf.mxu1 }
 0x169   :  { %v2130_v2 = vadd.f32 %v2946_v0, %v2090_v63 }
 0x16a   :  { %v2948_v53 = vpop.f32.mrf.mxu1 }
 0x182   :  { %v2966_v54 = vpop.f32.mrf.mxu0 }
 0x184   :  { %v2967_v55 = vpop.f32.mrf.mxu0  ;;  %v2988_v56 = vpop.f32.mrf.mxu1 }
 0x185   :  { %v2968_v1 = vadd.f32 %v2967_v55, %v2966_v54 }
 0x186   :  { %v2969_v57 = vpop.f32.mrf.mxu0  ;;  %v2989_v58 = vpop.f32.mrf.mxu1 }
 0x187   :  { %v2170_v3 = vadd.f32 %v2968_v1, %v2130_v2  ;;  %v2990_v4 = vadd.f32 %v2989_v58, %v2988_v56 }
 0x188   :  { %v2970_v59 = vpop.f32.mrf.mxu0  ;;  %v2991_v60 = vpop.f32.mrf.mxu1 }
 0x189   :  { %v2210_v5 = vadd.f32 %v2990_v4, %v2170_v3 }
 0x18a   :  { %v2992_v61 = vpop.f32.mrf.mxu1 }
 0x1a2   :  { %v2249_v6 = vpop.f32.mrf.mxu0 }
 0x1a3   :  { %v2250_v7 = vadd.f32 %v2249_v6, %v2210_v5 }
 0x1a4   :  { %v3039_v8 = vpop.f32.mrf.mxu0 }
 0x1a5   :  { %v2255_v9 = vmax.f32 %v2250_v7, 0.0 }
 0x1a6   :  { %v2252_v10 = vpop.f32.mrf.mxu0 }
 0x1a7   :  { %v2256_v11 = vpack.c.bf16 %v2255_v9, %v2255_v9 }
 0x1a8   :  { %v3040_v12 = vpop.f32.mrf.mxu0 }
 0x1a9   :  { %3058 = vmatmul.mubr.bf16.vlgmr.msra.gmra.mxu1 %v2256_v11 }
 0x269   :  { %v2362_v16 = vpop.f32.mrf.mxu1 }
 0x26a   :  { %v2363_v17 = vadd.f32 %v2712_v15, %v2362_v16 }
 0x26b   :  { %v3059_v18 = vpop.f32.mrf.mxu1 }
 0x26c   :  { %v2368_v19 = vmax.f32 %v2363_v17, 0.0 }
 0x26d   :  { %v2365_v20 = vpop.f32.mrf.mxu1 }
 0x26e   :  { %v2369_v21 = vpack.c.bf16 %v2368_v19, %v2368_v19 }
 0x26f   :  { %v3060_v22 = vpop.f32.mrf.mxu1 }
 0x270   :  { %3078 = vmatmul.mubr.bf16.vlgmr.msra.gmra.mxu0 %v2369_v21 }
 0x330   :  { %v2475_v23 = vpop.f32.mrf.mxu0 }
 0x331   :  { %v2476_v24 = vadd.f32 %v2721_v34, %v2475_v23 }
 0x332   :  { %v3079_v25 = vpop.f32.mrf.mxu0 }
 0x333   :  { %2481 = vst [vmem:[%s4102_s7] sm:$0xff] %v2476_v24 }
 0x334   :  { %v2478_v26 = vpop.f32.mrf.mxu0 }
 0x336   :  { %v3080_v27 = vpop.f32.mrf.mxu0 }

</bundles_post_ra>
